<compile_context>
chip_gen: v7x
topology: tpu7x:2x2x1
jax: 0.10.0
libtpu: 0.0.40
codegen_flags: <defaults>
</compile_context>

<pallas_src>
import functools
import numpy as np
import jax
import jax.numpy as jnp
from jax.experimental import pallas as pl
from jax.experimental.pallas import tpu as pltpu

# ----------------------------------------------------------------------------
# Module hyper-parameters (mirrors ConditionalFlatCouplingFlow.__init__)
# ----------------------------------------------------------------------------
IN_CHANNELS     = 8      # in_channels (even)
COND_DIM        = 10     # conditioning_dim
EMB_DIM         = 12     # embedding_dim == cond_channels fed to every block
HIDDEN_DIM      = 32     # hidden_dim of coupling MLPs
HIDDEN_DEPTH    = 2      # hidden_depth (middle Linear layers of coupling MLPs)
N_FLOWS         = 3      # n_flows
COND_HIDDEN_DIM = 32     # conditioning_hidden_dim
COND_DEPTH      = 2      # conditioning_depth
# conditioning_option = 'none' (default); activation = 'lrelu' (InvLeakyRelu)

LRELU_SLOPE     = 0.01   # nn.LeakyReLU default negative_slope
INV_LRELU_ALPHA = 0.9    # InvLeakyRelu alpha
HALF            = IN_CHANNELS // 2
BATCH           = 4

LANE  = 128              # vreg lane width; all flow-state slabs are 128 wide
NF2   = N_FLOWS * 2      # number of fused (s|t) coupling nets
NMID  = NF2 * HIDDEN_DEPTH
VEC_W = NF2 * LANE       # 768: width of the fused emb-term slab / vecs array

# row layout of the packed `vecs` (N_VEC_ROWS, VEC_W) bias array
R_BEMB = 0                              # fused first-layer emb bias (full 768)
R_BMID = 1                              # + fj*HIDDEN_DEPTH + d   (12 rows, 128 wide)
R_BOUT = R_BMID + NMID                  # + fj                    (6 rows, 256 wide)
R_ANS  = R_BOUT + NF2                   # + f  ActNorm scale      (3 rows, 128 wide)
R_ANB  = R_ANS + N_FLOWS                # + f  ActNorm scale*loc  (3 rows, 128 wide)
R_EMBB = R_ANB + N_FLOWS                # + layer  embedder biases (3 rows, 32 wide)
N_VEC_ROWS = R_EMBB + (1 + COND_DEPTH)  # 28


def _lrelu(v):
    return jnp.where(v >= 0, v, LRELU_SLOPE * v)


# ----------------------------------------------------------------------------
# Pallas kernel: entire forward pass (embedder + N_FLOWS coupling flow blocks)
# ----------------------------------------------------------------------------
def _flow_kernel(ld_ref, x_ref, cond_ref, emb_w_ref, w_emb_ref, big_w_ref, vecs_ref,
                 z_ref, logdet_ref):
    dot = functools.partial(jnp.dot, preferred_element_type=jnp.float32)
    HID = HIDDEN_DIM

    k = x_ref[...]            # (B, 128) padded, input-permuted flow state
    h = cond_ref[...]         # (B, COND_HIDDEN) zero-padded conditioning

    # ---- embedder: lrelu layers only; output layer folded into w_emb_ref.
    for d in range(1 + COND_DEPTH):
        b = vecs_ref[R_EMBB + d:R_EMBB + d + 1, 0:COND_HIDDEN_DIM]
        h = _lrelu(dot(h, emb_w_ref[d]) + b)

    # ---- all NF2 hoisted, flow-invariant first-layer emb contributions in ONE
    # matmul; each fj block occupies its own 128-lane slab -> aligned slices.
    emb_all = dot(h, w_emb_ref[...]) + vecs_ref[R_BEMB:R_BEMB + 1, :]      # (B, 768)

    s_acc = jnp.zeros_like(k)  # (B,128) logdet accumulator; pass-through/pad lanes stay 0

    for f in range(N_FLOWS):
        # ActNorm (eval semantics, H*W == 1) as a single FMA; padding lanes 1 / 0.
        scale = vecs_ref[R_ANS + f:R_ANS + f + 1, 0:LANE]
        bias  = vecs_ref[R_ANB + f:R_ANB + f + 1, 0:LANE]
        k = scale * k + bias
        # InvLeakyRelu (log-det contribution is 0.0 in the reference code)
        k = jnp.where(k >= 0, k, INV_LRELU_ALPHA * k)

        # ConditionalDoubleVectorCouplingBlock: two affine sub-couplings.
        # Half-swap + Shuffle are folded into the scattered w1 / wout weights,
        # so each sub-coupling is a pure elementwise update of the full k vreg.
        for j in range(2):
            fj = 2 * f + j
            m = 3 * fj                                    # fused (s|t) first layer
            w1 = big_w_ref[NF2 + m // 2, :, (m % 2) * LANE:(m % 2 + 1) * LANE]
            hh = _lrelu(dot(k, w1) + emb_all[:, fj * LANE:(fj + 1) * LANE])
            for d in range(HIDDEN_DEPTH):                 # block-diagonal fused hidden
                m = 3 * fj + 1 + d
                wm = big_w_ref[NF2 + m // 2, :, (m % 2) * LANE:(m % 2 + 1) * LANE]
                bm = vecs_ref[R_BMID + fj * HIDDEN_DEPTH + d:
                              R_BMID + fj * HIDDEN_DEPTH + d + 1, 0:LANE]
                hh = _lrelu(dot(hh, wm) + bm)
            out = dot(hh, big_w_ref[fj]) \
                + vecs_ref[R_BOUT + fj:R_BOUT + fj + 1, 0:2 * LANE]        # (B, 256)
            s_full = jnp.tanh(out[:, 0:LANE])             # vreg-aligned s slab
            t_full = out[:, LANE:2 * LANE]                # vreg-aligned t slab
            k = k * jnp.exp(s_full) + t_full              # exp(0)=1, +0 on identity lanes
            s_acc = s_acc + s_full

    z_ref[...] = k                                        # final permutation already folded
    logdet_ref[...] = jnp.sum(s_acc, axis=1, keepdims=True) + ld_ref[0, 0]


# ----------------------------------------------------------------------------
# Wrapper (fully jitted: casts, padding, pallas_call, slice all in one dispatch)
# ----------------------------------------------------------------------------
@jax.jit
def _forward(x, cond, packed):
    if x.ndim == 4:
        assert x.shape[2] == 1 and x.shape[3] == 1, "flat flow expects (B, C, 1, 1)"
        x2d = x.reshape(x.shape[0], x.shape[1])
    else:
        x2d = x
    if cond.ndim == 4:
        assert cond.shape[2] == 1 and cond.shape[3] == 1
        cond2d = cond.reshape(cond.shape[0], cond.shape[1])
    else:
        cond2d = cond
    x2d = x2d.astype(jnp.float32)
    cond2d = cond2d.astype(jnp.float32)        # cond.float() in torch
    B = x2d.shape[0]

    # Fold the residual Shuffle/half-swap permutation into the *input* column
    # order (kernel columns were chosen so the final mapping is identity), and
    # pad the state / conditioning to full lane widths.
    x_pad = jnp.zeros((B, LANE), jnp.float32).at[:, :IN_CHANNELS].set(
        x2d[:, packed["in_perm"]])
    cond_pad = jnp.zeros((B, COND_HIDDEN_DIM), jnp.float32).at[:, :COND_DIM].set(cond2d)

    vmem = pl.BlockSpec(memory_space=pltpu.MemorySpace.VMEM)
    smem = pl.BlockSpec(memory_space=pltpu.MemorySpace.SMEM)

    # B=4 / C=8: a single program is the right shape (params total ~2.1 MB VMEM).
    # For production batches, tile the batch instead: grid=(B//TB,) with
    # BlockSpec((TB, LANE), lambda i: (i, 0)) on x/z, block-0 index_maps on the
    # broadcast params, TB a multiple of 8, and dimension_semantics=("parallel",)
    # so v7x shards the axis across its two TensorCores.
    z_pad, ld = pl.pallas_call(
        _flow_kernel,
        out_shape=(jax.ShapeDtypeStruct((B, LANE), jnp.float32),
                   jax.ShapeDtypeStruct((B, 1), jnp.float32)),
        in_specs=[smem] + [vmem] * 6,
        out_specs=(vmem, vmem),
    )(packed["ld_const"], x_pad, cond_pad, packed["emb_w"], packed["w_emb_all"],
      packed["big_w"], packed["vecs"])

    z = z_pad[:, :IN_CHANNELS]
    return z.reshape(B, IN_CHANNELS, 1, 1), ld.reshape(B)


def conditional_flat_coupling_flow(x, cond, packed):
    return _forward(x, cond, packed)


# ----------------------------------------------------------------------------
# Deterministic synthetic parameters (torch-module-shaped, "raw")
# ----------------------------------------------------------------------------
def init_params(key):
    keys = iter(jax.random.split(key, 24))
    DIN = HALF + EMB_DIM

    def lin(fan_in, shape):
        return (1.0 / np.sqrt(fan_in)) * jax.random.normal(next(keys), shape, jnp.float32)

    def bias(shape):
        return 0.01 * jax.random.normal(next(keys), shape, jnp.float32)

    p = {}
    # embedder (BasicFullyConnectedNet, depth=COND_DEPTH)
    p["ew_in"] = lin(COND_DIM, (COND_DIM, COND_HIDDEN_DIM))
    p["eb_in"] = bias((1, COND_HIDDEN_DIM))
    p["ew_mid"] = lin(COND_HIDDEN_DIM, (COND_DEPTH, COND_HIDDEN_DIM, COND_HIDDEN_DIM))
    p["eb_mid"] = bias((COND_DEPTH, 1, COND_HIDDEN_DIM))
    p["ew_out"] = lin(COND_HIDDEN_DIM, (COND_HIDDEN_DIM, EMB_DIM))
    p["eb_out"] = bias((1, EMB_DIM))
    # per-flow ActNorm
    p["an_loc"] = 0.1 * jax.random.normal(next(keys), (N_FLOWS, 1, IN_CHANNELS), jnp.float32)
    p["an_scale"] = 1.0 + 0.1 * jax.random.normal(next(keys), (N_FLOWS, 1, IN_CHANNELS), jnp.float32)
    # per-flow coupling s/t nets, stacked over (flow, sub-coupling) -> leading dim NF*2
    for name in ("s", "t"):
        p[f"{name}w_in"] = lin(DIN, (NF2, DIN, HIDDEN_DIM))
        p[f"{name}b_in"] = bias((NF2, 1, HIDDEN_DIM))
        p[f"{name}w_mid"] = lin(HIDDEN_DIM, (NMID, HIDDEN_DIM, HIDDEN_DIM))
        p[f"{name}b_mid"] = bias((NMID, 1, HIDDEN_DIM))
        p[f"{name}w_out"] = lin(HIDDEN_DIM, (NF2, HIDDEN_DIM, HALF))
        p[f"{name}b_out"] = bias((NF2, 1, HALF))
    # per-flow Shuffle permutation (fixed buffer in torch)
    p["shuffle_idx"] = jnp.stack(
        [jax.random.permutation(next(keys), IN_CHANNELS) for _ in range(N_FLOWS)])
    return p


# ----------------------------------------------------------------------------
# Host-side packing: fold s/t fusion, half-swap, Shuffle, ew_out, weight
# scattering and the ActNorm log-det constant into kernel-ready parameters.
# ----------------------------------------------------------------------------
def pack_params(raw):
    P = {kk: np.asarray(v, np.float64) for kk, v in raw.items() if kk != "shuffle_idx"}
    idxs = np.asarray(raw["shuffle_idx"])
    C, H, HID = IN_CHANNELS, HALF, HIDDEN_DIM

    # Dry-run the permutation flow (half-swaps + Shuffles) to get the composed
    # permutation tau, then choose the initial kernel-column order so the FINAL
    # mapping is the identity -> no output permutation needed at all.
    c2k = np.arange(C)
    for f in range(N_FLOWS):
        for j in range(2):
            if j == 1:
                c2k = np.concatenate([c2k[H:], c2k[:H]])
        c2k = c2k[idxs[f]]
    tau = c2k.copy()
    in_perm = tau.copy()            # x_kernel = x[:, tau]
    c2k = np.argsort(tau)           # initial kernel column holding reference channel c

    # embedder weights (ew_in zero-padded to COND_HIDDEN rows; cond zero-padded in wrapper)
    emb_w = np.zeros((1 + COND_DEPTH, COND_HIDDEN_DIM, COND_HIDDEN_DIM), np.float64)
    emb_w[0, :COND_DIM, :] = P["ew_in"]
    for d in range(COND_DEPTH):
        emb_w[1 + d] = P["ew_mid"][d]

    w_emb_all = np.zeros((COND_HIDDEN_DIM, VEC_W), np.float64)
    vecs = np.zeros((N_VEC_ROWS, VEC_W), np.float64)
    vecs[R_EMBB + 0, :COND_HIDDEN_DIM] = P["eb_in"][0]
    for d in range(COND_DEPTH):
        vecs[R_EMBB + 1 + d, :COND_HIDDEN_DIM] = P["eb_mid"][d, 0]

    # big_w: slabs [0, NF2) are the (128,256) fused wout matrices; the remaining
    # 9 slabs hold the 18 fused (w1 | wmid) 128x128 matrices packed two per slab.
    big_w = np.zeros((NF2 + 9, LANE, 2 * LANE), np.float64)

    def set_mat(m, mat):
        big_w[NF2 + m // 2, :, (m % 2) * LANE:(m % 2 + 1) * LANE] = mat

    for f in range(N_FLOWS):
        # ActNorm scatter; padding lanes keep scale=1, bias=0 so padding stays 0.
        srow = np.ones(LANE)
        brow = np.zeros(LANE)
        srow[c2k] = P["an_scale"][f, 0]
        brow[c2k] = P["an_scale"][f, 0] * P["an_loc"][f, 0]
        vecs[R_ANS + f, :LANE] = srow
        vecs[R_ANB + f, :LANE] = brow

        for j in range(2):
            fj = 2 * f + j
            if j == 1:                       # reference swaps halves (no swap-back)
                c2k = np.concatenate([c2k[H:], c2k[:H]])
            apply_cols, xform_cols = c2k[:H], c2k[H:]

            sw_in, tw_in = P["sw_in"][fj], P["tw_in"][fj]        # (H+EMB, HID)
            # fused first layer, x-rows scattered to kernel columns
            w1 = np.zeros((LANE, LANE))
            w1[apply_cols, 0:HID] = sw_in[:H]
            w1[apply_cols, HID:2 * HID] = tw_in[:H]
            set_mat(3 * fj, w1)
            # hoisted emb-rows + first bias, with the embedder output layer folded in
            wemb = np.zeros((EMB_DIM, LANE))
            wemb[:, 0:HID] = sw_in[H:]
            wemb[:, HID:2 * HID] = tw_in[H:]
            bemb = np.zeros((1, LANE))
            bemb[0, 0:HID] = P["sb_in"][fj, 0]
            bemb[0, HID:2 * HID] = P["tb_in"][fj, 0]
            w_emb_all[:, fj * LANE:(fj + 1) * LANE] = P["ew_out"] @ wemb
            vecs[R_BEMB, fj * LANE:(fj + 1) * LANE] = (P["eb_out"] @ wemb + bemb)[0]

            for d in range(HIDDEN_DEPTH):                        # block-diagonal fuse
                md = fj * HIDDEN_DEPTH + d
                wm = np.zeros((LANE, LANE))
                wm[0:HID, 0:HID] = P["sw_mid"][md]
                wm[HID:2 * HID, HID:2 * HID] = P["tw_mid"][md]
                set_mat(3 * fj + 1 + d, wm)
                vecs[R_BMID + md, 0:HID] = P["sb_mid"][md, 0]
                vecs[R_BMID + md, HID:2 * HID] = P["tb_mid"][md, 0]

            # fused output layer: s slab -> lanes [0,128), t slab -> lanes [128,256);
            # all non-target columns stay exactly 0 (tanh(0)=0, exp(0)=1, +0).
            wo = big_w[fj]
            wo[0:HID, xform_cols] = P["sw_out"][fj]
            wo[HID:2 * HID, LANE + xform_cols] = P["tw_out"][fj]
            vecs[R_BOUT + fj, xform_cols] = P["sb_out"][fj, 0]
            vecs[R_BOUT + fj, LANE + xform_cols] = P["tb_out"][fj, 0]
        c2k = c2k[idxs[f]]                                       # fold the Shuffle

    assert np.array_equal(c2k, np.arange(C)), "permutation folding failed"

    packed = dict(
        emb_w=jnp.asarray(emb_w, jnp.float32),
        w_emb_all=jnp.asarray(w_emb_all, jnp.float32),
        big_w=jnp.asarray(big_w, jnp.float32),
        vecs=jnp.asarray(vecs, jnp.float32),
        # parameter-only ActNorm log-det constant (scalar, delivered via SMEM)
        ld_const=jnp.asarray(
            np.sum(np.log(np.abs(P["an_scale"]))), jnp.float32).reshape(1, 1),
        # input column permutation (applied once to x inside the jitted wrapper)
        in_perm=jnp.asarray(in_perm, jnp.int32),
    )
    return packed


# ----------------------------------------------------------------------------
# Pure NumPy reference (float64) mirroring the torch forward, for verification
# ----------------------------------------------------------------------------
def reference_forward(x, cond, p):
    def lrelu(v):
        return np.where(v >= 0, v, LRELU_SLOPE * v)

    P = {k: np.asarray(v, dtype=np.float64) for k, v in p.items() if k != "shuffle_idx"}
    idxs = np.asarray(p["shuffle_idx"])
    x = np.asarray(x, dtype=np.float64).reshape(x.shape[0], IN_CHANNELS)
    cond = np.asarray(cond, dtype=np.float64).reshape(cond.shape[0], COND_DIM)

    emb = lrelu(cond @ P["ew_in"] + P["eb_in"])
    for d in range(COND_DEPTH):
        emb = lrelu(emb @ P["ew_mid"][d] + P["eb_mid"][d])
    emb = emb @ P["ew_out"] + P["eb_out"]

    def mlp(h, pre, fj, use_tanh):
        h = lrelu(h @ P[pre + "w_in"][fj] + P[pre + "b_in"][fj])
        for d in range(HIDDEN_DEPTH):
            md = fj * HIDDEN_DEPTH + d
            h = lrelu(h @ P[pre + "w_mid"][md] + P[pre + "b_mid"][md])
        h = h @ P[pre + "w_out"][fj] + P[pre + "b_out"][fj]
        return np.tanh(h) if use_tanh else h

    h = x
    logdet = np.zeros((x.shape[0],), np.float64)
    for f in range(N_FLOWS):
        scale = P["an_scale"][f]
        h = scale * (h + P["an_loc"][f])
        logdet = logdet + np.sum(np.log(np.abs(scale)))
        h = np.where(h >= 0, h, INV_LRELU_ALPHA * h)
        for j in range(2):
            fj = f * 2 + j
            if j % 2 != 0:
                h = np.concatenate([h[:, HALF:], h[:, :HALF]], axis=1)
            x1, x2 = h[:, :HALF], h[:, HALF:]
            cin = np.concatenate([x1, emb], axis=1)
            s = mlp(cin, "s", fj, True)
            t = mlp(cin, "t", fj, False)
            x2 = x2 * np.exp(s) + t
            h = np.concatenate([x1, x2], axis=1)
            logdet = logdet + np.sum(s, axis=1)
        h = h[:, idxs[f]]
    return h.reshape(h.shape[0], IN_CHANNELS, 1, 1), logdet


if __name__ == "__main__":
    key = jax.random.PRNGKey(0)
    kx, kc, kp = jax.random.split(key, 3)
    x = jax.random.normal(kx, (BATCH, IN_CHANNELS, 1, 1), jnp.float32)
    cond = jax.random.normal(kc, (BATCH, COND_DIM, 1, 1), jnp.float32)
    raw = init_params(kp)
    packed = pack_params(raw)

    z, logdet = conditional_flat_coupling_flow(x, cond, packed)
    (z, logdet) = jax.block_until_ready((z, logdet))

    z_ref, ld_ref = reference_forward(
        np.asarray(x), np.asarray(cond), {k: np.asarray(v) for k, v in raw.items()})
    np.testing.assert_allclose(np.asarray(z), z_ref, rtol=1e-3, atol=1e-3)
    np.testing.assert_allclose(np.asarray(logdet), ld_ref, rtol=1e-3, atol=1e-3)

    print("KERNEL_OK")
</pallas_src>

<mosaic_0001>
module attributes {stable_mosaic.version = 11 : i64} {
  func.func @_flow_kernel(%arg0: memref<1x1xf32, #tpu.memory_space<smem>>, %arg1: memref<4x128xf32, #tpu.memory_space<vmem>>, %arg2: memref<4x32xf32, #tpu.memory_space<vmem>>, %arg3: memref<3x32x32xf32, #tpu.memory_space<vmem>>, %arg4: memref<32x768xf32, #tpu.memory_space<vmem>>, %arg5: memref<15x128x256xf32, #tpu.memory_space<vmem>>, %arg6: memref<28x768xf32, #tpu.memory_space<vmem>>, %arg7: memref<4x128xf32, #tpu.memory_space<vmem>>, %arg8: memref<4x1xf32, #tpu.memory_space<vmem>>) attributes {dimension_semantics = [], scalar_prefetch = 0 : i64, scratch_operands = 0 : i64, tpu.core_type = #tpu.core_type<tc>} {
    %c0 = arith.constant 0 : index
    %c0_0 = arith.constant 0 : index
    %0 = vector.load %arg1[%c0, %c0_0] : memref<4x128xf32, #tpu.memory_space<vmem>>, vector<4x128xf32>
    %c0_1 = arith.constant 0 : index
    %c0_2 = arith.constant 0 : index
    %1 = vector.load %arg2[%c0_1, %c0_2] : memref<4x32xf32, #tpu.memory_space<vmem>>, vector<4x32xf32>
    %c25 = arith.constant 25 : index
    %c0_3 = arith.constant 0 : index
    %2 = vector.load %arg6[%c25, %c0_3] : memref<28x768xf32, #tpu.memory_space<vmem>>, vector<1x32xf32>
    %c0_4 = arith.constant 0 : index
    %c0_5 = arith.constant 0 : index
    %c0_6 = arith.constant 0 : index
    %3 = vector.load %arg3[%c0_4, %c0_5, %c0_6] : memref<3x32x32xf32, #tpu.memory_space<vmem>>, vector<1x32x32xf32>
    %4 = vector.shape_cast %3 : vector<1x32x32xf32> to vector<32x32xf32>
    %cst = arith.constant dense<0.000000e+00> : vector<4x32xf32>
    %5 = tpu.matmul %1, %4, %cst {dimension_numbers = #tpu.dot_dimension_numbers<[1], [0], [0], [1], [0, 0, 1, 1], [], []>} : vector<4x32xf32>, vector<32x32xf32>, vector<4x32xf32> -> vector<4x32xf32>
    %6 = vector.broadcast %2 : vector<1x32xf32> to vector<4x32xf32>
    %7 = arith.addf %5, %6 : vector<4x32xf32>
    %cst_7 = arith.constant 0.000000e+00 : f32
    %8 = vector.broadcast %cst_7 : f32 to vector<4x32xf32>
    %9 = arith.cmpf oge, %7, %8 : vector<4x32xf32>
    %cst_8 = arith.constant 0.00999999977 : f32
    %10 = vector.broadcast %cst_8 : f32 to vector<4x32xf32>
    %11 = arith.mulf %10, %7 : vector<4x32xf32>
    %12 = arith.select %9, %7, %11 : vector<4x32xi1>, vector<4x32xf32>
    %c26 = arith.constant 26 : index
    %c0_9 = arith.constant 0 : index
    %13 = vector.load %arg6[%c26, %c0_9] : memref<28x768xf32, #tpu.memory_space<vmem>>, vector<1x32xf32>
    %c1 = arith.constant 1 : index
    %c0_10 = arith.constant 0 : index
    %c0_11 = arith.constant 0 : index
    %14 = vector.load %arg3[%c1, %c0_10, %c0_11] : memref<3x32x32xf32, #tpu.memory_space<vmem>>, vector<1x32x32xf32>
    %15 = vector.shape_cast %14 : vector<1x32x32xf32> to vector<32x32xf32>
    %cst_12 = arith.constant dense<0.000000e+00> : vector<4x32xf32>
    %16 = tpu.matmul %12, %15, %cst_12 {dimension_numbers = #tpu.dot_dimension_numbers<[1], [0], [0], [1], [0, 0, 1, 1], [], []>} : vector<4x32xf32>, vector<32x32xf32>, vector<4x32xf32> -> vector<4x32xf32>
    %17 = vector.broadcast %13 : vector<1x32xf32> to vector<4x32xf32>
    %18 = arith.addf %16, %17 : vector<4x32xf32>
    %cst_13 = arith.constant 0.000000e+00 : f32
    %19 = vector.broadcast %cst_13 : f32 to vector<4x32xf32>
    %20 = arith.cmpf oge, %18, %19 : vector<4x32xf32>
    %cst_14 = arith.constant 0.00999999977 : f32
    %21 = vector.broadcast %cst_14 : f32 to vector<4x32xf32>
    %22 = arith.mulf %21, %18 : vector<4x32xf32>
    %23 = arith.select %20, %18, %22 : vector<4x32xi1>, vector<4x32xf32>
    %c27 = arith.constant 27 : index
    %c0_15 = arith.constant 0 : index
    %24 = vector.load %arg6[%c27, %c0_15] : memref<28x768xf32, #tpu.memory_space<vmem>>, vector<1x32xf32>
    %c2 = arith.constant 2 : index
    %c0_16 = arith.constant 0 : index
    %c0_17 = arith.constant 0 : index
    %25 = vector.load %arg3[%c2, %c0_16, %c0_17] : memref<3x32x32xf32, #tpu.memory_space<vmem>>, vector<1x32x32xf32>
    %26 = vector.shape_cast %25 : vector<1x32x32xf32> to vector<32x32xf32>
    %cst_18 = arith.constant dense<0.000000e+00> : vector<4x32xf32>
    %27 = tpu.matmul %23, %26, %cst_18 {dimension_numbers = #tpu.dot_dimension_numbers<[1], [0], [0], [1], [0, 0, 1, 1], [], []>} : vector<4x32xf32>, vector<32x32xf32>, vector<4x32xf32> -> vector<4x32xf32>
    %28 = vector.broadcast %24 : vector<1x32xf32> to vector<4x32xf32>
    %29 = arith.addf %27, %28 : vector<4x32xf32>
    %cst_19 = arith.constant 0.000000e+00 : f32
    %30 = vector.broadcast %cst_19 : f32 to vector<4x32xf32>
    %31 = arith.cmpf oge, %29, %30 : vector<4x32xf32>
    %cst_20 = arith.constant 0.00999999977 : f32
    %32 = vector.broadcast %cst_20 : f32 to vector<4x32xf32>
    %33 = arith.mulf %32, %29 : vector<4x32xf32>
    %34 = arith.select %31, %29, %33 : vector<4x32xi1>, vector<4x32xf32>
    %c0_21 = arith.constant 0 : index
    %c0_22 = arith.constant 0 : index
    %35 = vector.load %arg4[%c0_21, %c0_22] : memref<32x768xf32, #tpu.memory_space<vmem>>, vector<32x768xf32>
    %cst_23 = arith.constant dense<0.000000e+00> : vector<4x768xf32>
    %36 = tpu.matmul %34, %35, %cst_23 {dimension_numbers = #tpu.dot_dimension_numbers<[1], [0], [0], [1], [0, 0, 1, 1], [], []>} : vector<4x32xf32>, vector<32x768xf32>, vector<4x768xf32> -> vector<4x768xf32>
    %c0_24 = arith.constant 0 : index
    %c0_25 = arith.constant 0 : index
    %37 = vector.load %arg6[%c0_24, %c0_25] : memref<28x768xf32, #tpu.memory_space<vmem>>, vector<1x768xf32>
    %38 = vector.broadcast %37 : vector<1x768xf32> to vector<4x768xf32>
    %39 = arith.addf %36, %38 : vector<4x768xf32>
    %cst_26 = arith.constant 0.000000e+00 : f32
    %40 = vector.broadcast %cst_26 : f32 to vector<4x128xf32>
    %c19 = arith.constant 19 : index
    %c0_27 = arith.constant 0 : index
    %41 = vector.load %arg6[%c19, %c0_27] : memref<28x768xf32, #tpu.memory_space<vmem>>, vector<1x128xf32>
    %c22 = arith.constant 22 : index
    %c0_28 = arith.constant 0 : index
    %42 = vector.load %arg6[%c22, %c0_28] : memref<28x768xf32, #tpu.memory_space<vmem>>, vector<1x128xf32>
    %43 = vector.broadcast %41 : vector<1x128xf32> to vector<4x128xf32>
    %44 = arith.mulf %43, %0 : vector<4x128xf32>
    %45 = vector.broadcast %42 : vector<1x128xf32> to vector<4x128xf32>
    %46 = arith.addf %44, %45 : vector<4x128xf32>
    %cst_29 = arith.constant 0.000000e+00 : f32
    %47 = vector.broadcast %cst_29 : f32 to vector<4x128xf32>
    %48 = arith.cmpf oge, %46, %47 : vector<4x128xf32>
    %cst_30 = arith.constant 0.899999976 : f32
    %49 = vector.broadcast %cst_30 : f32 to vector<4x128xf32>
    %50 = arith.mulf %49, %46 : vector<4x128xf32>
    %51 = arith.select %48, %46, %50 : vector<4x128xi1>, vector<4x128xf32>
    %c6 = arith.constant 6 : index
    %c0_31 = arith.constant 0 : index
    %c0_32 = arith.constant 0 : index
    %52 = vector.load %arg5[%c6, %c0_31, %c0_32] : memref<15x128x256xf32, #tpu.memory_space<vmem>>, vector<1x128x128xf32>
    %53 = vector.shape_cast %52 : vector<1x128x128xf32> to vector<128x128xf32>
    %cst_33 = arith.constant dense<0.000000e+00> : vector<4x128xf32>
    %54 = tpu.matmul %51, %53, %cst_33 {dimension_numbers = #tpu.dot_dimension_numbers<[1], [0], [0], [1], [0, 0, 1, 1], [], []>} : vector<4x128xf32>, vector<128x128xf32>, vector<4x128xf32> -> vector<4x128xf32>
    %55 = vector.extract_strided_slice %39 {offsets = [0, 0], sizes = [4, 128], strides = [1, 1]} : vector<4x768xf32> to vector<4x128xf32>
    %56 = arith.addf %54, %55 : vector<4x128xf32>
    %cst_34 = arith.constant 0.000000e+00 : f32
    %57 = vector.broadcast %cst_34 : f32 to vector<4x128xf32>
    %58 = arith.cmpf oge, %56, %57 : vector<4x128xf32>
    %cst_35 = arith.constant 0.00999999977 : f32
    %59 = vector.broadcast %cst_35 : f32 to vector<4x128xf32>
    %60 = arith.mulf %59, %56 : vector<4x128xf32>
    %61 = arith.select %58, %56, %60 : vector<4x128xi1>, vector<4x128xf32>
    %c6_36 = arith.constant 6 : index
    %c0_37 = arith.constant 0 : index
    %c128 = arith.constant 128 : index
    %62 = vector.load %arg5[%c6_36, %c0_37, %c128] : memref<15x128x256xf32, #tpu.memory_space<vmem>>, vector<1x128x128xf32>
    %63 = vector.shape_cast %62 : vector<1x128x128xf32> to vector<128x128xf32>
    %c1_38 = arith.constant 1 : index
    %c0_39 = arith.constant 0 : index
    %64 = vector.load %arg6[%c1_38, %c0_39] : memref<28x768xf32, #tpu.memory_space<vmem>>, vector<1x128xf32>
    %cst_40 = arith.constant dense<0.000000e+00> : vector<4x128xf32>
    %65 = tpu.matmul %61, %63, %cst_40 {dimension_numbers = #tpu.dot_dimension_numbers<[1], [0], [0], [1], [0, 0, 1, 1], [], []>} : vector<4x128xf32>, vector<128x128xf32>, vector<4x128xf32> -> vector<4x128xf32>
    %66 = vector.broadcast %64 : vector<1x128xf32> to vector<4x128xf32>
    %67 = arith.addf %65, %66 : vector<4x128xf32>
    %cst_41 = arith.constant 0.000000e+00 : f32
    %68 = vector.broadcast %cst_41 : f32 to vector<4x128xf32>
    %69 = arith.cmpf oge, %67, %68 : vector<4x128xf32>
    %cst_42 = arith.constant 0.00999999977 : f32
    %70 = vector.broadcast %cst_42 : f32 to vector<4x128xf32>
    %71 = arith.mulf %70, %67 : vector<4x128xf32>
    %72 = arith.select %69, %67, %71 : vector<4x128xi1>, vector<4x128xf32>
    %c7 = arith.constant 7 : index
    %c0_43 = arith.constant 0 : index
    %c0_44 = arith.constant 0 : index
    %73 = vector.load %arg5[%c7, %c0_43, %c0_44] : memref<15x128x256xf32, #tpu.memory_space<vmem>>, vector<1x128x128xf32>
    %74 = vector.shape_cast %73 : vector<1x128x128xf32> to vector<128x128xf32>
    %c2_45 = arith.constant 2 : index
    %c0_46 = arith.constant 0 : index
    %75 = vector.load %arg6[%c2_45, %c0_46] : memref<28x768xf32, #tpu.memory_space<vmem>>, vector<1x128xf32>
    %cst_47 = arith.constant dense<0.000000e+00> : vector<4x128xf32>
    %76 = tpu.matmul %72, %74, %cst_47 {dimension_numbers = #tpu.dot_dimension_numbers<[1], [0], [0], [1], [0, 0, 1, 1], [], []>} : vector<4x128xf32>, vector<128x128xf32>, vector<4x128xf32> -> vector<4x128xf32>
    %77 = vector.broadcast %75 : vector<1x128xf32> to vector<4x128xf32>
    %78 = arith.addf %76, %77 : vector<4x128xf32>
    %cst_48 = arith.constant 0.000000e+00 : f32
    %79 = vector.broadcast %cst_48 : f32 to vector<4x128xf32>
    %80 = arith.cmpf oge, %78, %79 : vector<4x128xf32>
    %cst_49 = arith.constant 0.00999999977 : f32
    %81 = vector.broadcast %cst_49 : f32 to vector<4x128xf32>
    %82 = arith.mulf %81, %78 : vector<4x128xf32>
    %83 = arith.select %80, %78, %82 : vector<4x128xi1>, vector<4x128xf32>
    %c0_50 = arith.constant 0 : index
    %c0_51 = arith.constant 0 : index
    %c0_52 = arith.constant 0 : index
    %84 = vector.load %arg5[%c0_50, %c0_51, %c0_52] : memref<15x128x256xf32, #tpu.memory_space<vmem>>, vector<1x128x256xf32>
    %85 = vector.shape_cast %84 : vector<1x128x256xf32> to vector<128x256xf32>
    %cst_53 = arith.constant dense<0.000000e+00> : vector<4x256xf32>
    %86 = tpu.matmul %83, %85, %cst_53 {dimension_numbers = #tpu.dot_dimension_numbers<[1], [0], [0], [1], [0, 0, 1, 1], [], []>} : vector<4x128xf32>, vector<128x256xf32>, vector<4x256xf32> -> vector<4x256xf32>
    %c13 = arith.constant 13 : index
    %c0_54 = arith.constant 0 : index
    %87 = vector.load %arg6[%c13, %c0_54] : memref<28x768xf32, #tpu.memory_space<vmem>>, vector<1x256xf32>
    %88 = vector.broadcast %87 : vector<1x256xf32> to vector<4x256xf32>
    %89 = arith.addf %86, %88 : vector<4x256xf32>
    %90 = vector.extract_strided_slice %89 {offsets = [0, 0], sizes = [4, 128], strides = [1, 1]} : vector<4x256xf32> to vector<4x128xf32>
    %91 = math.tanh %90 : vector<4x128xf32>
    %92 = vector.extract_strided_slice %89 {offsets = [0, 128], sizes = [4, 128], strides = [1, 1]} : vector<4x256xf32> to vector<4x128xf32>
    %93 = math.exp %91 : vector<4x128xf32>
    %94 = arith.mulf %51, %93 : vector<4x128xf32>
    %95 = arith.addf %94, %92 : vector<4x128xf32>
    %96 = arith.addf %40, %91 : vector<4x128xf32>
    %c7_55 = arith.constant 7 : index
    %c0_56 = arith.constant 0 : index
    %c128_57 = arith.constant 128 : index
    %97 = vector.load %arg5[%c7_55, %c0_56, %c128_57] : memref<15x128x256xf32, #tpu.memory_space<vmem>>, vector<1x128x128xf32>
    %98 = vector.shape_cast %97 : vector<1x128x128xf32> to vector<128x128xf32>
    %cst_58 = arith.constant dense<0.000000e+00> : vector<4x128xf32>
    %99 = tpu.matmul %95, %98, %cst_58 {dimension_numbers = #tpu.dot_dimension_numbers<[1], [0], [0], [1], [0, 0, 1, 1], [], []>} : vector<4x128xf32>, vector<128x128xf32>, vector<4x128xf32> -> vector<4x128xf32>
    %100 = vector.extract_strided_slice %39 {offsets = [0, 128], sizes = [4, 128], strides = [1, 1]} : vector<4x768xf32> to vector<4x128xf32>
    %101 = arith.addf %99, %100 : vector<4x128xf32>
    %cst_59 = arith.constant 0.000000e+00 : f32
    %102 = vector.broadcast %cst_59 : f32 to vector<4x128xf32>
    %103 = arith.cmpf oge, %101, %102 : vector<4x128xf32>
    %cst_60 = arith.constant 0.00999999977 : f32
    %104 = vector.broadcast %cst_60 : f32 to vector<4x128xf32>
    %105 = arith.mulf %104, %101 : vector<4x128xf32>
    %106 = arith.select %103, %101, %105 : vector<4x128xi1>, vector<4x128xf32>
    %c8 = arith.constant 8 : index
    %c0_61 = arith.constant 0 : index
    %c0_62 = arith.constant 0 : index
    %107 = vector.load %arg5[%c8, %c0_61, %c0_62] : memref<15x128x256xf32, #tpu.memory_space<vmem>>, vector<1x128x128xf32>
    %108 = vector.shape_cast %107 : vector<1x128x128xf32> to vector<128x128xf32>
    %c3 = arith.constant 3 : index
    %c0_63 = arith.constant 0 : index
    %109 = vector.load %arg6[%c3, %c0_63] : memref<28x768xf32, #tpu.memory_space<vmem>>, vector<1x128xf32>
    %cst_64 = arith.constant dense<0.000000e+00> : vector<4x128xf32>
    %110 = tpu.matmul %106, %108, %cst_64 {dimension_numbers = #tpu.dot_dimension_numbers<[1], [0], [0], [1], [0, 0, 1, 1], [], []>} : vector<4x128xf32>, vector<128x128xf32>, vector<4x128xf32> -> vector<4x128xf32>
    %111 = vector.broadcast %109 : vector<1x128xf32> to vector<4x128xf32>
    %112 = arith.addf %110, %111 : vector<4x128xf32>
    %cst_65 = arith.constant 0.000000e+00 : f32
    %113 = vector.broadcast %cst_65 : f32 to vector<4x128xf32>
    %114 = arith.cmpf oge, %112, %113 : vector<4x128xf32>
    %cst_66 = arith.constant 0.00999999977 : f32
    %115 = vector.broadcast %cst_66 : f32 to vector<4x128xf32>
    %116 = arith.mulf %115, %112 : vector<4x128xf32>
    %117 = arith.select %114, %112, %116 : vector<4x128xi1>, vector<4x128xf32>
    %c8_67 = arith.constant 8 : index
    %c0_68 = arith.constant 0 : index
    %c128_69 = arith.constant 128 : index
    %118 = vector.load %arg5[%c8_67, %c0_68, %c128_69] : memref<15x128x256xf32, #tpu.memory_space<vmem>>, vector<1x128x128xf32>
    %119 = vector.shape_cast %118 : vector<1x128x128xf32> to vector<128x128xf32>
    %c4 = arith.constant 4 : index
    %c0_70 = arith.constant 0 : index
    %120 = vector.load %arg6[%c4, %c0_70] : memref<28x768xf32, #tpu.memory_space<vmem>>, vector<1x128xf32>
    %cst_71 = arith.constant dense<0.000000e+00> : vector<4x128xf32>
    %121 = tpu.matmul %117, %119, %cst_71 {dimension_numbers = #tpu.dot_dimension_numbers<[1], [0], [0], [1], [0, 0, 1, 1], [], []>} : vector<4x128xf32>, vector<128x128xf32>, vector<4x128xf32> -> vector<4x128xf32>
    %122 = vector.broadcast %120 : vector<1x128xf32> to vector<4x128xf32>
    %123 = arith.addf %121, %122 : vector<4x128xf32>
    %cst_72 = arith.constant 0.000000e+00 : f32
    %124 = vector.broadcast %cst_72 : f32 to vector<4x128xf32>
    %125 = arith.cmpf oge, %123, %124 : vector<4x128xf32>
    %cst_73 = arith.constant 0.00999999977 : f32
    %126 = vector.broadcast %cst_73 : f32 to vector<4x128xf32>
    %127 = arith.mulf %126, %123 : vector<4x128xf32>
    %128 = arith.select %125, %123, %127 : vector<4x128xi1>, vector<4x128xf32>
    %c1_74 = arith.constant 1 : index
    %c0_75 = arith.constant 0 : index
    %c0_76 = arith.constant 0 : index
    %129 = vector.load %arg5[%c1_74, %c0_75, %c0_76] : memref<15x128x256xf32, #tpu.memory_space<vmem>>, vector<1x128x256xf32>
    %130 = vector.shape_cast %129 : vector<1x128x256xf32> to vector<128x256xf32>
    %cst_77 = arith.constant dense<0.000000e+00> : vector<4x256xf32>
    %131 = tpu.matmul %128, %130, %cst_77 {dimension_numbers = #tpu.dot_dimension_numbers<[1], [0], [0], [1], [0, 0, 1, 1], [], []>} : vector<4x128xf32>, vector<128x256xf32>, vector<4x256xf32> -> vector<4x256xf32>
    %c14 = arith.constant 14 : index
    %c0_78 = arith.constant 0 : index
    %132 = vector.load %arg6[%c14, %c0_78] : memref<28x768xf32, #tpu.memory_space<vmem>>, vector<1x256xf32>
    %133 = vector.broadcast %132 : vector<1x256xf32> to vector<4x256xf32>
    %134 = arith.addf %131, %133 : vector<4x256xf32>
    %135 = vector.extract_strided_slice %134 {offsets = [0, 0], sizes = [4, 128], strides = [1, 1]} : vector<4x256xf32> to vector<4x128xf32>
    %136 = math.tanh %135 : vector<4x128xf32>
    %137 = vector.extract_strided_slice %134 {offsets = [0, 128], sizes = [4, 128], strides = [1, 1]} : vector<4x256xf32> to vector<4x128xf32>
    %138 = math.exp %136 : vector<4x128xf32>
    %139 = arith.mulf %95, %138 : vector<4x128xf32>
    %140 = arith.addf %139, %137 : vector<4x128xf32>
    %141 = arith.addf %96, %136 : vector<4x128xf32>
    %c20 = arith.constant 20 : index
    %c0_79 = arith.constant 0 : index
    %142 = vector.load %arg6[%c20, %c0_79] : memref<28x768xf32, #tpu.memory_space<vmem>>, vector<1x128xf32>
    %c23 = arith.constant 23 : index
    %c0_80 = arith.constant 0 : index
    %143 = vector.load %arg6[%c23, %c0_80] : memref<28x768xf32, #tpu.memory_space<vmem>>, vector<1x128xf32>
    %144 = vector.broadcast %142 : vector<1x128xf32> to vector<4x128xf32>
    %145 = arith.mulf %144, %140 : vector<4x128xf32>
    %146 = vector.broadcast %143 : vector<1x128xf32> to vector<4x128xf32>
    %147 = arith.addf %145, %146 : vector<4x128xf32>
    %cst_81 = arith.constant 0.000000e+00 : f32
    %148 = vector.broadcast %cst_81 : f32 to vector<4x128xf32>
    %149 = arith.cmpf oge, %147, %148 : vector<4x128xf32>
    %cst_82 = arith.constant 0.899999976 : f32
    %150 = vector.broadcast %cst_82 : f32 to vector<4x128xf32>
    %151 = arith.mulf %150, %147 : vector<4x128xf32>
    %152 = arith.select %149, %147, %151 : vector<4x128xi1>, vector<4x128xf32>
    %c9 = arith.constant 9 : index
    %c0_83 = arith.constant 0 : index
    %c0_84 = arith.constant 0 : index
    %153 = vector.load %arg5[%c9, %c0_83, %c0_84] : memref<15x128x256xf32, #tpu.memory_space<vmem>>, vector<1x128x128xf32>
    %154 = vector.shape_cast %153 : vector<1x128x128xf32> to vector<128x128xf32>
    %cst_85 = arith.constant dense<0.000000e+00> : vector<4x128xf32>
    %155 = tpu.matmul %152, %154, %cst_85 {dimension_numbers = #tpu.dot_dimension_numbers<[1], [0], [0], [1], [0, 0, 1, 1], [], []>} : vector<4x128xf32>, vector<128x128xf32>, vector<4x128xf32> -> vector<4x128xf32>
    %156 = vector.extract_strided_slice %39 {offsets = [0, 256], sizes = [4, 128], strides = [1, 1]} : vector<4x768xf32> to vector<4x128xf32>
    %157 = arith.addf %155, %156 : vector<4x128xf32>
    %cst_86 = arith.constant 0.000000e+00 : f32
    %158 = vector.broadcast %cst_86 : f32 to vector<4x128xf32>
    %159 = arith.cmpf oge, %157, %158 : vector<4x128xf32>
    %cst_87 = arith.constant 0.00999999977 : f32
    %160 = vector.broadcast %cst_87 : f32 to vector<4x128xf32>
    %161 = arith.mulf %160, %157 : vector<4x128xf32>
    %162 = arith.select %159, %157, %161 : vector<4x128xi1>, vector<4x128xf32>
    %c9_88 = arith.constant 9 : index
    %c0_89 = arith.constant 0 : index
    %c128_90 = arith.constant 128 : index
    %163 = vector.load %arg5[%c9_88, %c0_89, %c128_90] : memref<15x128x256xf32, #tpu.memory_space<vmem>>, vector<1x128x128xf32>
    %164 = vector.shape_cast %163 : vector<1x128x128xf32> to vector<128x128xf32>
    %c5 = arith.constant 5 : index
    %c0_91 = arith.constant 0 : index
    %165 = vector.load %arg6[%c5, %c0_91] : memref<28x768xf32, #tpu.memory_space<vmem>>, vector<1x128xf32>
    %cst_92 = arith.constant dense<0.000000e+00> : vector<4x128xf32>
    %166 = tpu.matmul %162, %164, %cst_92 {dimension_numbers = #tpu.dot_dimension_numbers<[1], [0], [0], [1], [0, 0, 1, 1], [], []>} : vector<4x128xf32>, vector<128x128xf32>, vector<4x128xf32> -> vector<4x128xf32>
    %167 = vector.broadcast %165 : vector<1x128xf32> to vector<4x128xf32>
    %168 = arith.addf %166, %167 : vector<4x128xf32>
    %cst_93 = arith.constant 0.000000e+00 : f32
    %169 = vector.broadcast %cst_93 : f32 to vector<4x128xf32>
    %170 = arith.cmpf oge, %168, %169 : vector<4x128xf32>
    %cst_94 = arith.constant 0.00999999977 : f32
    %171 = vector.broadcast %cst_94 : f32 to vector<4x128xf32>
    %172 = arith.mulf %171, %168 : vector<4x128xf32>
    %173 = arith.select %170, %168, %172 : vector<4x128xi1>, vector<4x128xf32>
    %c10 = arith.constant 10 : index
    %c0_95 = arith.constant 0 : index
    %c0_96 = arith.constant 0 : index
    %174 = vector.load %arg5[%c10, %c0_95, %c0_96] : memref<15x128x256xf32, #tpu.memory_space<vmem>>, vector<1x128x128xf32>
    %175 = vector.shape_cast %174 : vector<1x128x128xf32> to vector<128x128xf32>
    %c6_97 = arith.constant 6 : index
    %c0_98 = arith.constant 0 : index
    %176 = vector.load %arg6[%c6_97, %c0_98] : memref<28x768xf32, #tpu.memory_space<vmem>>, vector<1x128xf32>
    %cst_99 = arith.constant dense<0.000000e+00> : vector<4x128xf32>
    %177 = tpu.matmul %173, %175, %cst_99 {dimension_numbers = #tpu.dot_dimension_numbers<[1], [0], [0], [1], [0, 0, 1, 1], [], []>} : vector<4x128xf32>, vector<128x128xf32>, vector<4x128xf32> -> vector<4x128xf32>
    %178 = vector.broadcast %176 : vector<1x128xf32> to vector<4x128xf32>
    %179 = arith.addf %177, %178 : vector<4x128xf32>
    %cst_100 = arith.constant 0.000000e+00 : f32
    %180 = vector.broadcast %cst_100 : f32 to vector<4x128xf32>
    %181 = arith.cmpf oge, %179, %180 : vector<4x128xf32>
    %cst_101 = arith.constant 0.00999999977 : f32
    %182 = vector.broadcast %cst_101 : f32 to vector<4x128xf32>
    %183 = arith.mulf %182, %179 : vector<4x128xf32>
    %184 = arith.select %181, %179, %183 : vector<4x128xi1>, vector<4x128xf32>
    %c2_102 = arith.constant 2 : index
    %c0_103 = arith.constant 0 : index
    %c0_104 = arith.constant 0 : index
    %185 = vector.load %arg5[%c2_102, %c0_103, %c0_104] : memref<15x128x256xf32, #tpu.memory_space<vmem>>, vector<1x128x256xf32>
    %186 = vector.shape_cast %185 : vector<1x128x256xf32> to vector<128x256xf32>
    %cst_105 = arith.constant dense<0.000000e+00> : vector<4x256xf32>
    %187 = tpu.matmul %184, %186, %cst_105 {dimension_numbers = #tpu.dot_dimension_numbers<[1], [0], [0], [1], [0, 0, 1, 1], [], []>} : vector<4x128xf32>, vector<128x256xf32>, vector<4x256xf32> -> vector<4x256xf32>
    %c15 = arith.constant 15 : index
    %c0_106 = arith.constant 0 : index
    %188 = vector.load %arg6[%c15, %c0_106] : memref<28x768xf32, #tpu.memory_space<vmem>>, vector<1x256xf32>
    %189 = vector.broadcast %188 : vector<1x256xf32> to vector<4x256xf32>
    %190 = arith.addf %187, %189 : vector<4x256xf32>
    %191 = vector.extract_strided_slice %190 {offsets = [0, 0], sizes = [4, 128], strides = [1, 1]} : vector<4x256xf32> to vector<4x128xf32>
    %192 = math.tanh %191 : vector<4x128xf32>
    %193 = vector.extract_strided_slice %190 {offsets = [0, 128], sizes = [4, 128], strides = [1, 1]} : vector<4x256xf32> to vector<4x128xf32>
    %194 = math.exp %192 : vector<4x128xf32>
    %195 = arith.mulf %152, %194 : vector<4x128xf32>
    %196 = arith.addf %195, %193 : vector<4x128xf32>
    %197 = arith.addf %141, %192 : vector<4x128xf32>
    %c10_107 = arith.constant 10 : index
    %c0_108 = arith.constant 0 : index
    %c128_109 = arith.constant 128 : index
    %198 = vector.load %arg5[%c10_107, %c0_108, %c128_109] : memref<15x128x256xf32, #tpu.memory_space<vmem>>, vector<1x128x128xf32>
    %199 = vector.shape_cast %198 : vector<1x128x128xf32> to vector<128x128xf32>
    %cst_110 = arith.constant dense<0.000000e+00> : vector<4x128xf32>
    %200 = tpu.matmul %196, %199, %cst_110 {dimension_numbers = #tpu.dot_dimension_numbers<[1], [0], [0], [1], [0, 0, 1, 1], [], []>} : vector<4x128xf32>, vector<128x128xf32>, vector<4x128xf32> -> vector<4x128xf32>
    %201 = vector.extract_strided_slice %39 {offsets = [0, 384], sizes = [4, 128], strides = [1, 1]} : vector<4x768xf32> to vector<4x128xf32>
    %202 = arith.addf %200, %201 : vector<4x128xf32>
    %cst_111 = arith.constant 0.000000e+00 : f32
    %203 = vector.broadcast %cst_111 : f32 to vector<4x128xf32>
    %204 = arith.cmpf oge, %202, %203 : vector<4x128xf32>
    %cst_112 = arith.constant 0.00999999977 : f32
    %205 = vector.broadcast %cst_112 : f32 to vector<4x128xf32>
    %206 = arith.mulf %205, %202 : vector<4x128xf32>
    %207 = arith.select %204, %202, %206 : vector<4x128xi1>, vector<4x128xf32>
    %c11 = arith.constant 11 : index
    %c0_113 = arith.constant 0 : index
    %c0_114 = arith.constant 0 : index
    %208 = vector.load %arg5[%c11, %c0_113, %c0_114] : memref<15x128x256xf32, #tpu.memory_space<vmem>>, vector<1x128x128xf32>
    %209 = vector.shape_cast %208 : vector<1x128x128xf32> to vector<128x128xf32>
    %c7_115 = arith.constant 7 : index
    %c0_116 = arith.constant 0 : index
    %210 = vector.load %arg6[%c7_115, %c0_116] : memref<28x768xf32, #tpu.memory_space<vmem>>, vector<1x128xf32>
    %cst_117 = arith.constant dense<0.000000e+00> : vector<4x128xf32>
    %211 = tpu.matmul %207, %209, %cst_117 {dimension_numbers = #tpu.dot_dimension_numbers<[1], [0], [0], [1], [0, 0, 1, 1], [], []>} : vector<4x128xf32>, vector<128x128xf32>, vector<4x128xf32> -> vector<4x128xf32>
    %212 = vector.broadcast %210 : vector<1x128xf32> to vector<4x128xf32>
    %213 = arith.addf %211, %212 : vector<4x128xf32>
    %cst_118 = arith.constant 0.000000e+00 : f32
    %214 = vector.broadcast %cst_118 : f32 to vector<4x128xf32>
    %215 = arith.cmpf oge, %213, %214 : vector<4x128xf32>
    %cst_119 = arith.constant 0.00999999977 : f32
    %216 = vector.broadcast %cst_119 : f32 to vector<4x128xf32>
    %217 = arith.mulf %216, %213 : vector<4x128xf32>
    %218 = arith.select %215, %213, %217 : vector<4x128xi1>, vector<4x128xf32>
    %c11_120 = arith.constant 11 : index
    %c0_121 = arith.constant 0 : index
    %c128_122 = arith.constant 128 : index
    %219 = vector.load %arg5[%c11_120, %c0_121, %c128_122] : memref<15x128x256xf32, #tpu.memory_space<vmem>>, vector<1x128x128xf32>
    %220 = vector.shape_cast %219 : vector<1x128x128xf32> to vector<128x128xf32>
    %c8_123 = arith.constant 8 : index
    %c0_124 = arith.constant 0 : index
    %221 = vector.load %arg6[%c8_123, %c0_124] : memref<28x768xf32, #tpu.memory_space<vmem>>, vector<1x128xf32>
    %cst_125 = arith.constant dense<0.000000e+00> : vector<4x128xf32>
    %222 = tpu.matmul %218, %220, %cst_125 {dimension_numbers = #tpu.dot_dimension_numbers<[1], [0], [0], [1], [0, 0, 1, 1], [], []>} : vector<4x128xf32>, vector<128x128xf32>, vector<4x128xf32> -> vector<4x128xf32>
    %223 = vector.broadcast %221 : vector<1x128xf32> to vector<4x128xf32>
    %224 = arith.addf %222, %223 : vector<4x128xf32>
    %cst_126 = arith.constant 0.000000e+00 : f32
    %225 = vector.broadcast %cst_126 : f32 to vector<4x128xf32>
    %226 = arith.cmpf oge, %224, %225 : vector<4x128xf32>
    %cst_127 = arith.constant 0.00999999977 : f32
    %227 = vector.broadcast %cst_127 : f32 to vector<4x128xf32>
    %228 = arith.mulf %227, %224 : vector<4x128xf32>
    %229 = arith.select %226, %224, %228 : vector<4x128xi1>, vector<4x128xf32>
    %c3_128 = arith.constant 3 : index
    %c0_129 = arith.constant 0 : index
    %c0_130 = arith.constant 0 : index
    %230 = vector.load %arg5[%c3_128, %c0_129, %c0_130] : memref<15x128x256xf32, #tpu.memory_space<vmem>>, vector<1x128x256xf32>
    %231 = vector.shape_cast %230 : vector<1x128x256xf32> to vector<128x256xf32>
    %cst_131 = arith.constant dense<0.000000e+00> : vector<4x256xf32>
    %232 = tpu.matmul %229, %231, %cst_131 {dimension_numbers = #tpu.dot_dimension_numbers<[1], [0], [0], [1], [0, 0, 1, 1], [], []>} : vector<4x128xf32>, vector<128x256xf32>, vector<4x256xf32> -> vector<4x256xf32>
    %c16 = arith.constant 16 : index
    %c0_132 = arith.constant 0 : index
    %233 = vector.load %arg6[%c16, %c0_132] : memref<28x768xf32, #tpu.memory_space<vmem>>, vector<1x256xf32>
    %234 = vector.broadcast %233 : vector<1x256xf32> to vector<4x256xf32>
    %235 = arith.addf %232, %234 : vector<4x256xf32>
    %236 = vector.extract_strided_slice %235 {offsets = [0, 0], sizes = [4, 128], strides = [1, 1]} : vector<4x256xf32> to vector<4x128xf32>
    %237 = math.tanh %236 : vector<4x128xf32>
    %238 = vector.extract_strided_slice %235 {offsets = [0, 128], sizes = [4, 128], strides = [1, 1]} : vector<4x256xf32> to vector<4x128xf32>
    %239 = math.exp %237 : vector<4x128xf32>
    %240 = arith.mulf %196, %239 : vector<4x128xf32>
    %241 = arith.addf %240, %238 : vector<4x128xf32>
    %242 = arith.addf %197, %237 : vector<4x128xf32>
    %c21 = arith.constant 21 : index
    %c0_133 = arith.constant 0 : index
    %243 = vector.load %arg6[%c21, %c0_133] : memref<28x768xf32, #tpu.memory_space<vmem>>, vector<1x128xf32>
    %c24 = arith.constant 24 : index
    %c0_134 = arith.constant 0 : index
    %244 = vector.load %arg6[%c24, %c0_134] : memref<28x768xf32, #tpu.memory_space<vmem>>, vector<1x128xf32>
    %245 = vector.broadcast %243 : vector<1x128xf32> to vector<4x128xf32>
    %246 = arith.mulf %245, %241 : vector<4x128xf32>
    %247 = vector.broadcast %244 : vector<1x128xf32> to vector<4x128xf32>
    %248 = arith.addf %246, %247 : vector<4x128xf32>
    %cst_135 = arith.constant 0.000000e+00 : f32
    %249 = vector.broadcast %cst_135 : f32 to vector<4x128xf32>
    %250 = arith.cmpf oge, %248, %249 : vector<4x128xf32>
    %cst_136 = arith.constant 0.899999976 : f32
    %251 = vector.broadcast %cst_136 : f32 to vector<4x128xf32>
    %252 = arith.mulf %251, %248 : vector<4x128xf32>
    %253 = arith.select %250, %248, %252 : vector<4x128xi1>, vector<4x128xf32>
    %c12 = arith.constant 12 : index
    %c0_137 = arith.constant 0 : index
    %c0_138 = arith.constant 0 : index
    %254 = vector.load %arg5[%c12, %c0_137, %c0_138] : memref<15x128x256xf32, #tpu.memory_space<vmem>>, vector<1x128x128xf32>
    %255 = vector.shape_cast %254 : vector<1x128x128xf32> to vector<128x128xf32>
    %cst_139 = arith.constant dense<0.000000e+00> : vector<4x128xf32>
    %256 = tpu.matmul %253, %255, %cst_139 {dimension_numbers = #tpu.dot_dimension_numbers<[1], [0], [0], [1], [0, 0, 1, 1], [], []>} : vector<4x128xf32>, vector<128x128xf32>, vector<4x128xf32> -> vector<4x128xf32>
    %257 = vector.extract_strided_slice %39 {offsets = [0, 512], sizes = [4, 128], strides = [1, 1]} : vector<4x768xf32> to vector<4x128xf32>
    %258 = arith.addf %256, %257 : vector<4x128xf32>
    %cst_140 = arith.constant 0.000000e+00 : f32
    %259 = vector.broadcast %cst_140 : f32 to vector<4x128xf32>
    %260 = arith.cmpf oge, %258, %259 : vector<4x128xf32>
    %cst_141 = arith.constant 0.00999999977 : f32
    %261 = vector.broadcast %cst_141 : f32 to vector<4x128xf32>
    %262 = arith.mulf %261, %258 : vector<4x128xf32>
    %263 = arith.select %260, %258, %262 : vector<4x128xi1>, vector<4x128xf32>
    %c12_142 = arith.constant 12 : index
    %c0_143 = arith.constant 0 : index
    %c128_144 = arith.constant 128 : index
    %264 = vector.load %arg5[%c12_142, %c0_143, %c128_144] : memref<15x128x256xf32, #tpu.memory_space<vmem>>, vector<1x128x128xf32>
    %265 = vector.shape_cast %264 : vector<1x128x128xf32> to vector<128x128xf32>
    %c9_145 = arith.constant 9 : index
    %c0_146 = arith.constant 0 : index
    %266 = vector.load %arg6[%c9_145, %c0_146] : memref<28x768xf32, #tpu.memory_space<vmem>>, vector<1x128xf32>
    %cst_147 = arith.constant dense<0.000000e+00> : vector<4x128xf32>
    %267 = tpu.matmul %263, %265, %cst_147 {dimension_numbers = #tpu.dot_dimension_numbers<[1], [0], [0], [1], [0, 0, 1, 1], [], []>} : vector<4x128xf32>, vector<128x128xf32>, vector<4x128xf32> -> vector<4x128xf32>
    %268 = vector.broadcast %266 : vector<1x128xf32> to vector<4x128xf32>
    %269 = arith.addf %267, %268 : vector<4x128xf32>
    %cst_148 = arith.constant 0.000000e+00 : f32
    %270 = vector.broadcast %cst_148 : f32 to vector<4x128xf32>
    %271 = arith.cmpf oge, %269, %270 : vector<4x128xf32>
    %cst_149 = arith.constant 0.00999999977 : f32
    %272 = vector.broadcast %cst_149 : f32 to vector<4x128xf32>
    %273 = arith.mulf %272, %269 : vector<4x128xf32>
    %274 = arith.select %271, %269, %273 : vector<4x128xi1>, vector<4x128xf32>
    %c13_150 = arith.constant 13 : index
    %c0_151 = arith.constant 0 : index
    %c0_152 = arith.constant 0 : index
    %275 = vector.load %arg5[%c13_150, %c0_151, %c0_152] : memref<15x128x256xf32, #tpu.memory_space<vmem>>, vector<1x128x128xf32>
    %276 = vector.shape_cast %275 : vector<1x128x128xf32> to vector<128x128xf32>
    %c10_153 = arith.constant 10 : index
    %c0_154 = arith.constant 0 : index
    %277 = vector.load %arg6[%c10_153, %c0_154] : memref<28x768xf32, #tpu.memory_space<vmem>>, vector<1x128xf32>
    %cst_155 = arith.constant dense<0.000000e+00> : vector<4x128xf32>
    %278 = tpu.matmul %274, %276, %cst_155 {dimension_numbers = #tpu.dot_dimension_numbers<[1], [0], [0], [1], [0, 0, 1, 1], [], []>} : vector<4x128xf32>, vector<128x128xf32>, vector<4x128xf32> -> vector<4x128xf32>
    %279 = vector.broadcast %277 : vector<1x128xf32> to vector<4x128xf32>
    %280 = arith.addf %278, %279 : vector<4x128xf32>
    %cst_156 = arith.constant 0.000000e+00 : f32
    %281 = vector.broadcast %cst_156 : f32 to vector<4x128xf32>
    %282 = arith.cmpf oge, %280, %281 : vector<4x128xf32>
    %cst_157 = arith.constant 0.00999999977 : f32
    %283 = vector.broadcast %cst_157 : f32 to vector<4x128xf32>
    %284 = arith.mulf %283, %280 : vector<4x128xf32>
    %285 = arith.select %282, %280, %284 : vector<4x128xi1>, vector<4x128xf32>
    %c4_158 = arith.constant 4 : index
    %c0_159 = arith.constant 0 : index
    %c0_160 = arith.constant 0 : index
    %286 = vector.load %arg5[%c4_158, %c0_159, %c0_160] : memref<15x128x256xf32, #tpu.memory_space<vmem>>, vector<1x128x256xf32>
    %287 = vector.shape_cast %286 : vector<1x128x256xf32> to vector<128x256xf32>
    %cst_161 = arith.constant dense<0.000000e+00> : vector<4x256xf32>
    %288 = tpu.matmul %285, %287, %cst_161 {dimension_numbers = #tpu.dot_dimension_numbers<[1], [0], [0], [1], [0, 0, 1, 1], [], []>} : vector<4x128xf32>, vector<128x256xf32>, vector<4x256xf32> -> vector<4x256xf32>
    %c17 = arith.constant 17 : index
    %c0_162 = arith.constant 0 : index
    %289 = vector.load %arg6[%c17, %c0_162] : memref<28x768xf32, #tpu.memory_space<vmem>>, vector<1x256xf32>
    %290 = vector.broadcast %289 : vector<1x256xf32> to vector<4x256xf32>
    %291 = arith.addf %288, %290 : vector<4x256xf32>
    %292 = vector.extract_strided_slice %291 {offsets = [0, 0], sizes = [4, 128], strides = [1, 1]} : vector<4x256xf32> to vector<4x128xf32>
    %293 = math.tanh %292 : vector<4x128xf32>
    %294 = vector.extract_strided_slice %291 {offsets = [0, 128], sizes = [4, 128], strides = [1, 1]} : vector<4x256xf32> to vector<4x128xf32>
    %295 = math.exp %293 : vector<4x128xf32>
    %296 = arith.mulf %253, %295 : vector<4x128xf32>
    %297 = arith.addf %296, %294 : vector<4x128xf32>
    %298 = arith.addf %242, %293 : vector<4x128xf32>
    %c13_163 = arith.constant 13 : index
    %c0_164 = arith.constant 0 : index
    %c128_165 = arith.constant 128 : index
    %299 = vector.load %arg5[%c13_163, %c0_164, %c128_165] : memref<15x128x256xf32, #tpu.memory_space<vmem>>, vector<1x128x128xf32>
    %300 = vector.shape_cast %299 : vector<1x128x128xf32> to vector<128x128xf32>
    %cst_166 = arith.constant dense<0.000000e+00> : vector<4x128xf32>
    %301 = tpu.matmul %297, %300, %cst_166 {dimension_numbers = #tpu.dot_dimension_numbers<[1], [0], [0], [1], [0, 0, 1, 1], [], []>} : vector<4x128xf32>, vector<128x128xf32>, vector<4x128xf32> -> vector<4x128xf32>
    %302 = vector.extract_strided_slice %39 {offsets = [0, 640], sizes = [4, 128], strides = [1, 1]} : vector<4x768xf32> to vector<4x128xf32>
    %303 = arith.addf %301, %302 : vector<4x128xf32>
    %cst_167 = arith.constant 0.000000e+00 : f32
    %304 = vector.broadcast %cst_167 : f32 to vector<4x128xf32>
    %305 = arith.cmpf oge, %303, %304 : vector<4x128xf32>
    %cst_168 = arith.constant 0.00999999977 : f32
    %306 = vector.broadcast %cst_168 : f32 to vector<4x128xf32>
    %307 = arith.mulf %306, %303 : vector<4x128xf32>
    %308 = arith.select %305, %303, %307 : vector<4x128xi1>, vector<4x128xf32>
    %c14_169 = arith.constant 14 : index
    %c0_170 = arith.constant 0 : index
    %c0_171 = arith.constant 0 : index
    %309 = vector.load %arg5[%c14_169, %c0_170, %c0_171] : memref<15x128x256xf32, #tpu.memory_space<vmem>>, vector<1x128x128xf32>
    %310 = vector.shape_cast %309 : vector<1x128x128xf32> to vector<128x128xf32>
    %c11_172 = arith.constant 11 : index
    %c0_173 = arith.constant 0 : index
    %311 = vector.load %arg6[%c11_172, %c0_173] : memref<28x768xf32, #tpu.memory_space<vmem>>, vector<1x128xf32>
    %cst_174 = arith.constant dense<0.000000e+00> : vector<4x128xf32>
    %312 = tpu.matmul %308, %310, %cst_174 {dimension_numbers = #tpu.dot_dimension_numbers<[1], [0], [0], [1], [0, 0, 1, 1], [], []>} : vector<4x128xf32>, vector<128x128xf32>, vector<4x128xf32> -> vector<4x128xf32>
    %313 = vector.broadcast %311 : vector<1x128xf32> to vector<4x128xf32>
    %314 = arith.addf %312, %313 : vector<4x128xf32>
    %cst_175 = arith.constant 0.000000e+00 : f32
    %315 = vector.broadcast %cst_175 : f32 to vector<4x128xf32>
    %316 = arith.cmpf oge, %314, %315 : vector<4x128xf32>
    %cst_176 = arith.constant 0.00999999977 : f32
    %317 = vector.broadcast %cst_176 : f32 to vector<4x128xf32>
    %318 = arith.mulf %317, %314 : vector<4x128xf32>
    %319 = arith.select %316, %314, %318 : vector<4x128xi1>, vector<4x128xf32>
    %c14_177 = arith.constant 14 : index
    %c0_178 = arith.constant 0 : index
    %c128_179 = arith.constant 128 : index
    %320 = vector.load %arg5[%c14_177, %c0_178, %c128_179] : memref<15x128x256xf32, #tpu.memory_space<vmem>>, vector<1x128x128xf32>
    %321 = vector.shape_cast %320 : vector<1x128x128xf32> to vector<128x128xf32>
    %c12_180 = arith.constant 12 : index
    %c0_181 = arith.constant 0 : index
    %322 = vector.load %arg6[%c12_180, %c0_181] : memref<28x768xf32, #tpu.memory_space<vmem>>, vector<1x128xf32>
    %cst_182 = arith.constant dense<0.000000e+00> : vector<4x128xf32>
    %323 = tpu.matmul %319, %321, %cst_182 {dimension_numbers = #tpu.dot_dimension_numbers<[1], [0], [0], [1], [0, 0, 1, 1], [], []>} : vector<4x128xf32>, vector<128x128xf32>, vector<4x128xf32> -> vector<4x128xf32>
    %324 = vector.broadcast %322 : vector<1x128xf32> to vector<4x128xf32>
    %325 = arith.addf %323, %324 : vector<4x128xf32>
    %cst_183 = arith.constant 0.000000e+00 : f32
    %326 = vector.broadcast %cst_183 : f32 to vector<4x128xf32>
    %327 = arith.cmpf oge, %325, %326 : vector<4x128xf32>
    %cst_184 = arith.constant 0.00999999977 : f32
    %328 = vector.broadcast %cst_184 : f32 to vector<4x128xf32>
    %329 = arith.mulf %328, %325 : vector<4x128xf32>
    %330 = arith.select %327, %325, %329 : vector<4x128xi1>, vector<4x128xf32>
    %c5_185 = arith.constant 5 : index
    %c0_186 = arith.constant 0 : index
    %c0_187 = arith.constant 0 : index
    %331 = vector.load %arg5[%c5_185, %c0_186, %c0_187] : memref<15x128x256xf32, #tpu.memory_space<vmem>>, vector<1x128x256xf32>
    %332 = vector.shape_cast %331 : vector<1x128x256xf32> to vector<128x256xf32>
    %cst_188 = arith.constant dense<0.000000e+00> : vector<4x256xf32>
    %333 = tpu.matmul %330, %332, %cst_188 {dimension_numbers = #tpu.dot_dimension_numbers<[1], [0], [0], [1], [0, 0, 1, 1], [], []>} : vector<4x128xf32>, vector<128x256xf32>, vector<4x256xf32> -> vector<4x256xf32>
    %c18 = arith.constant 18 : index
    %c0_189 = arith.constant 0 : index
    %334 = vector.load %arg6[%c18, %c0_189] : memref<28x768xf32, #tpu.memory_space<vmem>>, vector<1x256xf32>
    %335 = vector.broadcast %334 : vector<1x256xf32> to vector<4x256xf32>
    %336 = arith.addf %333, %335 : vector<4x256xf32>
    %337 = vector.extract_strided_slice %336 {offsets = [0, 0], sizes = [4, 128], strides = [1, 1]} : vector<4x256xf32> to vector<4x128xf32>
    %338 = math.tanh %337 : vector<4x128xf32>
    %339 = vector.extract_strided_slice %336 {offsets = [0, 128], sizes = [4, 128], strides = [1, 1]} : vector<4x256xf32> to vector<4x128xf32>
    %340 = math.exp %338 : vector<4x128xf32>
    %341 = arith.mulf %297, %340 : vector<4x128xf32>
    %342 = arith.addf %341, %339 : vector<4x128xf32>
    %343 = arith.addf %298, %338 : vector<4x128xf32>
    %c0_190 = arith.constant 0 : index
    %c0_191 = arith.constant 0 : index
    %344 = vector.load %arg7[%c0_190, %c0_191] : memref<4x128xf32, #tpu.memory_space<vmem>>, vector<4x128xf32>
    tpu.vector_store %arg7[%c0_190, %c0_191], %342 {strides = array<i32>} : memref<4x128xf32, #tpu.memory_space<vmem>>, vector<4x128xf32>,
    %cst_192 = arith.constant dense<0.000000e+00> : vector<4xf32>
    %345 = vector.multi_reduction <add>, %343, %cst_192 [1] : vector<4x128xf32> to vector<4xf32>
    %346 = vector.shape_cast %345 : vector<4xf32> to vector<4x1xf32>
    %c0_193 = arith.constant 0 : index
    %c0_194 = arith.constant 0 : index
    %347 = memref.load %arg0[%c0_193, %c0_194] : memref<1x1xf32, #tpu.memory_space<smem>>
    %348 = vector.broadcast %347 : f32 to vector<4x1xf32>
    %349 = arith.addf %346, %348 : vector<4x1xf32>
    %c0_195 = arith.constant 0 : index
    %c0_196 = arith.constant 0 : index
    %350 = vector.load %arg8[%c0_195, %c0_196] : memref<4x1xf32, #tpu.memory_space<vmem>>, vector<4x1xf32>
    tpu.vector_store %arg8[%c0_195, %c0_196], %349 {strides = array<i32>} : memref<4x1xf32, #tpu.memory_space<vmem>>, vector<4x1xf32>,
    return
  }
}

</mosaic_0001>

<bundles_post_ra>
// kernel: _forward.1
= control target key start
LH: loop header
LB: loop body
LE: loop exit
PB: predicated region body
PF: predicated region fallthrough
CT: control target
= control target key end

     0   :  { %15 = vsyncpa [#allocation4], 0  ;;  %s5265_s0 = inlined_call_operand.<no memory space> [shape: f32[1,1], index: 0, kind: input, shape index: {}]   ;;  %s5266_s1 = inlined_call_operand.vmem [shape: f32[4,128], index: 1, kind: input, shape index: {}]   ;;  %s5267_s2 = inlined_call_operand.vmem [shape: f32[4,32], index: 2, kind: input, shape index: {}]   ;;  %s5268_s3 = inlined_call_operand.hbm [shape: f32[3,32,32], index: 3, kind: input, shape index: {}]   ;;  %s5269_s4 = inlined_call_operand.hbm [shape: f32[32,768], index: 4, kind: input, shape index: {}]   ;;  %s5270_s5 = inlined_call_operand.hbm [shape: f32[15,128,256], index: 5, kind: input, shape index: {}]   ;;  %s5271_s6 = inlined_call_operand.hbm [shape: f32[28,768], index: 6, kind: input, shape index: {}]   ;;  %s5272_s7 = inlined_call_operand.hbm [shape: f32[4,128], index: 7, kind: output, shape index: {0}]   ;;  %s5273_s8 = inlined_call_operand.vmem [shape: f32[4,1], index: 8, kind: output, shape index: {1}]  }
   0x1   :  { %16 = vsyncpa [#allocation7], 0 }
   0x2   :  { %17 = vsyncpa [#allocation10], 0 }
   0x3   :  { %18 = vsyncpa [#allocation5], 0  ;;  %s4831_s27 = smov [#allocation6]   ;;  %s4713_s9 = scalar_lea.hbm %s5269_s4, 3072 }
   0x4   :  { %s42_s28 = sshll.u32 %s4831_s27, 4  ;;  %p4714_p0 = scmp.ne.s32.totalorder %s5269_s4, %s4713_s9  ;;  %s43_s28 = int_to_ptr.vmem [resolvable:$true] %s42_s28 }
   0x5   :  { %p4717_p1 = scmp.lt.u32.totalorder %s4713_s9, %s5269_s4 }
   0x7   :  { %p4719_p2 = pnand %p4717_p1, %p4714_p0 }
   0x9   :  { %4722 = shalt.err (!%p4719_p2)
}
   0xa   :  { %s4723_s14 = scalar_lea.vmem %s43_s28, 3072  ;;  %p4728_p4 = scmp.lt.s32.totalorder %s43_s28, %s43_s28 }
   0xb   :  { %p4724_p3 = scmp.ne.s32.totalorder %s43_s28, %s4723_s14  ;;  %p4729_p5 = scmp.lt.s32.totalorder %s4723_s14, %s4723_s14 }
   0xd   :  { %p4730_p6 = por %p4729_p5, %p4728_p4 }
   0xf   :  { %p4731_p7 = pnand %p4730_p6, %p4724_p3 }
  0x11   :  { %4734 = shalt.err (!%p4731_p7)
}
  0x12   :  { %s4832_s15 = smov 768   ;;  %s4833_s16 = smov 48  }
  0x13   :  { %48 = dma.hbm_to_vmem [thread:$0]  %s5269_s4, 3072, %s43_s28, [#allocation7], %s4832_s15, %s4832_s15, %s4833_s16  }
  0x14   :  { %s4834_s19 = smov [#allocation3]   ;;  %s4735_s23 = scalar_lea.hbm %s5268_s3, 1536 }
  0x15   :  { %s30_s20 = sshll.u32 %s4834_s19, 4  ;;  %p4736_p8 = scmp.ne.s32.totalorder %s5268_s3, %s4735_s23  ;;  %s31_s20 = int_to_ptr.vmem [resolvable:$true] %s30_s20 }
  0x16   :  { %p4739_p9 = scmp.lt.u32.totalorder %s4735_s23, %s5268_s3 }
  0x18   :  { %p4741_p10 = pnand %p4739_p9, %p4736_p8 }
  0x1a   :  { %4744 = shalt.err (!%p4741_p10)
}
  0x1b   :  { %s4745_s29 = scalar_lea.vmem %s31_s20, 1536  ;;  %p4750_p12 = scmp.lt.s32.totalorder %s31_s20, %s31_s20 }
  0x1c   :  { %p4746_p11 = scmp.ne.s32.totalorder %s31_s20, %s4745_s29  ;;  %p4751_p13 = scmp.lt.s32.totalorder %s4745_s29, %s4745_s29 }
  0x1e   :  { %p4752_p0 = por %p4751_p13, %p4750_p12 }
  0x20   :  { %p4753_p1 = pnand %p4752_p0, %p4746_p11 }
  0x22   :  { %4756 = shalt.err (!%p4753_p1)
}
  0x23   :  { %s4835_s4 = smov 128   ;;  %s4836_s28 = smov 8  }
  0x24   :  { %36 = dma.hbm_to_vmem [thread:$0]  %s5268_s3, 1536, %s31_s20, [#allocation4], %s4835_s4, %s4835_s4, %s4836_s28  }
  0x25   :  { %s4837_s10 = smov [#allocation8]   ;;  %s4757_s14 = scalar_lea.hbm %s5270_s5, 61440 }
  0x26   :  { %s54_s11 = sshll.u32 %s4837_s10, 4  ;;  %p4758_p2 = scmp.ne.s32.totalorder %s5270_s5, %s4757_s14  ;;  %s55_s11 = int_to_ptr.vmem [resolvable:$true] %s54_s11 }
  0x27   :  { %p4761_p3 = scmp.lt.u32.totalorder %s4757_s14, %s5270_s5 }
  0x29   :  { %p4763_p4 = pnand %p4761_p3, %p4758_p2 }
  0x2b   :  { %4766 = shalt.err (!%p4763_p4)
}
  0x2c   :  { %s4767_s22 = scalar_lea.vmem %s55_s11, 61440  ;;  %p4772_p6 = scmp.lt.s32.totalorder %s55_s11, %s55_s11 }
  0x2d   :  { %p4768_p5 = scmp.ne.s32.totalorder %s55_s11, %s4767_s22  ;;  %p4773_p7 = scmp.lt.s32.totalorder %s4767_s22, %s4767_s22 }
  0x2f   :  { %p4774_p8 = por %p4773_p7, %p4772_p6 }
  0x31   :  { %p4775_p9 = pnand %p4774_p8, %p4768_p5 }
  0x33   :  { %4778 = shalt.err (!%p4775_p9)
}
  0x34   :  { %s4838_s3 = smov 256   ;;  %s4839_s20 = smov 16  }
  0x35   :  { %60 = dma.hbm_to_vmem [thread:$0]  %s5270_s5, 61440, %s55_s11, [#allocation7], %s4838_s3, %s4838_s3, %s4839_s20  }
  0x36   :  { %s4840_s25 = smov [#allocation9]   ;;  %s4779_s4 = scalar_lea.hbm %s5271_s6, 3072 }
  0x37   :  { %s66_s26 = sshll.u32 %s4840_s25, 4  ;;  %p4780_p10 = scmp.ne.s32.totalorder %s5271_s6, %s4779_s4  ;;  %s67_s26 = int_to_ptr.vmem [resolvable:$true] %s66_s26 }
  0x38   :  { %p4783_p11 = scmp.lt.u32.totalorder %s4779_s4, %s5271_s6 }
  0x3a   :  { %p4785_p12 = pnand %p4783_p11, %p4780_p10 }
  0x3c   :  { %4788 = shalt.err (!%p4785_p12)
}
  0x3d   :  { %s4789_s12 = scalar_lea.vmem %s67_s26, 3072  ;;  %p4794_p0 = scmp.lt.s32.totalorder %s67_s26, %s67_s26 }
  0x3e   :  { %p4790_p13 = scmp.ne.s32.totalorder %s67_s26, %s4789_s12  ;;  %p4795_p1 = scmp.lt.s32.totalorder %s4789_s12, %s4789_s12 }
  0x40   :  { %p4796_p2 = por %p4795_p1, %p4794_p0 }
  0x42   :  { %p4797_p3 = pnand %p4796_p2, %p4790_p13 }
  0x44   :  { %4800 = shalt.err (!%p4797_p3)
}
  0x45   :  { %72 = dma.hbm_to_vmem [thread:$0]  %s5271_s6, 3072, %s67_s26, [#allocation10], %s4832_s15, %s4832_s15, %s4833_s16  }
  0x46   :  { %4823 = dma.done.wait [#allocation4], 1536  }
  0x47   :  { %4824 = vsyncadd [#allocation4], 4294965760 }
  0x48   :  { %4825 = dma.done.wait [#allocation7], 64512  }
  0x49   :  { %4826 = vsyncadd [#allocation7], 4294902784 }
  0x4a   :  { %4827 = dma.done.wait [#allocation10], 3072  }
  0x4b   :  { %4828 = vsyncadd [#allocation10], 4294964224  ;;  %v4841_v0 = vmov 0.0|0.0   ;;  %vm4842_vm0 = vmmov 0   ;;  %v4843_v1 = vmov 0.0   ;;  %v88_v2 = vld [vmem:[#allocation3] sm:$0xff] }
  0x4c   :  { %4009 = vmatprep.subr.bf16.mxu0 %v4841_v0  ;;  %3354 = vmatprep.mubr.msk.f32.mxu0 %vm4842_vm0, %v4843_v1  ;;  %v89_v3 = vld [vmem:[#allocation3 + $0x8] sm:$0xff]  ;;  %v90_v4 = vld [vmem:[#allocation3 + $0x10] sm:$0xff]  ;;  %v91_v6 = vld [vmem:[#allocation3 + $0x18] sm:$0xff]  ;;  %vm92_vm1 = vcmask 261120  }
  0x4d   :  { %4015 = vmatprep.subr.bf16.mxu1 %v4841_v0  ;;  %3365 = vmatprep.mubr.msk.f32.mxu1 %vm4842_vm0, %v4843_v1  ;;  %v4010_v5 = vpack.c.bf16 %v89_v3, %v88_v2  ;;  %v171_v7 = vld [vmem:[#allocation3 + $0x20] sm:$0xff]  ;;  %v172_v8 = vld [vmem:[#allocation3 + $0x28] sm:$0xff]  ;;  %v4013_v9 = vpack.c.bf16 %v91_v6, %v90_v4  ;;  %v173_v12 = vld [vmem:[#allocation3 + $0x30] sm:$0xff] }
  0x4e   :  { %v4016_v10 = vpack.c.bf16 %v172_v8, %v171_v7  ;;  %v86_v11 = vld [vmem:[%s5267_s2] sm:$0xf]  ;;  %v174_v13 = vld [vmem:[#allocation3 + $0x38] sm:$0xff]  ;;  %v254_v16 = vld [vmem:[#allocation3 + $0x48] sm:$0xff] }
  0x4f   :  { %4011 = vmatpush3.bf16.msra.mxu0 %v4010_v5  ;;  %v4019_v14 = vpack.c.bf16 %v174_v13, %v173_v12  ;;  %v253_v15 = vld [vmem:[#allocation3 + $0x40] sm:$0xff]  ;;  %v87_v18 = vld [vmem:[#allocation9 + $0x91] ss:$0 sm:$0xff]  ;;  %v256_v25 = vld [vmem:[#allocation3 + $0x58] sm:$0xff] }
  0x50   :  { %4012 = vmatprep.subr.bf16.mxu0 %v4841_v0  ;;  %4017 = vmatpush3.bf16.msra.mxu1 %v4016_v10  ;;  %v4022_v17 = vpack.c.bf16 %v254_v16, %v253_v15  ;;  %v255_v24 = vld [vmem:[#allocation3 + $0x50] sm:$0xff]  ;;  %v334_v27 = vld [vmem:[#allocation6 + $0x8] sm:$0xff]  ;;  %v340_v28 = vld [vmem:[#allocation6 + $0x38] sm:$0xff] }
  0x51   :  { %4018 = vmatprep.subr.bf16.mxu1 %v4841_v0  ;;  %v4025_v26 = vpack.c.bf16 %v256_v25, %v255_v24  ;;  %v336_v29 = vld [vmem:[#allocation6 + $0x18] sm:$0xff]  ;;  %v4027_v30 = vpack.c.bf16 %v340_v28, %v334_v27  ;;  %v342_v31 = vld [vmem:[#allocation6 + $0x48] sm:$0xff]  ;;  %v333_v32 = vld [vmem:[#allocation6] sm:$0xff] }
  0x52   :  { %v339_v33 = vld [vmem:[#allocation6 + $0x30] sm:$0xff]  ;;  %v4035_v34 = vpack.c.bf16 %v342_v31, %v336_v29  ;;  %v341_v39 = vld [vmem:[#allocation6 + $0x40] sm:$0xff]  ;;  %v346_v45 = vld [vmem:[#allocation6 + $0x68] sm:$0xff] }
  0x53   :  { %4014 = vmatpush3.bf16.msra.mxu0 %v4013_v9  ;;  %v4029_v35 = vpack.c.bf16 %v339_v33, %v333_v32  ;;  %v169_v36 = vld [vmem:[#allocation9 + $0x92] ss:$0 sm:$0xff]  ;;  %v352_v46 = vld [vmem:[#allocation6 + $0x98] sm:$0xff]  ;;  %v354_v49 = vld [vmem:[#allocation6 + $0xa8] sm:$0xff] }
  0x54   :  { %4021 = vmatprep.subr.bf16.mxu0 %v4841_v0  ;;  %4020 = vmatpush3.bf16.msra.mxu1 %v4019_v14  ;;  %v335_v38 = vld [vmem:[#allocation6 + $0x10] sm:$0xff]  ;;  %v348_v47 = vld [vmem:[#allocation6 + $0x78] sm:$0xff]  ;;  %v4031_v48 = vpack.c.bf16 %v352_v46, %v346_v45  ;;  %v345_v50 = vld [vmem:[#allocation6 + $0x60] sm:$0xff] }
  0x55   :  { %4028 = vmatprep.subr.bf16.mxu1 %v4027_v30  ;;  %v4037_v43 = vpack.c.bf16 %v341_v39, %v335_v38  ;;  %v351_v51 = vld [vmem:[#allocation6 + $0x90] sm:$0xff]  ;;  %v4039_v52 = vpack.c.bf16 %v354_v49, %v348_v47  ;;  %v353_v55 = vld [vmem:[#allocation6 + $0xa0] sm:$0xff]  ;;  %v338_v57 = vld [vmem:[#allocation6 + $0x28] sm:$0xff] }
  0x56   :  { %3355 = vmatmul.mubr.msk.f32.vlgmr.msra.gmra.mrb[0].mxu0 %vm92_vm1, %v86_v11  ;;  %v4033_v53 = vpack.c.bf16 %v351_v51, %v345_v50  ;;  %v347_v54 = vld [vmem:[#allocation6 + $0x70] sm:$0xff]  ;;  %v344_v58 = vld [vmem:[#allocation6 + $0x58] sm:$0xff]  ;;  %v337_v61 = vld [vmem:[#allocation6 + $0x20] sm:$0xff] }
  0x57   :  { %3376 = vmatprep.mubr.msk.f32.mxu0 %vm4842_vm0, %v4843_v1  ;;  %4023 = vmatpush3.bf16.msra.mxu0 %v4022_v17  ;;  %v4041_v56 = vpack.c.bf16 %v353_v55, %v347_v54  ;;  %v4043_v59 = vpack.c.bf16 %v344_v58, %v338_v57  ;;  %v251_v60 = vld [vmem:[#allocation9 + $0x93] ss:$0 sm:$0xff]  ;;  %v615_v2 = vld [vmem:[#allocation8 + $0x600] sm:$0xff]  ;;  %v350_v6 = vld [vmem:[#allocation6 + $0x88] sm:$0xff] }
  0x58   :  { %4024 = vmatprep.subr.bf16.mxu0 %v4841_v0  ;;  %v343_v63 = vld [vmem:[#allocation6 + $0x50] sm:$0xff]  ;;  %v356_v7 = vld [vmem:[#allocation6 + $0xb8] sm:$0xff]  ;;  %v349_v11 = vld [vmem:[#allocation6 + $0x80] sm:$0xff] }
  0x59   :  { %v616_v3 = vld [vmem:[#allocation8 + $0x610] sm:$0xff]  ;;  %v4045_v9 = vpack.c.bf16 %v343_v63, %v337_v61  ;;  %v4047_v12 = vpack.c.bf16 %v356_v7, %v350_v6  ;;  %v617_v14 = vld [vmem:[#allocation8 + $0x620] sm:$0xff]  ;;  %v705_v45 = vld [vmem:[#allocation8 + $0x618] sm:$0xff] }
  0x5a   :  { %v4052_v10 = vpack.c.bf16 %v616_v3, %v615_v2  ;;  %v355_v13 = vld [vmem:[#allocation6 + $0xb0] sm:$0xff]  ;;  %v623_v25 = vld [vmem:[#allocation8 + $0x680] sm:$0xff]  ;;  %v706_v47 = vld [vmem:[#allocation8 + $0x628] sm:$0xff] }
  0x5b   :  { %4026 = vmatpush3.bf16.msra.mxu0 %v4025_v26  ;;  %v618_v15 = vld [vmem:[#allocation8 + $0x630] sm:$0xff]  ;;  %v4049_v17 = vpack.c.bf16 %v355_v13, %v349_v11  ;;  %v625_v28 = vld [vmem:[#allocation8 + $0x6a0] sm:$0xff]  ;;  %v708_v50 = vld [vmem:[#allocation8 + $0x648] sm:$0xff] }
  0x5c   :  { %4036 = vmatprep.subr.bf16.mxu0 %v4035_v34  ;;  %v624_v26 = vld [vmem:[#allocation8 + $0x690] sm:$0xff]  ;;  %v85_v30 = vld [vmem:[%s5266_s1] sm:$0xf]  ;;  %v709_v51 = vld [vmem:[#allocation8 + $0x658] sm:$0xff]  ;;  %s4844_s1 = smov [#allocation11]  }
  0x5d   :  { %v4064_v27 = vpack.c.bf16 %v624_v26, %v623_v25  ;;  %v626_v29 = vld [vmem:[#allocation8 + $0x6b0] sm:$0xff]  ;;  %v607_v31 = vld [vmem:[#allocation9 + $0x63] ss:$0 sm:$0xff]  ;;  %v711_v54 = vld [vmem:[#allocation8 + $0x678] sm:$0xff]  ;;  %s3004_s13 = sshll.u32 %s4844_s1, 4  ;;  %s3005_s13 = int_to_ptr.vmem [resolvable:$true] %s3004_s13 }
  0x5e   :  { %v4067_v32 = vpack.c.bf16 %v626_v29, %v625_v28  ;;  %v609_v33 = vmul.f32 %v607_v31, %v85_v30  ;;  %v627_v34 = vld [vmem:[#allocation8 + $0x6c0] sm:$0xff]  ;;  %v713_v57 = vld [vmem:[#allocation8 + $0x698] sm:$0xff]  ;;  %v718_v3 = vld [vmem:[#allocation8 + $0x6e8] sm:$0xff]  ;;  %s4801_s14 = scalar_lea.vmem %s3005_s13, 64  ;;  %p4806_p5 = scmp.lt.s32.totalorder %s3005_s13, %s3005_s13 }
  0x5f   :  { %v629_v39 = vld [vmem:[#allocation8 + $0x6e0] sm:$0xff]  ;;  %v717_v63 = vld [vmem:[#allocation8 + $0x6d8] sm:$0xff]  ;;  %v796_v7 = vld [vmem:[#allocation8 + $0x710] sm:$0xff]  ;;  %p4802_p4 = scmp.ne.s32.totalorder %s3005_s13, %s4801_s14  ;;  %p4807_p6 = scmp.lt.s32.totalorder %s4801_s14, %s4801_s14 }
  0x60   :  { %v795_v6 = vld [vmem:[#allocation8 + $0x700] sm:$0xff]  ;;  %v800_v13 = vld [vmem:[#allocation8 + $0x750] sm:$0xff] }
  0x61   :  { %v808_v25 = vld [vmem:[#allocation8 + $0x7d0] sm:$0xff]  ;;  %p4808_p7 = por %p4807_p6, %p4806_p5 }
  0x63   :  { %p4809_p8 = pnand %p4808_p7, %p4802_p4 }
 0x129   :  { %v162_v19 = vpop.f32.mrb[0].mxu0 }
 0x12a   :  { %v163_v20 = vadd.f32 %v162_v19, %v87_v18  ;;  %v3356_v21 = vpop.f32.mrb[1].mxu0  ;;  %v4055_v18 = vpack.c.bf16 %v618_v15, %v617_v14  ;;  %v619_v19 = vld [vmem:[#allocation8 + $0x640] sm:$0xff] }
 0x12b   :  { %v801_v15 = vld [vmem:[#allocation8 + $0x760] sm:$0xff] }
 0x12c   :  { %vm166_vm2 = vcmp.ge.f32.partialorder %v163_v20, 0.0  ;;  %v167_v22 = vmul.f32 0.01, %v163_v20 }
 0x12e   :  { %v168_v23 = vsel %vm166_vm2, %v163_v20, %v167_v22  ;;  %v620_v20 = vld [vmem:[#allocation8 + $0x650] sm:$0xff]  ;;  %v621_v22 = vld [vmem:[#allocation8 + $0x660] sm:$0xff] }
 0x12f   :  { %3366 = vmatmul.mubr.msk.f32.vlgmr.msra.gmra.mrb[0].mxu1 %vm92_vm1, %v168_v23  ;;  %v4058_v21 = vpack.c.bf16 %v620_v20, %v619_v19  ;;  %v622_v23 = vld [vmem:[#allocation8 + $0x670] sm:$0xff] }
 0x130   :  { %458 = vmatprep.mubr.f32.mxu1 %v4843_v1  ;;  %4030 = vmatpush1.bf16.msra.mxu1 %v4029_v35  ;;  %v4061_v24 = vpack.c.bf16 %v622_v23, %v621_v22  ;;  %v628_v35 = vld [vmem:[#allocation8 + $0x6d0] sm:$0xff] }
 0x131   :  { %4032 = vmatprep.subr.bf16.mxu1 %v4031_v48  ;;  %v707_v48 = vld [vmem:[#allocation8 + $0x638] sm:$0xff]  ;;  %v804_v19 = vld [vmem:[#allocation8 + $0x790] sm:$0xff] }
 0x132   :  { %v4079_v49 = vpack.c.bf16 %v707_v48, %v706_v47  ;;  %v806_v22 = vld [vmem:[#allocation8 + $0x7b0] sm:$0xff]  ;;  %v809_v47 = vld [vmem:[#allocation8 + $0x7e0] sm:$0xff] }
 0x133   :  { %v810_v48 = vld [vmem:[#allocation8 + $0x7f0] sm:$0xff] }
 0x134   :  { %4034 = vmatpush1.bf16.msra.mxu1 %v4033_v53  ;;  %v710_v53 = vld [vmem:[#allocation8 + $0x668] sm:$0xff] }
 0x135   :  { %4044 = vmatprep.subr.bf16.mxu1 %v4043_v59  ;;  %v4085_v55 = vpack.c.bf16 %v711_v54, %v710_v53  ;;  %v714_v59 = vld [vmem:[#allocation8 + $0x6a8] sm:$0xff]  ;;  %v887_v54 = vld [vmem:[#allocation8 + $0x10] sm:$0xff] }
 0x202   :  { %v244_v37 = vpop.f32.mrb[0].mxu1 }
 0x203   :  { %v245_v40 = vadd.f32 %v244_v37, %v169_v36  ;;  %v3367_v41 = vpop.f32.mrb[1].mxu1  ;;  %v608_v36 = vld [vmem:[#allocation9 + $0x66] ss:$0 sm:$0xff]  ;;  %v4070_v37 = vpack.c.bf16 %v628_v35, %v627_v34  ;;  %v357_v35 = vld [vmem:[#allocation9] ss:$8 sm:$0xf] }
 0x204   :  { %v610_v38 = vadd.f32 %v609_v33, %v608_v36  ;;  %v361_v33 = vlaneseq  ;;  %v358_v36 = vld [vmem:[#allocation9] ss:$8 sm:$0x30] }
 0x205   :  { %vm248_vm3 = vcmp.ge.f32.partialorder %v245_v40, 0.0  ;;  %v249_v42 = vmul.f32 0.01, %v245_v40 }
 0x206   :  { %vm611_vm5 = vcmp.ge.f32.partialorder %v610_v38, 0.0  ;;  %v5014_v34 = vshrl.u32 %v361_v33, 7  ;;  %v911_v33 = vld [vmem:[#allocation8 + $0xd0] sm:$0xff] }
 0x207   :  { %v250_v44 = vsel %vm248_vm3, %v245_v40, %v249_v42  ;;  %v630_v40 = vld [vmem:[#allocation8 + $0x6f0] sm:$0xff]  ;;  %v612_v42 = vmul.f32 0.9, %v610_v38 }
 0x208   :  { %3377 = vmatmul.mubr.msk.f32.vlgmr.msra.gmra.mrb[2].mxu0 %vm92_vm1, %v250_v44  ;;  %v4073_v41 = vpack.c.bf16 %v630_v40, %v629_v39  ;;  %v704_v44 = vld [vmem:[#allocation8 + $0x608] sm:$0xff] }
 0x209   :  { %4038 = vmatpush1.bf16.msra.mxu0 %v4037_v43  ;;  %529 = vmatprep.mubr.f32.mxu0 %v4843_v1  ;;  %v4984_v43 = vsel %vm611_vm5, %v610_v38, %v612_v42  ;;  %v4076_v46 = vpack.c.bf16 %v705_v45, %v704_v44  ;;  %v5019_v38 = vsub.s32 0, %v5014_v34 }
 0x20a   :  { %4040 = vmatprep.subr.bf16.mxu0 %v4039_v52  ;;  %v4082_v52 = vpack.c.bf16 %v709_v51, %v708_v50  ;;  %v886_v50 = vld [vmem:[#allocation8 + $0x8] sm:$0xff]  ;;  %v888_v51 = vld [vmem:[#allocation8 + $0x18] sm:$0xff] }
 0x20b   :  { %v4123_v53 = vpack.c.bf16 %v888_v51, %v886_v50  ;;  %v811_v51 = vld [vmem:[#allocation9 + $0x2] ss:$0 sm:$0xff] }
 0x20d   :  { %4042 = vmatpush1.bf16.msra.mxu0 %v4041_v56  ;;  %v712_v56 = vld [vmem:[#allocation8 + $0x688] sm:$0xff] }
 0x20e   :  { %4051 = vmatprep.subr.bf16.mxu0 %v4841_v0  ;;  %v4088_v58 = vpack.c.bf16 %v713_v57, %v712_v56  ;;  %v892_v56 = vld [vmem:[#allocation8 + $0x38] sm:$0xff] }
 0x2db   :  { %v326_v62 = vpop.f32.mrb[2].mxu0 }
 0x2dc   :  { %v327_v4 = vadd.f32 %v326_v62, %v251_v60  ;;  %v3378_v5 = vpop.f32.mrb[3].mxu0  ;;  %v715_v60 = vld [vmem:[#allocation8 + $0x6b8] sm:$0xff]  ;;  %v716_v62 = vld [vmem:[#allocation8 + $0x6c8] sm:$0xff] }
 0x2dd   :  { %v4091_v61 = vpack.c.bf16 %v715_v60, %v714_v59  ;;  %v4094_v2 = vpack.c.bf16 %v717_v63, %v716_v62  ;;  %v889_v59 = vld [vmem:[#allocation8 + $0x20] sm:$0xff]  ;;  %v891_v60 = vld [vmem:[#allocation8 + $0x30] sm:$0xff]  ;;  %v896_v62 = vld [vmem:[#allocation8 + $0x58] sm:$0xff] }
 0x2de   :  { %vm330_vm4 = vcmp.ge.f32.partialorder %v327_v4, 0.0  ;;  %v331_v8 = vmul.f32 0.01, %v327_v4  ;;  %v4129_v63 = vpack.c.bf16 %v891_v60, %v889_v59  ;;  %v1009_v60 = vld [vmem:[#allocation8 + $0x728] sm:$0xff] }
 0x2e0   :  { %v332_v16 = vsel %vm330_vm4, %v327_v4, %v331_v8  ;;  %v719_v4 = vld [vmem:[#allocation8 + $0x6f8] sm:$0xff]  ;;  %v797_v8 = vld [vmem:[#allocation8 + $0x720] sm:$0xff] }
 0x2e1   :  { %3022 = vmatmul.mubr.msk.f32.vlgmr.msra.gmra.mrb[2].mxu1 %vm92_vm1, %v332_v16  ;;  %3023 = vmatmul.mubr.msk.f32.vlgmr.msra.gmra.mrb[4].mxu0 %vm92_vm1, %v332_v16  ;;  %v4097_v5 = vpack.c.bf16 %v719_v4, %v718_v3  ;;  %v893_v3 = vld [vmem:[#allocation8 + $0x40] sm:$0xff]  ;;  %v895_v4 = vld [vmem:[#allocation8 + $0x50] sm:$0xff] }
 0x2e2   :  { %4046 = vmatpush1.bf16.msra.mxu1 %v4045_v9  ;;  %4053 = vmatpush3.bf16.msra.mxu0 %v4052_v10  ;;  %v4100_v9 = vpack.c.bf16 %v796_v7, %v795_v6  ;;  %v798_v10 = vld [vmem:[#allocation8 + $0x730] sm:$0xff]  ;;  %v900_v6 = vld [vmem:[#allocation8 + $0x78] sm:$0xff]  ;;  %v4133_v7 = vpack.c.bf16 %v895_v4, %v893_v3  ;;  %v1013_v4 = vld [vmem:[#allocation8 + $0x768] sm:$0xff] }
 0x2e3   :  { %4048 = vmatprep.subr.bf16.mxu1 %v4047_v12  ;;  %4054 = vmatprep.subr.bf16.mxu0 %v4841_v0  ;;  %v4103_v11 = vpack.c.bf16 %v798_v10, %v797_v8  ;;  %v799_v12 = vld [vmem:[#allocation8 + $0x740] sm:$0xff]  ;;  %v899_v10 = vld [vmem:[#allocation8 + $0x70] sm:$0xff] }
 0x2e4   :  { %600 = vmatprep.mubr.f32.mxu1 %v4843_v1  ;;  %3411 = vmatprep.mubr.msk.f32.mxu0 %vm4842_vm0, %v4843_v1  ;;  %v4106_v14 = vpack.c.bf16 %v800_v13, %v799_v12  ;;  %v904_v12 = vld [vmem:[#allocation8 + $0x98] sm:$0xff] }
 0x2e6   :  { %4050 = vmatpush1.bf16.msra.mxu1 %v4049_v17  ;;  %4056 = vmatpush3.bf16.msra.mxu0 %v4055_v18  ;;  %v803_v18 = vld [vmem:[#allocation8 + $0x780] sm:$0xff] }
 0x2e7   :  { %4057 = vmatprep.subr.bf16.mxu0 %v4841_v0  ;;  %4075 = vmatprep.subr.bf16.mxu1 %v4841_v0  ;;  %v4112_v20 = vpack.c.bf16 %v804_v19, %v803_v18  ;;  %v908_v18 = vld [vmem:[#allocation8 + $0xb8] sm:$0xff] }
 0x2e9   :  { %3024 = vmatmul.mubr.msk.f32.vlgmr.msra.gmra.mrb[4].mxu1 %vm92_vm1, %v332_v16  ;;  %v802_v16 = vld [vmem:[#allocation8 + $0x770] sm:$0xff] }
 0x2ea   :  { %4059 = vmatpush3.bf16.msra.mxu0 %v4058_v21  ;;  %3446 = vmatprep.mubr.msk.f32.mxu1 %vm4842_vm0, %v4843_v1  ;;  %v4109_v17 = vpack.c.bf16 %v802_v16, %v801_v15  ;;  %v805_v21 = vld [vmem:[#allocation8 + $0x7a0] sm:$0xff]  ;;  %v903_v16 = vld [vmem:[#allocation8 + $0x90] sm:$0xff] }
 0x2eb   :  { %4060 = vmatprep.subr.bf16.mxu0 %v4841_v0  ;;  %4077 = vmatpush3.bf16.msra.mxu1 %v4076_v46  ;;  %v4115_v23 = vpack.c.bf16 %v806_v22, %v805_v21  ;;  %v901_v15 = vld [vmem:[#allocation8 + $0x80] sm:$0xff]  ;;  %v907_v22 = vld [vmem:[#allocation8 + $0xb0] sm:$0xff] }
 0x2ec   :  { %4078 = vmatprep.subr.bf16.mxu1 %v4841_v0  ;;  %v4141_v19 = vpack.c.bf16 %v903_v16, %v901_v15  ;;  %v905_v21 = vld [vmem:[#allocation8 + $0xa0] sm:$0xff]  ;;  %v1021_v16 = vld [vmem:[#allocation8 + $0x7e8] sm:$0xff] }
 0x2ee   :  { %4062 = vmatpush3.bf16.msra.mxu0 %v4061_v24  ;;  %v807_v24 = vld [vmem:[#allocation8 + $0x7c0] sm:$0xff] }
 0x2ef   :  { %4063 = vmatprep.subr.bf16.mxu0 %v4841_v0  ;;  %4080 = vmatpush3.bf16.msra.mxu1 %v4079_v49  ;;  %v4118_v26 = vpack.c.bf16 %v808_v25, %v807_v24  ;;  %v4121_v49 = vpack.c.bf16 %v810_v48, %v809_v47  ;;  %v912_v24 = vld [vmem:[#allocation8 + $0xd8] sm:$0xff]  ;;  %v4145_v25 = vpack.c.bf16 %v907_v22, %v905_v21  ;;  %v913_v48 = vld [vmem:[#allocation8 + $0xe0] sm:$0xff] }
 0x2f0   :  { %4081 = vmatprep.subr.bf16.mxu1 %v4841_v0  ;;  %v1099_v21 = vld [vmem:[#allocation8 + $0x820] sm:$0xff] }
 0x2f2   :  { %4065 = vmatpush3.bf16.msra.mxu0 %v4064_v27 }
 0x2f3   :  { %4066 = vmatprep.subr.bf16.mxu0 %v4841_v0  ;;  %4083 = vmatpush3.bf16.msra.mxu1 %v4082_v52  ;;  %v885_v52 = vld [vmem:[#allocation8] sm:$0xff] }
 0x2f4   :  { %4084 = vmatprep.subr.bf16.mxu1 %v4841_v0  ;;  %v4125_v57 = vpack.c.bf16 %v887_v54, %v885_v52 }
 0x2f6   :  { %4068 = vmatpush3.bf16.msra.mxu0 %v4067_v32 }
 0x2f7   :  { %4069 = vmatprep.subr.bf16.mxu0 %v4841_v0  ;;  %4086 = vmatpush3.bf16.msra.mxu1 %v4085_v55  ;;  %v890_v55 = vld [vmem:[#allocation8 + $0x28] sm:$0xff] }
 0x2f8   :  { %4087 = vmatprep.subr.bf16.mxu1 %v4841_v0 }
 0x2fa   :  { %4071 = vmatpush3.bf16.msra.mxu0 %v4070_v37  ;;  %v5016_v37 = vor.u32 %v358_v36, %v357_v35  ;;  %v720_v36 = vld [vmem:[#allocation9 + $0x1] ss:$0 sm:$0xff] }
 0x2fb   :  { %4072 = vmatprep.subr.bf16.mxu0 %v4841_v0  ;;  %4089 = vmatpush3.bf16.msra.mxu1 %v4088_v58  ;;  %v4127_v58 = vpack.c.bf16 %v892_v56, %v890_v55 }
 0x2fc   :  { %4090 = vmatprep.subr.bf16.mxu1 %v4841_v0  ;;  %v364_v39 = vrot.slane %v5016_v37, %v5019_v38 }
 0x2fe   :  { %4074 = vmatpush3.bf16.msra.mxu0 %v4073_v41 }
 0x2ff   :  { %4099 = vmatprep.subr.bf16.mxu0 %v4841_v0  ;;  %4092 = vmatpush3.bf16.msra.mxu1 %v4091_v61  ;;  %v894_v61 = vld [vmem:[#allocation8 + $0x48] sm:$0xff] }
 0x300   :  { %4093 = vmatprep.subr.bf16.mxu1 %v4841_v0 }
 0x301   :  { %3412 = vmatmul.mubr.f32.vlgmr.msra.gmra.mrb[6].mxu0 %v4984_v43 }
 0x302   :  { %3481 = vmatprep.mubr.msk.f32.mxu0 %vm4842_vm0, %v4843_v1  ;;  %4101 = vmatpush3.bf16.msra.mxu0 %v4100_v9  ;;  %v897_v9 = vld [vmem:[#allocation8 + $0x60] sm:$0xff] }
 0x303   :  { %4095 = vmatpush3.bf16.msra.mxu1 %v4094_v2  ;;  %4102 = vmatprep.subr.bf16.mxu0 %v4841_v0  ;;  %v4131_v2 = vpack.c.bf16 %v896_v62, %v894_v61  ;;  %v4137_v13 = vpack.c.bf16 %v899_v10, %v897_v9  ;;  %v1010_v61 = vld [vmem:[#allocation8 + $0x738] sm:$0xff]  ;;  %v1017_v10 = vld [vmem:[#allocation8 + $0x7a8] sm:$0xff] }
 0x304   :  { %4096 = vmatprep.subr.bf16.mxu1 %v4841_v0  ;;  %v4159_v62 = vpack.c.bf16 %v1010_v61, %v1009_v60 }
 0x306   :  { %4104 = vmatpush3.bf16.msra.mxu0 %v4103_v11  ;;  %v902_v11 = vld [vmem:[#allocation8 + $0x88] sm:$0xff] }
 0x307   :  { %4098 = vmatpush3.bf16.msra.mxu1 %v4097_v5  ;;  %4105 = vmatprep.subr.bf16.mxu0 %v4841_v0  ;;  %v898_v5 = vld [vmem:[#allocation8 + $0x68] sm:$0xff] }
 0x308   :  { %4124 = vmatprep.subr.bf16.mxu1 %v4123_v53  ;;  %v4135_v8 = vpack.c.bf16 %v900_v6, %v898_v5  ;;  %v1014_v5 = vld [vmem:[#allocation8 + $0x778] sm:$0xff] }
 0x309   :  { %v4165_v6 = vpack.c.bf16 %v1014_v5, %v1013_v4  ;;  %v1188_v4 = vld [vmem:[#allocation8 + $0x818] sm:$0xff]  ;;  %v1189_v5 = vld [vmem:[#allocation8 + $0x828] sm:$0xff] }
 0x30a   :  { %4107 = vmatpush3.bf16.msra.mxu0 %v4106_v14  ;;  %v4139_v14 = vpack.c.bf16 %v904_v12, %v902_v11  ;;  %v1018_v11 = vld [vmem:[#allocation8 + $0x7b8] sm:$0xff] }
 0x30b   :  { %4108 = vmatprep.subr.bf16.mxu0 %v4841_v0  ;;  %v4171_v12 = vpack.c.bf16 %v1018_v11, %v1017_v10  ;;  %v1193_v11 = vld [vmem:[#allocation8 + $0x868] sm:$0xff] }
 0x30e   :  { %4110 = vmatpush3.bf16.msra.mxu0 %v4109_v17  ;;  %v906_v17 = vld [vmem:[#allocation8 + $0xa8] sm:$0xff] }
 0x30f   :  { %4111 = vmatprep.subr.bf16.mxu0 %v4841_v0 }
 0x312   :  { %4113 = vmatpush3.bf16.msra.mxu0 %v4112_v20  ;;  %v4143_v20 = vpack.c.bf16 %v908_v18, %v906_v17  ;;  %v1022_v17 = vld [vmem:[#allocation8 + $0x7f8] sm:$0xff] }
 0x313   :  { %4114 = vmatprep.subr.bf16.mxu0 %v4841_v0  ;;  %v4177_v18 = vpack.c.bf16 %v1022_v17, %v1021_v16  ;;  %v1197_v17 = vld [vmem:[#allocation8 + $0x8a8] sm:$0xff] }
 0x316   :  { %4116 = vmatpush3.bf16.msra.mxu0 %v4115_v23  ;;  %v910_v23 = vld [vmem:[#allocation8 + $0xc8] sm:$0xff] }
 0x317   :  { %4117 = vmatprep.subr.bf16.mxu0 %v4841_v0 }
 0x31a   :  { %4119 = vmatpush3.bf16.msra.mxu0 %v4118_v26  ;;  %v4147_v26 = vpack.c.bf16 %v912_v24, %v910_v23  ;;  %v1100_v23 = vld [vmem:[#allocation8 + $0x830] sm:$0xff] }
 0x31b   :  { %4120 = vmatprep.subr.bf16.mxu0 %v4841_v0  ;;  %v4183_v24 = vpack.c.bf16 %v1100_v23, %v1099_v21  ;;  %v1200_v21 = vld [vmem:[#allocation8 + $0x8d8] sm:$0xff] }
 0x31e   :  { %4122 = vmatpush3.bf16.msra.mxu0 %v4121_v49  ;;  %v915_v49 = vld [vmem:[#allocation8 + $0xf0] sm:$0xff] }
 0x31f   :  { %4155 = vmatprep.subr.bf16.mxu0 %v4841_v0  ;;  %v4153_v50 = vpack.c.bf16 %v915_v49, %v913_v48  ;;  %v918_v49 = vld [vmem:[#allocation9 + $0x35] ss:$8 sm:$0x3] }
 0x3b4   :  { %v460_v27 = vpop.f32.mrb[2].mxu1  ;;  %v5004_v28 = vpop.f32.mrb[4].mxu0 }
 0x3b5   :  { %v5006_v29 = vpop.f32.mrb[3].mxu1  ;;  %v5008_v30 = vpop.f32.mrb[5].mxu0  ;;  %v461_v40 = vadd.f32 %v460_v27, %v364_v39  ;;  %v909_v27 = vld [vmem:[#allocation8 + $0xc0] sm:$0xff] }
 0x3b6   :  { %v4149_v35 = vpack.c.bf16 %v911_v33, %v909_v27  ;;  %v1103_v33 = vld [vmem:[#allocation8 + $0x860] sm:$0xff] }
 0x3bc   :  { %v5010_v31 = vpop.f32.mrb[4].mxu1 }
 0x3bd   :  { %v5012_v32 = vpop.f32.mrb[5].mxu1 }
 0x3d4   :  { %v697_v41 = vpop.f32.mrb[6].mxu0 }
 0x3d5   :  { %v698_v42 = vadd.f32 %v697_v41, %v461_v40  ;;  %v3413_v44 = vpop.f32.mrb[7].mxu0 }
 0x3d7   :  { %vm701_vm6 = vcmp.ge.f32.partialorder %v698_v42, 0.0  ;;  %v702_v45 = vmul.f32 0.01, %v698_v42 }
 0x3d9   :  { %v703_v46 = vsel %vm701_vm6, %v698_v42, %v702_v45  ;;  %v914_v45 = vld [vmem:[#allocation8 + $0xe8] sm:$0xff] }
 0x3da   :  { %3447 = vmatmul.mubr.f32.vlgmr.msra.gmra.mrb[6].mxu1 %v703_v46  ;;  %v916_v46 = vld [vmem:[#allocation8 + $0xf8] sm:$0xff] }
 0x3db   :  { %994 = vmatprep.mubr.f32.mxu1 %v4843_v1  ;;  %4126 = vmatpush1.bf16.msra.mxu1 %v4125_v57  ;;  %v4151_v47 = vpack.c.bf16 %v916_v46, %v914_v45  ;;  %v1007_v57 = vld [vmem:[#allocation8 + $0x708] sm:$0xff]  ;;  %v1109_v46 = vld [vmem:[#allocation8 + $0x8c0] sm:$0xff] }
 0x3dc   :  { %4128 = vmatprep.subr.bf16.mxu1 %v4127_v58  ;;  %v1008_v58 = vld [vmem:[#allocation8 + $0x718] sm:$0xff] }
 0x3dd   :  { %v4156_v59 = vpack.c.bf16 %v1008_v58, %v1007_v57 }
 0x3df   :  { %4130 = vmatpush1.bf16.msra.mxu1 %v4129_v63  ;;  %v1011_v63 = vld [vmem:[#allocation8 + $0x748] sm:$0xff] }
 0x3e0   :  { %4132 = vmatprep.subr.bf16.mxu1 %v4131_v2  ;;  %v1012_v2 = vld [vmem:[#allocation8 + $0x758] sm:$0xff] }
 0x3e1   :  { %v4162_v3 = vpack.c.bf16 %v1012_v2, %v1011_v63  ;;  %v1112_v63 = vld [vmem:[#allocation8 + $0x8f0] sm:$0xff] }
 0x3e3   :  { %4134 = vmatpush1.bf16.msra.mxu1 %v4133_v7  ;;  %v1015_v7 = vld [vmem:[#allocation8 + $0x788] sm:$0xff] }
 0x3e4   :  { %4136 = vmatprep.subr.bf16.mxu1 %v4135_v8  ;;  %v1016_v8 = vld [vmem:[#allocation8 + $0x798] sm:$0xff] }
 0x3e5   :  { %v4168_v9 = vpack.c.bf16 %v1016_v8, %v1015_v7  ;;  %v1190_v7 = vld [vmem:[#allocation8 + $0x838] sm:$0xff] }
 0x3e6   :  { %v4207_v8 = vpack.c.bf16 %v1190_v7, %v1189_v5  ;;  %v1295_v5 = vld [vmem:[#allocation8 + $0x188] sm:$0xff] }
 0x3e7   :  { %4138 = vmatpush1.bf16.msra.mxu1 %v4137_v13  ;;  %v1019_v13 = vld [vmem:[#allocation8 + $0x7c8] sm:$0xff] }
 0x3e8   :  { %4140 = vmatprep.subr.bf16.mxu1 %v4139_v14  ;;  %v1020_v14 = vld [vmem:[#allocation8 + $0x7d8] sm:$0xff] }
 0x3e9   :  { %v4174_v15 = vpack.c.bf16 %v1020_v14, %v1019_v13  ;;  %v1195_v14 = vld [vmem:[#allocation8 + $0x888] sm:$0xff] }
 0x3eb   :  { %4142 = vmatpush1.bf16.msra.mxu1 %v4141_v19  ;;  %v1097_v19 = vld [vmem:[#allocation8 + $0x800] sm:$0xff] }
 0x3ec   :  { %4144 = vmatprep.subr.bf16.mxu1 %v4143_v20  ;;  %v1098_v20 = vld [vmem:[#allocation8 + $0x810] sm:$0xff] }
 0x3ed   :  { %v4180_v22 = vpack.c.bf16 %v1098_v20, %v1097_v19  ;;  %v1199_v20 = vld [vmem:[#allocation8 + $0x8c8] sm:$0xff] }
 0x3ef   :  { %4146 = vmatpush1.bf16.msra.mxu1 %v4145_v25  ;;  %v1101_v25 = vld [vmem:[#allocation8 + $0x840] sm:$0xff] }
 0x3f0   :  { %4148 = vmatprep.subr.bf16.mxu1 %v4147_v26  ;;  %v1102_v26 = vld [vmem:[#allocation8 + $0x850] sm:$0xff] }
 0x3f1   :  { %v4186_v27 = vpack.c.bf16 %v1102_v26, %v1101_v25 }
 0x3f3   :  { %4150 = vmatpush1.bf16.msra.mxu1 %v4149_v35  ;;  %v1104_v35 = vld [vmem:[#allocation8 + $0x870] sm:$0xff] }
 0x3f4   :  { %4152 = vmatprep.subr.bf16.mxu1 %v4151_v47  ;;  %v1110_v47 = vld [vmem:[#allocation8 + $0x8d0] sm:$0xff] }
 0x3f5   :  { %v4198_v48 = vpack.c.bf16 %v1110_v47, %v1109_v46  ;;  %v1283_v46 = vld [vmem:[#allocation8 + $0x128] sm:$0xff]  ;;  %v1285_v47 = vld [vmem:[#allocation8 + $0x138] sm:$0xff] }
 0x3f7   :  { %4154 = vmatpush1.bf16.msra.mxu1 %v4153_v50  ;;  %v923_v50 = vrot.slane %v918_v49, %v5019_v38 }
 0x3f8   :  { %4179 = vmatprep.subr.bf16.mxu1 %v4841_v0 }
 0x4ad   :  { %v787_v39 = vpop.f32.mrb[6].mxu1 }
 0x4ae   :  { %v788_v40 = vadd.f32 %v787_v39, %v720_v36  ;;  %v3448_v41 = vpop.f32.mrb[7].mxu1  ;;  %v4189_v36 = vpack.c.bf16 %v1104_v35, %v1103_v33  ;;  %v1105_v39 = vld [vmem:[#allocation8 + $0x880] sm:$0xff] }
 0x4b0   :  { %vm791_vm7 = vcmp.ge.f32.partialorder %v788_v40, 0.0  ;;  %v792_v42 = vmul.f32 0.01, %v788_v40 }
 0x4b2   :  { %v793_v44 = vsel %vm791_vm7, %v788_v40, %v792_v42  ;;  %v1106_v40 = vld [vmem:[#allocation8 + $0x890] sm:$0xff]  ;;  %v1107_v42 = vld [vmem:[#allocation8 + $0x8a0] sm:$0xff] }
 0x4b3   :  { %3482 = vmatmul.mubr.f32.vlgmr.msra.gmra.mrb[8].mxu0 %v793_v44  ;;  %v4192_v41 = vpack.c.bf16 %v1106_v40, %v1105_v39  ;;  %v1108_v44 = vld [vmem:[#allocation8 + $0x8b0] sm:$0xff]  ;;  %v1202_v39 = vld [vmem:[#allocation8 + $0x8f8] sm:$0xff] }
 0x4b4   :  { %3516 = vmatprep.mubr.msk.f32.mxu0 %vm4842_vm0, %v4843_v1  ;;  %4157 = vmatpush3.bf16.msra.mxu0 %v4156_v59  ;;  %v4195_v45 = vpack.c.bf16 %v1108_v44, %v1107_v42  ;;  %v1281_v42 = vld [vmem:[#allocation8 + $0x118] sm:$0xff]  ;;  %v1278_v44 = vld [vmem:[#allocation8 + $0x100] sm:$0xff] }
 0x4b5   :  { %4158 = vmatprep.subr.bf16.mxu0 %v4841_v0 }
 0x4b8   :  { %4160 = vmatpush3.bf16.msra.mxu0 %v4159_v62  ;;  %v1111_v62 = vld [vmem:[#allocation8 + $0x8e0] sm:$0xff] }
 0x4b9   :  { %4161 = vmatprep.subr.bf16.mxu0 %v4841_v0  ;;  %v4201_v2 = vpack.c.bf16 %v1112_v63, %v1111_v62  ;;  %v1293_v62 = vld [vmem:[#allocation8 + $0x178] sm:$0xff] }
 0x4bc   :  { %4163 = vmatpush3.bf16.msra.mxu0 %v4162_v3  ;;  %v1187_v3 = vld [vmem:[#allocation8 + $0x808] sm:$0xff] }
 0x4bd   :  { %4164 = vmatprep.subr.bf16.mxu0 %v4841_v0 }
 0x4c0   :  { %4166 = vmatpush3.bf16.msra.mxu0 %v4165_v6  ;;  %v4204_v6 = vpack.c.bf16 %v1188_v4, %v1187_v3  ;;  %v1290_v3 = vld [vmem:[#allocation8 + $0x160] sm:$0xff]  ;;  %v1292_v4 = vld [vmem:[#allocation8 + $0x170] sm:$0xff] }
 0x4c1   :  { %4167 = vmatprep.subr.bf16.mxu0 %v4841_v0  ;;  %v4241_v7 = vpack.c.bf16 %v1292_v4, %v1290_v3  ;;  %v1417_v3 = vld [vmem:[#allocation8 + $0x990] sm:$0xff] }
 0x4c4   :  { %4169 = vmatpush3.bf16.msra.mxu0 %v4168_v9  ;;  %v1192_v9 = vld [vmem:[#allocation8 + $0x858] sm:$0xff] }
 0x4c5   :  { %4170 = vmatprep.subr.bf16.mxu0 %v4841_v0 }
 0x4c8   :  { %4172 = vmatpush3.bf16.msra.mxu0 %v4171_v12  ;;  %v1194_v12 = vld [vmem:[#allocation8 + $0x878] sm:$0xff] }
 0x4c9   :  { %4173 = vmatprep.subr.bf16.mxu0 %v4841_v0  ;;  %v4213_v13 = vpack.c.bf16 %v1194_v12, %v1193_v11  ;;  %v1301_v11 = vld [vmem:[#allocation8 + $0x1b8] sm:$0xff] }
 0x4cc   :  { %4175 = vmatpush3.bf16.msra.mxu0 %v4174_v15  ;;  %v1196_v15 = vld [vmem:[#allocation8 + $0x898] sm:$0xff] }
 0x4cd   :  { %4176 = vmatprep.subr.bf16.mxu0 %v4841_v0  ;;  %v4216_v16 = vpack.c.bf16 %v1196_v15, %v1195_v14  ;;  %v1298_v14 = vld [vmem:[#allocation8 + $0x1a0] sm:$0xff]  ;;  %v1300_v15 = vld [vmem:[#allocation8 + $0x1b0] sm:$0xff] }
 0x4d0   :  { %4178 = vmatpush3.bf16.msra.mxu0 %v4177_v18  ;;  %v1198_v18 = vld [vmem:[#allocation8 + $0x8b8] sm:$0xff] }
 0x4d1   :  { %4203 = vmatprep.subr.bf16.mxu0 %v4841_v0  ;;  %v4219_v19 = vpack.c.bf16 %v1198_v18, %v1197_v17  ;;  %v1305_v17 = vld [vmem:[#allocation8 + $0x1d8] sm:$0xff]  ;;  %v4249_v18 = vpack.c.bf16 %v1300_v15, %v1298_v14  ;;  %v1499_v15 = vld [vmem:[#allocation8 + $0x928] sm:$0xff] }
 0x4d2   :  { %v1498_v14 = vld [vmem:[#allocation8 + $0x918] sm:$0xff] }
 0x586   :  { %v878_v52 = vpop.f32.mrb[8].mxu0 }
 0x587   :  { %v879_v53 = vadd.f32 %v878_v52, %v811_v51  ;;  %v3483_v54 = vpop.f32.mrb[9].mxu0 }
 0x589   :  { %vm882_vm8 = vcmp.ge.f32.partialorder %v879_v53, 0.0  ;;  %v883_v55 = vmul.f32 0.01, %v879_v53 }
 0x58b   :  { %v884_v56 = vsel %vm882_vm8, %v879_v53, %v883_v55 }
 0x58c   :  { %995 = vmatmul.mubr.f32.vlgmr.msra.gmra.mrb[8].mxu1 %v884_v56  ;;  %v5050_v56 = vsub.s32 1, %v5014_v34 }
 0x58d   :  { %3551 = vmatprep.mubr.msk.f32.mxu1 %vm4842_vm0, %v4843_v1  ;;  %4181 = vmatpush3.bf16.msra.mxu1 %v4180_v22  ;;  %v4222_v22 = vpack.c.bf16 %v1200_v21, %v1199_v20  ;;  %v1302_v20 = vld [vmem:[#allocation8 + $0x1c0] sm:$0xff]  ;;  %v1304_v21 = vld [vmem:[#allocation8 + $0x1d0] sm:$0xff] }
 0x58e   :  { %4182 = vmatprep.subr.bf16.mxu1 %v4841_v0  ;;  %v927_v57 = vrot.slane %v918_v49, %v5050_v56  ;;  %v368_v23 = vrot.slane %v5016_v37, %v5050_v56  ;;  %v4231_v49 = vpack.c.bf16 %v1285_v47, %v1283_v46 }
 0x591   :  { %4184 = vmatpush3.bf16.msra.mxu1 %v4183_v24  ;;  %v463_v24 = vadd.f32 %v5006_v29, %v368_v23  ;;  %v1280_v29 = vld [vmem:[#allocation8 + $0x110] sm:$0xff]  ;;  %v1113_v23 = vld [vmem:[#allocation9 + $0x3] ss:$0 sm:$0xff] }
 0x592   :  { %4185 = vmatprep.subr.bf16.mxu1 %v4841_v0 }
 0x595   :  { %4187 = vmatpush3.bf16.msra.mxu1 %v4186_v27 }
 0x596   :  { %4188 = vmatprep.subr.bf16.mxu1 %v4841_v0 }
 0x599   :  { %4190 = vmatpush3.bf16.msra.mxu1 %v4189_v36  ;;  %v1201_v36 = vld [vmem:[#allocation8 + $0x8e8] sm:$0xff] }
 0x59a   :  { %4191 = vmatprep.subr.bf16.mxu1 %v4841_v0  ;;  %v4225_v40 = vpack.c.bf16 %v1202_v39, %v1201_v36  ;;  %v1309_v36 = vld [vmem:[#allocation8 + $0x1f8] sm:$0xff] }
 0x59d   :  { %4193 = vmatpush3.bf16.msra.mxu1 %v4192_v41  ;;  %v1279_v41 = vld [vmem:[#allocation8 + $0x108] sm:$0xff] }
 0x59e   :  { %4194 = vmatprep.subr.bf16.mxu1 %v4841_v0 }
 0x5a1   :  { %4196 = vmatpush3.bf16.msra.mxu1 %v4195_v45  ;;  %v4227_v45 = vpack.c.bf16 %v1281_v42, %v1279_v41  ;;  %v1308_v41 = vld [vmem:[#allocation8 + $0x1f0] sm:$0xff] }
 0x5a2   :  { %4197 = vmatprep.subr.bf16.mxu1 %v4841_v0 }
 0x5a5   :  { %4199 = vmatpush3.bf16.msra.mxu1 %v4198_v48  ;;  %v4229_v48 = vpack.c.bf16 %v1280_v29, %v1278_v44  ;;  %v1203_v44 = vld [vmem:[#allocation9 + $0x4] ss:$0 sm:$0xff] }
 0x5a6   :  { %4200 = vmatprep.subr.bf16.mxu1 %v4841_v0 }
 0x5a9   :  { %4202 = vmatpush3.bf16.msra.mxu1 %v4201_v2 }
 0x5aa   :  { %4228 = vmatprep.subr.bf16.mxu1 %v4227_v45 }
 0x65f   :  { %v996_v51 = vpop.f32.mrb[8].mxu1 }
 0x660   :  { %v997_v52 = vadd.f32 %v996_v51, %v923_v50  ;;  %v998_v53 = vpop.f32.mrb[9].mxu1  ;;  %v1282_v50 = vld [vmem:[#allocation8 + $0x120] sm:$0xff]  ;;  %v1284_v51 = vld [vmem:[#allocation8 + $0x130] sm:$0xff] }
 0x661   :  { %v999_v59 = vadd.f32 %v998_v53, %v927_v57  ;;  %v1289_v53 = vld [vmem:[#allocation8 + $0x158] sm:$0xff] }
 0x662   :  { %4689 = vtanh.f32 %v997_v52  ;;  %v1287_v52 = vld [vmem:[#allocation8 + $0x148] sm:$0xff] }
 0x663   :  { %v4235_v57 = vpack.c.bf16 %v1289_v53, %v1287_v52  ;;  %v1410_v52 = vld [vmem:[#allocation8 + $0x920] sm:$0xff]  ;;  %v1411_v53 = vld [vmem:[#allocation8 + $0x930] sm:$0xff] }
 0x66c   :  { %v5046_v54 = vpop.eup %4689 }
 0x66d   :  { %v1002_v55 = vmul.f32 1.442695, %v5046_v54 }
 0x66f   :  { %4691 = vpow2.f32 %v1002_v55  ;;  %v4233_v55 = vpack.c.bf16 %v1284_v51, %v1282_v50  ;;  %v1409_v50 = vld [vmem:[#allocation8 + $0x910] sm:$0xff] }
 0x679   :  { %v4692_v58 = vpop.eup %4691 }
 0x67a   :  { %v1004_v60 = vmul.f32 %v4692_v58, %v4984_v43  ;;  %v1191_v43 = vld [vmem:[#allocation8 + $0x848] sm:$0xff]  ;;  %v1286_v58 = vld [vmem:[#allocation8 + $0x140] sm:$0xff] }
 0x67b   :  { %v4210_v10 = vpack.c.bf16 %v1192_v9, %v1191_v43  ;;  %v1294_v43 = vld [vmem:[#allocation8 + $0x180] sm:$0xff]  ;;  %v1296_v9 = vld [vmem:[#allocation8 + $0x190] sm:$0xff] }
 0x67c   :  { %v5054_v61 = vadd.f32 %v1004_v60, %v999_v59  ;;  %v1288_v59 = vld [vmem:[#allocation8 + $0x150] sm:$0xff]  ;;  %v1291_v60 = vld [vmem:[#allocation8 + $0x168] sm:$0xff]  ;;  %v4245_v12 = vpack.c.bf16 %v1296_v9, %v1294_v43 }
 0x67d   :  { %v4237_v63 = vpack.c.bf16 %v1288_v59, %v1286_v58  ;;  %v4239_v2 = vpack.c.bf16 %v1293_v62, %v1291_v60  ;;  %v1413_v58 = vld [vmem:[#allocation8 + $0x950] sm:$0xff]  ;;  %v1414_v60 = vld [vmem:[#allocation8 + $0x960] sm:$0xff] }
 0x67e   :  { %3517 = vmatmul.mubr.f32.vlgmr.msra.gmra.mrb[10].mxu0 %v5054_v61  ;;  %v1415_v62 = vld [vmem:[#allocation8 + $0x970] sm:$0xff] }
 0x67f   :  { %3586 = vmatprep.mubr.msk.f32.mxu0 %vm4842_vm0, %v4843_v1  ;;  %4205 = vmatpush3.bf16.msra.mxu0 %v4204_v6  ;;  %v1297_v6 = vld [vmem:[#allocation8 + $0x198] sm:$0xff]  ;;  %v1421_v43 = vld [vmem:[#allocation8 + $0x9d0] sm:$0xff] }
 0x680   :  { %4206 = vmatprep.subr.bf16.mxu0 %v4841_v0 }
 0x683   :  { %4208 = vmatpush3.bf16.msra.mxu0 %v4207_v8  ;;  %v4243_v8 = vpack.c.bf16 %v1297_v6, %v1295_v5  ;;  %v1418_v5 = vld [vmem:[#allocation8 + $0x9a0] sm:$0xff]  ;;  %v1419_v6 = vld [vmem:[#allocation8 + $0x9b0] sm:$0xff] }
 0x684   :  { %4209 = vmatprep.subr.bf16.mxu0 %v4841_v0 }
 0x687   :  { %4211 = vmatpush3.bf16.msra.mxu0 %v4210_v10  ;;  %v1299_v10 = vld [vmem:[#allocation8 + $0x1a8] sm:$0xff] }
 0x688   :  { %4212 = vmatprep.subr.bf16.mxu0 %v4841_v0 }
 0x68b   :  { %4214 = vmatpush3.bf16.msra.mxu0 %v4213_v13  ;;  %v4247_v13 = vpack.c.bf16 %v1301_v11, %v1299_v10  ;;  %v1422_v10 = vld [vmem:[#allocation8 + $0x9e0] sm:$0xff]  ;;  %v1423_v11 = vld [vmem:[#allocation8 + $0x9f0] sm:$0xff] }
 0x68c   :  { %4215 = vmatprep.subr.bf16.mxu0 %v4841_v0 }
 0x68f   :  { %4217 = vmatpush3.bf16.msra.mxu0 %v4216_v16  ;;  %v1303_v16 = vld [vmem:[#allocation8 + $0x1c8] sm:$0xff] }
 0x690   :  { %4218 = vmatprep.subr.bf16.mxu0 %v4841_v0 }
 0x693   :  { %4220 = vmatpush3.bf16.msra.mxu0 %v4219_v19  ;;  %v4251_v19 = vpack.c.bf16 %v1305_v17, %v1303_v16  ;;  %v1500_v17 = vld [vmem:[#allocation8 + $0x938] sm:$0xff] }
 0x694   :  { %4221 = vmatprep.subr.bf16.mxu0 %v4841_v0 }
 0x697   :  { %4223 = vmatpush3.bf16.msra.mxu0 %v4222_v22  ;;  %v4253_v22 = vpack.c.bf16 %v1304_v21, %v1302_v20  ;;  %v1502_v20 = vld [vmem:[#allocation8 + $0x958] sm:$0xff] }
 0x698   :  { %4224 = vmatprep.subr.bf16.mxu0 %v4841_v0 }
 0x69b   :  { %4226 = vmatpush3.bf16.msra.mxu0 %v4225_v40  ;;  %v1306_v40 = vld [vmem:[#allocation8 + $0x1e0] sm:$0xff] }
 0x69c   :  { %4259 = vmatprep.subr.bf16.mxu0 %v4841_v0  ;;  %v4257_v42 = vpack.c.bf16 %v1308_v41, %v1306_v40  ;;  %v1510_v40 = vld [vmem:[#allocation8 + $0x9d8] sm:$0xff] }
 0x751   :  { %v1089_v25 = vpop.f32.mrb[10].mxu0 }
 0x752   :  { %v1090_v26 = vadd.f32 %v1089_v25, %v463_v24  ;;  %v3518_v27 = vpop.f32.mrb[11].mxu0 }
 0x754   :  { %vm1093_vm9 = vcmp.ge.f32.partialorder %v1090_v26, 0.0  ;;  %v1094_v33 = vmul.f32 0.01, %v1090_v26 }
 0x756   :  { %v1095_v35 = vsel %vm1093_vm9, %v1090_v26, %v1094_v33 }
 0x757   :  { %3552 = vmatmul.mubr.f32.vlgmr.msra.gmra.mrb[10].mxu1 %v1095_v35  ;;  %v1307_v35 = vld [vmem:[#allocation8 + $0x1e8] sm:$0xff] }
 0x758   :  { %1387 = vmatprep.mubr.f32.mxu1 %v4843_v1  ;;  %4230 = vmatpush1.bf16.msra.mxu1 %v4229_v48  ;;  %v4255_v39 = vpack.c.bf16 %v1309_v36, %v1307_v35  ;;  %v1508_v35 = vld [vmem:[#allocation8 + $0x9b8] sm:$0xff] }
 0x759   :  { %4232 = vmatprep.subr.bf16.mxu1 %v4231_v49  ;;  %v1408_v49 = vld [vmem:[#allocation8 + $0x900] sm:$0xff] }
 0x75a   :  { %v4260_v51 = vpack.c.bf16 %v1409_v50, %v1408_v49 }
 0x75c   :  { %4234 = vmatpush1.bf16.msra.mxu1 %v4233_v55  ;;  %v4263_v55 = vpack.c.bf16 %v1411_v53, %v1410_v52  ;;  %v1400_v53 = vld [vmem:[#allocation9 + $0x64] ss:$0 sm:$0xff] }
 0x75d   :  { %4236 = vmatprep.subr.bf16.mxu1 %v4235_v57  ;;  %v1412_v57 = vld [vmem:[#allocation8 + $0x940] sm:$0xff] }
 0x75e   :  { %v4266_v59 = vpack.c.bf16 %v1413_v58, %v1412_v57  ;;  %v1401_v57 = vld [vmem:[#allocation9 + $0x67] ss:$0 sm:$0xff] }
 0x760   :  { %4238 = vmatpush1.bf16.msra.mxu1 %v4237_v63  ;;  %v4269_v63 = vpack.c.bf16 %v1415_v62, %v1414_v60 }
 0x761   :  { %4240 = vmatprep.subr.bf16.mxu1 %v4239_v2  ;;  %v1416_v2 = vld [vmem:[#allocation8 + $0x980] sm:$0xff] }
 0x762   :  { %v4272_v4 = vpack.c.bf16 %v1417_v3, %v1416_v2  ;;  %v1512_v2 = vld [vmem:[#allocation8 + $0x9f8] sm:$0xff] }
 0x764   :  { %4242 = vmatpush1.bf16.msra.mxu1 %v4241_v7  ;;  %v4275_v7 = vpack.c.bf16 %v1419_v6, %v1418_v5  ;;  %v1590_v5 = vld [vmem:[#allocation8 + $0xa20] sm:$0xff] }
 0x765   :  { %4244 = vmatprep.subr.bf16.mxu1 %v4243_v8  ;;  %v1420_v8 = vld [vmem:[#allocation8 + $0x9c0] sm:$0xff] }
 0x766   :  { %v4278_v9 = vpack.c.bf16 %v1421_v43, %v1420_v8  ;;  %v1592_v43 = vld [vmem:[#allocation8 + $0xa40] sm:$0xff] }
 0x768   :  { %4246 = vmatpush1.bf16.msra.mxu1 %v4245_v12  ;;  %v4281_v12 = vpack.c.bf16 %v1423_v11, %v1422_v10  ;;  %v1594_v11 = vld [vmem:[#allocation8 + $0xa60] sm:$0xff] }
 0x769   :  { %4248 = vmatprep.subr.bf16.mxu1 %v4247_v13  ;;  %v1497_v13 = vld [vmem:[#allocation8 + $0x908] sm:$0xff] }
 0x76a   :  { %v4284_v16 = vpack.c.bf16 %v1498_v14, %v1497_v13  ;;  %v1596_v14 = vld [vmem:[#allocation8 + $0xa80] sm:$0xff] }
 0x76c   :  { %4250 = vmatpush1.bf16.msra.mxu1 %v4249_v18  ;;  %v4287_v18 = vpack.c.bf16 %v1500_v17, %v1499_v15  ;;  %v1597_v15 = vld [vmem:[#allocation8 + $0xa90] sm:$0xff]  ;;  %v1598_v17 = vld [vmem:[#allocation8 + $0xaa0] sm:$0xff] }
 0x76d   :  { %4252 = vmatprep.subr.bf16.mxu1 %v4251_v19  ;;  %v1501_v19 = vld [vmem:[#allocation8 + $0x948] sm:$0xff] }
 0x76e   :  { %v4290_v21 = vpack.c.bf16 %v1502_v20, %v1501_v19  ;;  %v1600_v20 = vld [vmem:[#allocation8 + $0xac0] sm:$0xff] }
 0x770   :  { %4254 = vmatpush1.bf16.msra.mxu1 %v4253_v22  ;;  %v1503_v22 = vld [vmem:[#allocation8 + $0x968] sm:$0xff] }
 0x771   :  { %4256 = vmatprep.subr.bf16.mxu1 %v4255_v39  ;;  %v1509_v39 = vld [vmem:[#allocation8 + $0x9c8] sm:$0xff] }
 0x772   :  { %v4302_v41 = vpack.c.bf16 %v1510_v40, %v1509_v39  ;;  %v1602_v39 = vld [vmem:[#allocation8 + $0xae0] sm:$0xff]  ;;  %v1603_v40 = vld [vmem:[#allocation8 + $0xaf0] sm:$0xff] }
 0x774   :  { %4258 = vmatpush1.bf16.msra.mxu1 %v4257_v42  ;;  %v1311_v42 = vld [vmem:[#allocation9 + $0x36] ss:$8 sm:$0x3] }
 0x775   :  { %4283 = vmatprep.subr.bf16.mxu1 %v4841_v0  ;;  %v1320_v49 = vrot.slane %v1311_v42, %v5050_v56 }
 0x82a   :  { %v1180_v24 = vpop.f32.mrb[10].mxu1 }
 0x82b   :  { %v1181_v25 = vadd.f32 %v1180_v24, %v1113_v23  ;;  %v3553_v26 = vpop.f32.mrb[11].mxu1  ;;  %v1504_v23 = vld [vmem:[#allocation8 + $0x978] sm:$0xff] }
 0x82c   :  { %v4293_v24 = vpack.c.bf16 %v1504_v23, %v1503_v22  ;;  %v1506_v26 = vld [vmem:[#allocation8 + $0x998] sm:$0xff]  ;;  %v371_v23 = vsub.s32 2, %v5014_v34 }
 0x82d   :  { %vm1184_vm10 = vcmp.ge.f32.partialorder %v1181_v25, 0.0  ;;  %v1185_v27 = vmul.f32 0.01, %v1181_v25 }
 0x82f   :  { %v1186_v33 = vsel %vm1184_vm10, %v1181_v25, %v1185_v27  ;;  %v1505_v25 = vld [vmem:[#allocation8 + $0x988] sm:$0xff]  ;;  %vm2989_vm10 = vcmask 1043456  }
 0x830   :  { %3587 = vmatmul.mubr.f32.vlgmr.msra.gmra.mrb[12].mxu0 %v1186_v33  ;;  %v4296_v27 = vpack.c.bf16 %v1506_v26, %v1505_v25  ;;  %v1507_v33 = vld [vmem:[#allocation8 + $0x9a8] sm:$0xff] }
 0x831   :  { %3621 = vmatprep.mubr.msk.f32.mxu0 %vm4842_vm0, %v4843_v1  ;;  %4261 = vmatpush3.bf16.msra.mxu0 %v4260_v51  ;;  %v4299_v36 = vpack.c.bf16 %v1508_v35, %v1507_v33 }
 0x832   :  { %4262 = vmatprep.subr.bf16.mxu0 %v4841_v0 }
 0x835   :  { %4264 = vmatpush3.bf16.msra.mxu0 %v4263_v55 }
 0x836   :  { %4265 = vmatprep.subr.bf16.mxu0 %v4841_v0 }
 0x839   :  { %4267 = vmatpush3.bf16.msra.mxu0 %v4266_v59 }
 0x83a   :  { %4268 = vmatprep.subr.bf16.mxu0 %v4841_v0 }
 0x83d   :  { %4270 = vmatpush3.bf16.msra.mxu0 %v4269_v63  ;;  %v1511_v63 = vld [vmem:[#allocation8 + $0x9e8] sm:$0xff] }
 0x83e   :  { %4271 = vmatprep.subr.bf16.mxu0 %v4841_v0  ;;  %v4305_v3 = vpack.c.bf16 %v1512_v2, %v1511_v63  ;;  %v1692_v63 = vld [vmem:[#allocation8 + $0x268] sm:$0xff]  ;;  %v1694_v2 = vld [vmem:[#allocation8 + $0x278] sm:$0xff] }
 0x841   :  { %4273 = vmatpush3.bf16.msra.mxu0 %v4272_v4  ;;  %v1588_v4 = vld [vmem:[#allocation8 + $0xa00] sm:$0xff] }
 0x842   :  { %4274 = vmatprep.subr.bf16.mxu0 %v4841_v0 }
 0x845   :  { %4276 = vmatpush3.bf16.msra.mxu0 %v4275_v7  ;;  %v1591_v7 = vld [vmem:[#allocation8 + $0xa30] sm:$0xff] }
 0x846   :  { %4277 = vmatprep.subr.bf16.mxu0 %v4841_v0  ;;  %v4311_v8 = vpack.c.bf16 %v1591_v7, %v1590_v5  ;;  %v1693_v5 = vld [vmem:[#allocation8 + $0x270] sm:$0xff]  ;;  %v1698_v7 = vld [vmem:[#allocation8 + $0x298] sm:$0xff] }
 0x849   :  { %4279 = vmatpush3.bf16.msra.mxu0 %v4278_v9  ;;  %v1593_v9 = vld [vmem:[#allocation8 + $0xa50] sm:$0xff] }
 0x84a   :  { %4280 = vmatprep.subr.bf16.mxu0 %v4841_v0  ;;  %v4314_v10 = vpack.c.bf16 %v1593_v9, %v1592_v43  ;;  %v1695_v9 = vld [vmem:[#allocation8 + $0x280] sm:$0xff] }
 0x84d   :  { %4282 = vmatpush3.bf16.msra.mxu0 %v4281_v12  ;;  %v1595_v12 = vld [vmem:[#allocation8 + $0xa70] sm:$0xff] }
 0x84e   :  { %4307 = vmatprep.subr.bf16.mxu0 %v4841_v0  ;;  %v4317_v13 = vpack.c.bf16 %v1595_v12, %v1594_v11  ;;  %v1700_v11 = vld [vmem:[#allocation8 + $0x2a8] sm:$0xff]  ;;  %v1702_v12 = vld [vmem:[#allocation8 + $0x2b8] sm:$0xff] }
 0x903   :  { %v1270_v45 = vpop.f32.mrb[12].mxu0 }
 0x904   :  { %v1271_v29 = vadd.f32 %v1270_v45, %v1203_v44  ;;  %v3588_v46 = vpop.f32.mrb[13].mxu0  ;;  %v1316_v44 = vrot.slane %v1311_v42, %v5019_v38  ;;  %v1680_v42 = vld [vmem:[#allocation8 + $0x208] sm:$0xff] }
 0x906   :  { %vm1274_vm11 = vcmp.ge.f32.partialorder %v1271_v29, 0.0  ;;  %v1275_v47 = vmul.f32 0.01, %v1271_v29 }
 0x908   :  { %v1276_v48 = vsel %vm1274_vm11, %v1271_v29, %v1275_v47 }
 0x909   :  { %1388 = vmatmul.mubr.f32.vlgmr.msra.gmra.mrb[12].mxu1 %v1276_v48 }
 0x90a   :  { %3656 = vmatprep.mubr.msk.f32.mxu1 %vm4842_vm0, %v4843_v1  ;;  %4285 = vmatpush3.bf16.msra.mxu1 %v4284_v16  ;;  %v4320_v16 = vpack.c.bf16 %v1597_v15, %v1596_v14  ;;  %v4351_v14 = vpack.c.bf16 %v1702_v12, %v1700_v11  ;;  %v1699_v15 = vld [vmem:[#allocation8 + $0x2a0] sm:$0xff]  ;;  %v1815_v11 = vld [vmem:[#allocation8 + $0xae8] sm:$0xff]  ;;  %v1816_v12 = vld [vmem:[#allocation8 + $0xaf8] sm:$0xff] }
 0x90b   :  { %4286 = vmatprep.subr.bf16.mxu1 %v4841_v0 }
 0x90e   :  { %4288 = vmatpush3.bf16.msra.mxu1 %v4287_v18  ;;  %v1599_v18 = vld [vmem:[#allocation8 + $0xab0] sm:$0xff] }
 0x90f   :  { %4289 = vmatprep.subr.bf16.mxu1 %v4841_v0  ;;  %v4323_v19 = vpack.c.bf16 %v1599_v18, %v1598_v17  ;;  %v1704_v17 = vld [vmem:[#allocation8 + $0x2c8] sm:$0xff]  ;;  %v1706_v18 = vld [vmem:[#allocation8 + $0x2d8] sm:$0xff] }
 0x912   :  { %4291 = vmatpush3.bf16.msra.mxu1 %v4290_v21  ;;  %v1601_v21 = vld [vmem:[#allocation8 + $0xad0] sm:$0xff] }
 0x913   :  { %4292 = vmatprep.subr.bf16.mxu1 %v4841_v0  ;;  %v4326_v22 = vpack.c.bf16 %v1601_v21, %v1600_v20  ;;  %v4355_v20 = vpack.c.bf16 %v1706_v18, %v1704_v17  ;;  %v1703_v21 = vld [vmem:[#allocation8 + $0x2c0] sm:$0xff]  ;;  %v1894_v18 = vld [vmem:[#allocation8 + $0xb30] sm:$0xff] }
 0x916   :  { %4294 = vmatpush3.bf16.msra.mxu1 %v4293_v24  ;;  %v372_v24 = vrot.slane %v5016_v37, %v371_v23 }
 0x917   :  { %4295 = vmatprep.subr.bf16.mxu1 %v4841_v0 }
 0x918   :  { %v532_v25 = vadd.f32 %v5004_v28, %v372_v24  ;;  %v1681_v28 = vld [vmem:[#allocation8 + $0x210] sm:$0xff]  ;;  %v1513_v24 = vld [vmem:[#allocation9 + $0x5] ss:$0 sm:$0xff] }
 0x91a   :  { %4297 = vmatpush3.bf16.msra.mxu1 %v4296_v27 }
 0x91b   :  { %4298 = vmatprep.subr.bf16.mxu1 %v4841_v0 }
 0x91e   :  { %4300 = vmatpush3.bf16.msra.mxu1 %v4299_v36 }
 0x91f   :  { %4301 = vmatprep.subr.bf16.mxu1 %v4841_v0 }
 0x922   :  { %4303 = vmatpush3.bf16.msra.mxu1 %v4302_v41  ;;  %v4329_v41 = vpack.c.bf16 %v1603_v40, %v1602_v39  ;;  %v1710_v39 = vld [vmem:[#allocation8 + $0x2f8] sm:$0xff] }
 0x923   :  { %4304 = vmatprep.subr.bf16.mxu1 %v4841_v0 }
 0x926   :  { %4306 = vmatpush3.bf16.msra.mxu1 %v4305_v3 }
 0x9dc   :  { %v1389_v45 = vpop.f32.mrb[12].mxu1 }
 0x9dd   :  { %v1390_v29 = vadd.f32 %v1389_v45, %v1316_v44  ;;  %v1391_v46 = vpop.f32.mrb[13].mxu1  ;;  %v1682_v44 = vld [vmem:[#allocation8 + $0x218] sm:$0xff]  ;;  %v1679_v45 = vld [vmem:[#allocation8 + $0x200] sm:$0xff] }
 0x9de   :  { %v1392_v51 = vadd.f32 %v1391_v46, %v1320_v49  ;;  %v1684_v46 = vld [vmem:[#allocation8 + $0x228] sm:$0xff]  ;;  %v4333_v49 = vpack.c.bf16 %v1681_v28, %v1679_v45  ;;  %v1604_v45 = vld [vmem:[#allocation9 + $0x6] ss:$0 sm:$0xff] }
 0x9df   :  { %4693 = vtanh.f32 %v1390_v29  ;;  %v4331_v29 = vpack.c.bf16 %v1682_v44, %v1680_v42  ;;  %v1709_v42 = vld [vmem:[#allocation8 + $0x2f0] sm:$0xff] }
 0x9e1   :  { %4332 = vmatprep.subr.bf16.mxu1 %v4331_v29 }
 0x9e9   :  { %v5092_v47 = vpop.eup %4693 }
 0x9ea   :  { %v1395_v48 = vmul.f32 1.442695, %v5092_v47 }
 0x9ec   :  { %4695 = vpow2.f32 %v1395_v48  ;;  %v1686_v48 = vld [vmem:[#allocation8 + $0x238] sm:$0xff] }
 0x9f6   :  { %v4696_v50 = vpop.eup %4695 }
 0x9f7   :  { %v1397_v52 = vmul.f32 %v4696_v50, %v5054_v61  ;;  %v1589_v61 = vld [vmem:[#allocation8 + $0xa10] sm:$0xff]  ;;  %v4335_v50 = vpack.c.bf16 %v1686_v48, %v1684_v46 }
 0x9f8   :  { %v4308_v6 = vpack.c.bf16 %v1589_v61, %v1588_v4  ;;  %v4343_v4 = vpack.c.bf16 %v1694_v2, %v1692_v63  ;;  %v1691_v61 = vld [vmem:[#allocation8 + $0x260] sm:$0xff]  ;;  %v1807_v63 = vld [vmem:[#allocation8 + $0xa68] sm:$0xff]  ;;  %v1808_v2 = vld [vmem:[#allocation8 + $0xa78] sm:$0xff] }
 0x9f9   :  { %v1398_v55 = vadd.f32 %v1397_v52, %v1392_v51  ;;  %v1683_v51 = vld [vmem:[#allocation8 + $0x220] sm:$0xff]  ;;  %v1685_v52 = vld [vmem:[#allocation8 + $0x230] sm:$0xff] }
 0x9fb   :  { %v1402_v58 = vmul.f32 %v1400_v53, %v1398_v55  ;;  %v1688_v53 = vld [vmem:[#allocation8 + $0x248] sm:$0xff]  ;;  %v1690_v55 = vld [vmem:[#allocation8 + $0x258] sm:$0xff] }
 0x9fd   :  { %v1403_v59 = vadd.f32 %v1402_v58, %v1401_v57  ;;  %v4337_v57 = vpack.c.bf16 %v1685_v52, %v1683_v51  ;;  %v4339_v58 = vpack.c.bf16 %v1690_v55, %v1688_v53  ;;  %v1802_v51 = vld [vmem:[#allocation8 + $0xa18] sm:$0xff]  ;;  %v1803_v53 = vld [vmem:[#allocation8 + $0xa28] sm:$0xff] }
 0x9fe   :  { %v1804_v55 = vld [vmem:[#allocation8 + $0xa38] sm:$0xff] }
 0x9ff   :  { %vm1404_vm12 = vcmp.ge.f32.partialorder %v1403_v59, 0.0  ;;  %v1405_v60 = vmul.f32 0.9, %v1403_v59 }
 0xa01   :  { %v5097_v62 = vsel %vm1404_vm12, %v1403_v59, %v1405_v60  ;;  %v1687_v59 = vld [vmem:[#allocation8 + $0x240] sm:$0xff]  ;;  %v1689_v60 = vld [vmem:[#allocation8 + $0x250] sm:$0xff] }
 0xa02   :  { %3622 = vmatmul.mubr.f32.vlgmr.msra.gmra.mrb[14].mxu0 %v5097_v62  ;;  %v4341_v3 = vpack.c.bf16 %v1689_v60, %v1687_v59  ;;  %v1806_v59 = vld [vmem:[#allocation8 + $0xa58] sm:$0xff] }
 0xa03   :  { %3691 = vmatprep.mubr.msk.f32.mxu0 %vm4842_vm0, %v4843_v1  ;;  %4309 = vmatpush3.bf16.msra.mxu0 %v4308_v6  ;;  %v1696_v6 = vld [vmem:[#allocation8 + $0x288] sm:$0xff] }
 0xa04   :  { %4310 = vmatprep.subr.bf16.mxu0 %v4841_v0  ;;  %v4347_v43 = vpack.c.bf16 %v1698_v7, %v1696_v6  ;;  %v1811_v6 = vld [vmem:[#allocation8 + $0xaa8] sm:$0xff]  ;;  %v1812_v7 = vld [vmem:[#allocation8 + $0xab8] sm:$0xff] }
 0xa07   :  { %4312 = vmatpush3.bf16.msra.mxu0 %v4311_v8  ;;  %v4345_v8 = vpack.c.bf16 %v1693_v5, %v1691_v61  ;;  %v1810_v61 = vld [vmem:[#allocation8 + $0xa98] sm:$0xff] }
 0xa08   :  { %4313 = vmatprep.subr.bf16.mxu0 %v4841_v0 }
 0xa0b   :  { %4315 = vmatpush3.bf16.msra.mxu0 %v4314_v10  ;;  %v1697_v10 = vld [vmem:[#allocation8 + $0x290] sm:$0xff] }
 0xa0c   :  { %4316 = vmatprep.subr.bf16.mxu0 %v4841_v0 }
 0xa0f   :  { %4318 = vmatpush3.bf16.msra.mxu0 %v4317_v13  ;;  %v4349_v13 = vpack.c.bf16 %v1697_v10, %v1695_v9  ;;  %v1814_v9 = vld [vmem:[#allocation8 + $0xad8] sm:$0xff] }
 0xa10   :  { %4319 = vmatprep.subr.bf16.mxu0 %v4841_v0 }
 0xa13   :  { %4321 = vmatpush3.bf16.msra.mxu0 %v4320_v16  ;;  %v1701_v16 = vld [vmem:[#allocation8 + $0x2b0] sm:$0xff] }
 0xa14   :  { %4322 = vmatprep.subr.bf16.mxu0 %v4841_v0 }
 0xa17   :  { %4324 = vmatpush3.bf16.msra.mxu0 %v4323_v19  ;;  %v4353_v19 = vpack.c.bf16 %v1701_v16, %v1699_v15  ;;  %v1892_v15 = vld [vmem:[#allocation8 + $0xb10] sm:$0xff]  ;;  %v1893_v16 = vld [vmem:[#allocation8 + $0xb20] sm:$0xff] }
 0xa18   :  { %4325 = vmatprep.subr.bf16.mxu0 %v4841_v0 }
 0xa1b   :  { %4327 = vmatpush3.bf16.msra.mxu0 %v4326_v22  ;;  %v1705_v22 = vld [vmem:[#allocation8 + $0x2d0] sm:$0xff] }
 0xa1c   :  { %4328 = vmatprep.subr.bf16.mxu0 %v4841_v0  ;;  %v4357_v23 = vpack.c.bf16 %v1705_v22, %v1703_v21  ;;  %v1896_v21 = vld [vmem:[#allocation8 + $0xb50] sm:$0xff] }
 0xa1f   :  { %4330 = vmatpush3.bf16.msra.mxu0 %v4329_v41  ;;  %v1707_v41 = vld [vmem:[#allocation8 + $0x2e0] sm:$0xff] }
 0xa20   :  { %4363 = vmatprep.subr.bf16.mxu0 %v4841_v0  ;;  %v4361_v44 = vpack.c.bf16 %v1709_v42, %v1707_v41  ;;  %v1904_v41 = vld [vmem:[#allocation8 + $0xbd0] sm:$0xff] }
 0xad5   :  { %v1490_v26 = vpop.f32.mrb[14].mxu0 }
 0xad6   :  { %v1491_v27 = vadd.f32 %v1490_v26, %v532_v25  ;;  %v3623_v33 = vpop.f32.mrb[15].mxu0 }
 0xad8   :  { %vm1494_vm13 = vcmp.ge.f32.partialorder %v1491_v27, 0.0  ;;  %v1495_v35 = vmul.f32 0.01, %v1491_v27 }
 0xada   :  { %v1496_v36 = vsel %vm1494_vm13, %v1491_v27, %v1495_v35 }
 0xadb   :  { %3657 = vmatmul.mubr.f32.vlgmr.msra.gmra.mrb[14].mxu1 %v1496_v36  ;;  %v1708_v36 = vld [vmem:[#allocation8 + $0x2e8] sm:$0xff] }
 0xadc   :  { %1788 = vmatprep.mubr.f32.mxu1 %v4843_v1  ;;  %4334 = vmatpush1.bf16.msra.mxu1 %v4333_v49  ;;  %v4359_v40 = vpack.c.bf16 %v1710_v39, %v1708_v36  ;;  %v1902_v36 = vld [vmem:[#allocation8 + $0xbb0] sm:$0xff] }
 0xadd   :  { %4336 = vmatprep.subr.bf16.mxu1 %v4335_v50  ;;  %v1801_v50 = vld [vmem:[#allocation8 + $0xa08] sm:$0xff] }
 0xade   :  { %v4364_v52 = vpack.c.bf16 %v1802_v51, %v1801_v50 }
 0xae0   :  { %4338 = vmatpush1.bf16.msra.mxu1 %v4337_v57  ;;  %v4367_v57 = vpack.c.bf16 %v1804_v55, %v1803_v53 }
 0xae1   :  { %4340 = vmatprep.subr.bf16.mxu1 %v4339_v58  ;;  %v1805_v58 = vld [vmem:[#allocation8 + $0xa48] sm:$0xff] }
 0xae2   :  { %v4370_v60 = vpack.c.bf16 %v1806_v59, %v1805_v58  ;;  %v1905_v59 = vld [vmem:[#allocation8 + $0xbe0] sm:$0xff] }
 0xae4   :  { %4342 = vmatpush1.bf16.msra.mxu1 %v4341_v3  ;;  %v4373_v3 = vpack.c.bf16 %v1808_v2, %v1807_v63  ;;  %v1982_v63 = vld [vmem:[#allocation8 + $0xb18] sm:$0xff]  ;;  %v1983_v2 = vld [vmem:[#allocation8 + $0xb28] sm:$0xff] }
 0xae5   :  { %4344 = vmatprep.subr.bf16.mxu1 %v4343_v4  ;;  %v1809_v4 = vld [vmem:[#allocation8 + $0xa88] sm:$0xff] }
 0xae6   :  { %v4376_v5 = vpack.c.bf16 %v1810_v61, %v1809_v4  ;;  %v1984_v4 = vld [vmem:[#allocation8 + $0xb38] sm:$0xff] }
 0xae7   :  { %v4415_v61 = vpack.c.bf16 %v1984_v4, %v1983_v2  ;;  %v2091_v2 = vld [vmem:[#allocation8 + $0x398] sm:$0xff] }
 0xae8   :  { %4346 = vmatpush1.bf16.msra.mxu1 %v4345_v8  ;;  %v4379_v8 = vpack.c.bf16 %v1812_v7, %v1811_v6  ;;  %v1987_v7 = vld [vmem:[#allocation8 + $0xb68] sm:$0xff] }
 0xae9   :  { %4348 = vmatprep.subr.bf16.mxu1 %v4347_v43  ;;  %v1813_v43 = vld [vmem:[#allocation8 + $0xac8] sm:$0xff] }
 0xaea   :  { %v4382_v10 = vpack.c.bf16 %v1814_v9, %v1813_v43  ;;  %v1989_v9 = vld [vmem:[#allocation8 + $0xb88] sm:$0xff] }
 0xaec   :  { %4350 = vmatpush1.bf16.msra.mxu1 %v4349_v13  ;;  %v4385_v13 = vpack.c.bf16 %v1816_v12, %v1815_v11  ;;  %v1991_v12 = vld [vmem:[#allocation8 + $0xba8] sm:$0xff] }
 0xaed   :  { %4352 = vmatprep.subr.bf16.mxu1 %v4351_v14  ;;  %v1891_v14 = vld [vmem:[#allocation8 + $0xb00] sm:$0xff] }
 0xaee   :  { %v4388_v17 = vpack.c.bf16 %v1892_v15, %v1891_v14  ;;  %v1993_v15 = vld [vmem:[#allocation8 + $0xbc8] sm:$0xff] }
 0xaf0   :  { %4354 = vmatpush1.bf16.msra.mxu1 %v4353_v19  ;;  %v4391_v19 = vpack.c.bf16 %v1894_v18, %v1893_v16  ;;  %v1994_v16 = vld [vmem:[#allocation8 + $0xbd8] sm:$0xff]  ;;  %v375_v18 = vsub.s32 3, %v5014_v34 }
 0xaf1   :  { %4356 = vmatprep.subr.bf16.mxu1 %v4355_v20  ;;  %v1895_v20 = vld [vmem:[#allocation8 + $0xb40] sm:$0xff] }
 0xaf2   :  { %v4394_v22 = vpack.c.bf16 %v1896_v21, %v1895_v20 }
 0xaf4   :  { %4358 = vmatpush1.bf16.msra.mxu1 %v4357_v23  ;;  %v1897_v23 = vld [vmem:[#allocation8 + $0xb60] sm:$0xff] }
 0xaf5   :  { %4360 = vmatprep.subr.bf16.mxu1 %v4359_v40  ;;  %v1903_v40 = vld [vmem:[#allocation8 + $0xbc0] sm:$0xff] }
 0xaf6   :  { %v4406_v42 = vpack.c.bf16 %v1904_v41, %v1903_v40  ;;  %v2077_v41 = vld [vmem:[#allocation8 + $0x328] sm:$0xff] }
 0xaf8   :  { %4362 = vmatpush1.bf16.msra.mxu1 %v4361_v44  ;;  %v1712_v44 = vld [vmem:[#allocation9 + $0x37] ss:$8 sm:$0x3] }
 0xaf9   :  { %4387 = vmatprep.subr.bf16.mxu1 %v4841_v0 }
 0xbae   :  { %v1580_v25 = vpop.f32.mrb[14].mxu1 }
 0xbaf   :  { %v1581_v26 = vadd.f32 %v1580_v25, %v1513_v24  ;;  %v3658_v27 = vpop.f32.mrb[15].mxu1  ;;  %v1898_v24 = vld [vmem:[#allocation8 + $0xb70] sm:$0xff] }
 0xbb0   :  { %v4397_v25 = vpack.c.bf16 %v1898_v24, %v1897_v23  ;;  %v1900_v27 = vld [vmem:[#allocation8 + $0xb90] sm:$0xff] }
 0xbb1   :  { %vm1584_vm14 = vcmp.ge.f32.partialorder %v1581_v26, 0.0  ;;  %v1585_v33 = vmul.f32 0.01, %v1581_v26 }
 0xbb3   :  { %v1586_v35 = vsel %vm1584_vm14, %v1581_v26, %v1585_v33  ;;  %v1899_v26 = vld [vmem:[#allocation8 + $0xb80] sm:$0xff] }
 0xbb4   :  { %3692 = vmatmul.mubr.f32.vlgmr.msra.gmra.mrb[16].mxu0 %v1586_v35  ;;  %v4400_v33 = vpack.c.bf16 %v1900_v27, %v1899_v26  ;;  %v1901_v35 = vld [vmem:[#allocation8 + $0xba0] sm:$0xff]  ;;  %v1995_v26 = vld [vmem:[#allocation8 + $0xbe8] sm:$0xff]  ;;  %v1996_v27 = vld [vmem:[#allocation8 + $0xbf8] sm:$0xff] }
 0xbb5   :  { %3726 = vmatprep.mubr.msk.f32.mxu0 %vm4842_vm0, %v4843_v1  ;;  %4365 = vmatpush3.bf16.msra.mxu0 %v4364_v52  ;;  %v4403_v39 = vpack.c.bf16 %v1902_v36, %v1901_v35  ;;  %v1721_v52 = vrot.slane %v1712_v44, %v5050_v56  ;;  %v2073_v35 = vld [vmem:[#allocation8 + $0x308] sm:$0xff]  ;;  %v2075_v36 = vld [vmem:[#allocation8 + $0x318] sm:$0xff] }
 0xbb6   :  { %4366 = vmatprep.subr.bf16.mxu0 %v4841_v0  ;;  %v4435_v40 = vpack.c.bf16 %v2075_v36, %v2073_v35  ;;  %v1997_v35 = vld [vmem:[#allocation9 + $0x30] ss:$0 sm:$0xff] }
 0xbb9   :  { %4368 = vmatpush3.bf16.msra.mxu0 %v4367_v57 }
 0xbba   :  { %4369 = vmatprep.subr.bf16.mxu0 %v4841_v0 }
 0xbbd   :  { %4371 = vmatpush3.bf16.msra.mxu0 %v4370_v60  ;;  %v1981_v60 = vld [vmem:[#allocation8 + $0xb08] sm:$0xff] }
 0xbbe   :  { %4372 = vmatprep.subr.bf16.mxu0 %v4841_v0 }
 0xbc1   :  { %4374 = vmatpush3.bf16.msra.mxu0 %v4373_v3  ;;  %v4412_v3 = vpack.c.bf16 %v1982_v63, %v1981_v60  ;;  %v2086_v60 = vld [vmem:[#allocation8 + $0x370] sm:$0xff]  ;;  %v2089_v63 = vld [vmem:[#allocation8 + $0x388] sm:$0xff] }
 0xbc2   :  { %4375 = vmatprep.subr.bf16.mxu0 %v4841_v0  ;;  %v4451_v4 = vpack.c.bf16 %v2091_v2, %v2089_v63  ;;  %v2214_v2 = vld [vmem:[#allocation8 + $0xcc0] sm:$0xff] }
 0xbc5   :  { %4377 = vmatpush3.bf16.msra.mxu0 %v4376_v5  ;;  %v1986_v5 = vld [vmem:[#allocation8 + $0xb58] sm:$0xff] }
 0xbc6   :  { %4378 = vmatprep.subr.bf16.mxu0 %v4841_v0 }
 0xbc9   :  { %4380 = vmatpush3.bf16.msra.mxu0 %v4379_v8  ;;  %v1988_v8 = vld [vmem:[#allocation8 + $0xb78] sm:$0xff] }
 0xbca   :  { %4381 = vmatprep.subr.bf16.mxu0 %v4841_v0  ;;  %v4421_v43 = vpack.c.bf16 %v1988_v8, %v1987_v7 }
 0xbcd   :  { %4383 = vmatpush3.bf16.msra.mxu0 %v4382_v10  ;;  %v1990_v10 = vld [vmem:[#allocation8 + $0xb98] sm:$0xff] }
 0xbce   :  { %4384 = vmatprep.subr.bf16.mxu0 %v4841_v0  ;;  %v4424_v11 = vpack.c.bf16 %v1990_v10, %v1989_v9  ;;  %v2094_v9 = vld [vmem:[#allocation8 + $0x3b0] sm:$0xff]  ;;  %v2097_v10 = vld [vmem:[#allocation8 + $0x3c8] sm:$0xff] }
 0xbd1   :  { %4386 = vmatpush3.bf16.msra.mxu0 %v4385_v13  ;;  %v1992_v13 = vld [vmem:[#allocation8 + $0xbb8] sm:$0xff] }
 0xbd2   :  { %4411 = vmatprep.subr.bf16.mxu0 %v4841_v0  ;;  %v4427_v14 = vpack.c.bf16 %v1992_v13, %v1991_v12 }
 0xc87   :  { %v1671_v29 = vpop.f32.mrb[16].mxu0 }
 0xc88   :  { %v1672_v28 = vadd.f32 %v1671_v29, %v1604_v45  ;;  %v3693_v46 = vpop.f32.mrb[17].mxu0  ;;  %v1717_v45 = vrot.slane %v1712_v44, %v5019_v38 }
 0xc8a   :  { %vm1675_vm15 = vcmp.ge.f32.partialorder %v1672_v28, 0.0  ;;  %v1676_v48 = vmul.f32 0.01, %v1672_v28 }
 0xc8c   :  { %v1677_v49 = vsel %vm1675_vm15, %v1672_v28, %v1676_v48  ;;  %v1399_v48 = vadd.f32 %v5092_v47, %v5046_v54  ;;  %v1906_v54 = vld [vmem:[#allocation8 + $0xbf0] sm:$0xff] }
 0xc8d   :  { %1789 = vmatmul.mubr.f32.vlgmr.msra.gmra.mrb[16].mxu1 %v1677_v49  ;;  %v4409_v47 = vpack.c.bf16 %v1906_v54, %v1905_v59 }
 0xc8e   :  { %3761 = vmatprep.mubr.msk.f32.mxu1 %vm4842_vm0, %v4843_v1  ;;  %4389 = vmatpush3.bf16.msra.mxu1 %v4388_v17  ;;  %v4430_v17 = vpack.c.bf16 %v1994_v16, %v1993_v15  ;;  %v2098_v15 = vld [vmem:[#allocation8 + $0x3d0] sm:$0xff] }
 0xc8f   :  { %4390 = vmatprep.subr.bf16.mxu1 %v4841_v0 }
 0xc92   :  { %4392 = vmatpush3.bf16.msra.mxu1 %v4391_v19  ;;  %v376_v19 = vrot.slane %v5016_v37, %v375_v18 }
 0xc93   :  { %4393 = vmatprep.subr.bf16.mxu1 %v4841_v0 }
 0xc94   :  { %v534_v20 = vadd.f32 %v5008_v30, %v376_v19  ;;  %v2074_v30 = vld [vmem:[#allocation8 + $0x310] sm:$0xff] }
 0xc96   :  { %4395 = vmatpush3.bf16.msra.mxu1 %v4394_v22 }
 0xc97   :  { %4396 = vmatprep.subr.bf16.mxu1 %v4841_v0 }
 0xc9a   :  { %4398 = vmatpush3.bf16.msra.mxu1 %v4397_v25 }
 0xc9b   :  { %4399 = vmatprep.subr.bf16.mxu1 %v4841_v0 }
 0xc9e   :  { %4401 = vmatpush3.bf16.msra.mxu1 %v4400_v33  ;;  %v4433_v33 = vpack.c.bf16 %v1996_v27, %v1995_v26  ;;  %v2100_v26 = vld [vmem:[#allocation8 + $0x3e0] sm:$0xff]  ;;  %v2102_v27 = vld [vmem:[#allocation8 + $0x3f0] sm:$0xff] }
 0xc9f   :  { %4402 = vmatprep.subr.bf16.mxu1 %v4841_v0 }
 0xca2   :  { %4404 = vmatpush3.bf16.msra.mxu1 %v4403_v39  ;;  %v2072_v39 = vld [vmem:[#allocation8 + $0x300] sm:$0xff] }
 0xca3   :  { %4405 = vmatprep.subr.bf16.mxu1 %v4841_v0  ;;  %v4437_v44 = vpack.c.bf16 %v2074_v30, %v2072_v39 }
 0xca6   :  { %4407 = vmatpush3.bf16.msra.mxu1 %v4406_v42  ;;  %v2079_v42 = vld [vmem:[#allocation8 + $0x338] sm:$0xff] }
 0xca7   :  { %4408 = vmatprep.subr.bf16.mxu1 %v4841_v0 }
 0xcaa   :  { %4410 = vmatpush3.bf16.msra.mxu1 %v4409_v47  ;;  %v2084_v47 = vld [vmem:[#allocation8 + $0x360] sm:$0xff] }
 0xcab   :  { %4436 = vmatprep.subr.bf16.mxu1 %v4435_v40 }
 0xd60   :  { %v1790_v29 = vpop.f32.mrb[16].mxu1 }
 0xd61   :  { %v1791_v28 = vadd.f32 %v1790_v29, %v1717_v45  ;;  %v1792_v46 = vpop.f32.mrb[17].mxu1  ;;  %v4439_v45 = vpack.c.bf16 %v2079_v42, %v2077_v41  ;;  %v2076_v29 = vld [vmem:[#allocation8 + $0x320] sm:$0xff] }
 0xd62   :  { %v1793_v55 = vadd.f32 %v1792_v46, %v1721_v52  ;;  %v2081_v46 = vld [vmem:[#allocation8 + $0x348] sm:$0xff]  ;;  %v2080_v52 = vld [vmem:[#allocation8 + $0x340] sm:$0xff] }
 0xd63   :  { %4697 = vtanh.f32 %v1791_v28  ;;  %v2078_v28 = vld [vmem:[#allocation8 + $0x330] sm:$0xff]  ;;  %v2202_v42 = vld [vmem:[#allocation8 + $0xc00] sm:$0xff] }
 0xd6d   :  { %v4698_v49 = vpop.eup %4697 }
 0xd6e   :  { %v1796_v50 = vmul.f32 1.442695, %v4698_v49  ;;  %v5137_v51 = vadd.f32 %v4698_v49, %v1399_v48  ;;  %v2083_v48 = vld [vmem:[#allocation8 + $0x358] sm:$0xff]  ;;  %v4441_v49 = vpack.c.bf16 %v2078_v28, %v2076_v29  ;;  %v2204_v29 = vld [vmem:[#allocation8 + $0xc20] sm:$0xff]  ;;  %v2205_v28 = vld [vmem:[#allocation8 + $0xc30] sm:$0xff] }
 0xd70   :  { %4699 = vpow2.f32 %v1796_v50  ;;  %v4443_v50 = vpack.c.bf16 %v2083_v48, %v2081_v46  ;;  %v4471_v46 = vpack.c.bf16 %v2205_v28, %v2204_v29  ;;  %v2206_v48 = vld [vmem:[#allocation8 + $0xc40] sm:$0xff] }
 0xd71   :  { %v2194_v29 = vld [vmem:[#allocation9 + $0x65] ss:$0 sm:$0xff] }
 0xd7a   :  { %v4700_v53 = vpop.eup %4699 }
 0xd7b   :  { %v1798_v57 = vmul.f32 %v4700_v53, %v5097_v62  ;;  %v1985_v62 = vld [vmem:[#allocation8 + $0xb48] sm:$0xff]  ;;  %v2082_v53 = vld [vmem:[#allocation8 + $0x350] sm:$0xff] }
 0xd7c   :  { %v4418_v6 = vpack.c.bf16 %v1986_v5, %v1985_v62  ;;  %v4445_v59 = vpack.c.bf16 %v2082_v53, %v2080_v52  ;;  %v2090_v62 = vld [vmem:[#allocation8 + $0x390] sm:$0xff]  ;;  %v2093_v5 = vld [vmem:[#allocation8 + $0x3a8] sm:$0xff]  ;;  %v2208_v52 = vld [vmem:[#allocation8 + $0xc60] sm:$0xff] }
 0xd7d   :  { %v5141_v58 = vadd.f32 %v1798_v57, %v1793_v55  ;;  %v2085_v55 = vld [vmem:[#allocation8 + $0x368] sm:$0xff]  ;;  %v2087_v57 = vld [vmem:[#allocation8 + $0x378] sm:$0xff]  ;;  %v2209_v53 = vld [vmem:[#allocation8 + $0xc70] sm:$0xff] }
 0xd7e   :  { %v4447_v54 = vpack.c.bf16 %v2087_v57, %v2085_v55  ;;  %v4477_v55 = vpack.c.bf16 %v2209_v53, %v2208_v52  ;;  %v2210_v57 = vld [vmem:[#allocation8 + $0xc80] sm:$0xff]  ;;  %v2306_v53 = vld [vmem:[#allocation8 + $0xcf8] sm:$0xff] }
 0xd7f   :  { %3727 = vmatmul.mubr.f32.vlgmr.msra.gmra.mrb[18].mxu0 %v5141_v58 }
 0xd80   :  { %3796 = vmatprep.mubr.msk.f32.mxu0 %vm4842_vm0, %v4843_v1  ;;  %4413 = vmatpush3.bf16.msra.mxu0 %v4412_v3  ;;  %v4449_v3 = vpack.c.bf16 %v2086_v60, %v2084_v47  ;;  %v2212_v47 = vld [vmem:[#allocation8 + $0xca0] sm:$0xff]  ;;  %v2213_v60 = vld [vmem:[#allocation8 + $0xcb0] sm:$0xff] }
 0xd81   :  { %4414 = vmatprep.subr.bf16.mxu0 %v4841_v0  ;;  %v4483_v63 = vpack.c.bf16 %v2213_v60, %v2212_v47  ;;  %v2385_v47 = vld [vmem:[#allocation8 + $0xd30] sm:$0xff] }
 0xd84   :  { %4416 = vmatpush3.bf16.msra.mxu0 %v4415_v61  ;;  %v2088_v61 = vld [vmem:[#allocation8 + $0x380] sm:$0xff] }
 0xd85   :  { %4417 = vmatprep.subr.bf16.mxu0 %v4841_v0  ;;  %v4453_v7 = vpack.c.bf16 %v2090_v62, %v2088_v61  ;;  %v2216_v61 = vld [vmem:[#allocation8 + $0xce0] sm:$0xff]  ;;  %v2217_v62 = vld [vmem:[#allocation8 + $0xcf0] sm:$0xff] }
 0xd88   :  { %4419 = vmatpush3.bf16.msra.mxu0 %v4418_v6  ;;  %v2095_v6 = vld [vmem:[#allocation8 + $0x3b8] sm:$0xff] }
 0xd89   :  { %4420 = vmatprep.subr.bf16.mxu0 %v4841_v0  ;;  %v4455_v8 = vpack.c.bf16 %v2095_v6, %v2093_v5  ;;  %v4489_v5 = vpack.c.bf16 %v2217_v62, %v2216_v61  ;;  %v2291_v6 = vld [vmem:[#allocation8 + $0xc08] sm:$0xff]  ;;  %v2389_v61 = vld [vmem:[#allocation8 + $0xd70] sm:$0xff] }
 0xd8c   :  { %4422 = vmatpush3.bf16.msra.mxu0 %v4421_v43  ;;  %v2092_v43 = vld [vmem:[#allocation8 + $0x3a0] sm:$0xff] }
 0xd8d   :  { %4423 = vmatprep.subr.bf16.mxu0 %v4841_v0  ;;  %v4457_v12 = vpack.c.bf16 %v2094_v9, %v2092_v43  ;;  %v2294_v9 = vld [vmem:[#allocation8 + $0xc38] sm:$0xff] }
 0xd90   :  { %4425 = vmatpush3.bf16.msra.mxu0 %v4424_v11  ;;  %v2099_v11 = vld [vmem:[#allocation8 + $0x3d8] sm:$0xff] }
 0xd91   :  { %4426 = vmatprep.subr.bf16.mxu0 %v4841_v0  ;;  %v4459_v13 = vpack.c.bf16 %v2099_v11, %v2097_v10  ;;  %v2295_v11 = vld [vmem:[#allocation8 + $0xc48] sm:$0xff] }
 0xd94   :  { %4428 = vmatpush3.bf16.msra.mxu0 %v4427_v14  ;;  %v2096_v14 = vld [vmem:[#allocation8 + $0x3c0] sm:$0xff] }
 0xd95   :  { %4429 = vmatprep.subr.bf16.mxu0 %v4841_v0  ;;  %v4461_v16 = vpack.c.bf16 %v2098_v15, %v2096_v14  ;;  %v2297_v14 = vld [vmem:[#allocation8 + $0xc68] sm:$0xff]  ;;  %v2298_v15 = vld [vmem:[#allocation8 + $0xc78] sm:$0xff] }
 0xd98   :  { %4431 = vmatpush3.bf16.msra.mxu0 %v4430_v17  ;;  %v1907_v17 = vld [vmem:[#allocation9 + $0x7] ss:$0 sm:$0xff] }
 0xd99   :  { %4432 = vmatprep.subr.bf16.mxu0 %v4841_v0 }
 0xd9c   :  { %4434 = vmatpush3.bf16.msra.mxu0 %v4433_v33  ;;  %v4465_v33 = vpack.c.bf16 %v2102_v27, %v2100_v26  ;;  %v2105_v26 = vld [vmem:[#allocation9 + $0x60] ss:$8 sm:$0x3] }
 0xd9d   :  { %4467 = vmatprep.subr.bf16.mxu0 %v4841_v0  ;;  %v2110_v27 = vrot.slane %v2105_v26, %v5019_v38 }
 0xe52   :  { %v1883_v21 = vpop.f32.mrb[18].mxu0 }
 0xe53   :  { %v1884_v22 = vadd.f32 %v1883_v21, %v534_v20  ;;  %v3728_v23 = vpop.f32.mrb[19].mxu0 }
 0xe54   :  { %v2101_v23 = vld [vmem:[#allocation8 + $0x3e8] sm:$0xff] }
 0xe55   :  { %vm1887_vm1 = vcmp.ge.f32.partialorder %v1884_v22, 0.0  ;;  %v1888_v24 = vmul.f32 0.01, %v1884_v22 }
 0xe57   :  { %v1889_v25 = vsel %vm1887_vm1, %v1884_v22, %v1888_v24  ;;  %v2103_v24 = vld [vmem:[#allocation8 + $0x3f8] sm:$0xff] }
 0xe58   :  { %3762 = vmatmul.mubr.f32.vlgmr.msra.gmra.mrb[18].mxu1 %v1889_v25  ;;  %v4463_v25 = vpack.c.bf16 %v2103_v24, %v2101_v23  ;;  %v2303_v23 = vld [vmem:[#allocation8 + $0xcc8] sm:$0xff]  ;;  %v2304_v24 = vld [vmem:[#allocation8 + $0xcd8] sm:$0xff] }
 0xe59   :  { %2181 = vmatprep.mubr.f32.mxu1 %v4843_v1  ;;  %4438 = vmatpush1.bf16.msra.mxu1 %v4437_v44  ;;  %v2203_v44 = vld [vmem:[#allocation8 + $0xc10] sm:$0xff] }
 0xe5a   :  { %4440 = vmatprep.subr.bf16.mxu1 %v4439_v45  ;;  %v4468_v45 = vpack.c.bf16 %v2203_v44, %v2202_v42 }
 0xe5d   :  { %4442 = vmatpush1.bf16.msra.mxu1 %v4441_v49  ;;  %v2207_v49 = vld [vmem:[#allocation8 + $0xc50] sm:$0xff] }
 0xe5e   :  { %4444 = vmatprep.subr.bf16.mxu1 %v4443_v50  ;;  %v4474_v50 = vpack.c.bf16 %v2207_v49, %v2206_v48 }
 0xe61   :  { %4446 = vmatpush1.bf16.msra.mxu1 %v4445_v59  ;;  %v2211_v59 = vld [vmem:[#allocation8 + $0xc90] sm:$0xff] }
 0xe62   :  { %4448 = vmatprep.subr.bf16.mxu1 %v4447_v54  ;;  %v4480_v54 = vpack.c.bf16 %v2211_v59, %v2210_v57  ;;  %v2382_v57 = vld [vmem:[#allocation8 + $0xd00] sm:$0xff] }
 0xe63   :  { %v2384_v59 = vld [vmem:[#allocation8 + $0xd20] sm:$0xff] }
 0xe64   :  { %v4519_v60 = vpack.c.bf16 %v2385_v47, %v2384_v59  ;;  %v2489_v47 = vld [vmem:[#allocation8 + $0x480] sm:$0xff] }
 0xe65   :  { %4450 = vmatpush1.bf16.msra.mxu1 %v4449_v3  ;;  %v2215_v3 = vld [vmem:[#allocation8 + $0xcd0] sm:$0xff] }
 0xe66   :  { %4452 = vmatprep.subr.bf16.mxu1 %v4451_v4  ;;  %v4486_v4 = vpack.c.bf16 %v2215_v3, %v2214_v2  ;;  %v2387_v2 = vld [vmem:[#allocation8 + $0xd50] sm:$0xff] }
 0xe69   :  { %4454 = vmatpush1.bf16.msra.mxu1 %v4453_v7  ;;  %v2292_v7 = vld [vmem:[#allocation8 + $0xc18] sm:$0xff] }
 0xe6a   :  { %4456 = vmatprep.subr.bf16.mxu1 %v4455_v8  ;;  %v2293_v8 = vld [vmem:[#allocation8 + $0xc28] sm:$0xff]  ;;  %v4492_v43 = vpack.c.bf16 %v2292_v7, %v2291_v6  ;;  %v2391_v6 = vld [vmem:[#allocation8 + $0xd90] sm:$0xff] }
 0xe6b   :  { %v4495_v10 = vpack.c.bf16 %v2294_v9, %v2293_v8  ;;  %v2392_v8 = vld [vmem:[#allocation8 + $0xda0] sm:$0xff] }
 0xe6d   :  { %4458 = vmatpush1.bf16.msra.mxu1 %v4457_v12  ;;  %v2296_v12 = vld [vmem:[#allocation8 + $0xc58] sm:$0xff] }
 0xe6e   :  { %4460 = vmatprep.subr.bf16.mxu1 %v4459_v13  ;;  %v4498_v13 = vpack.c.bf16 %v2296_v12, %v2295_v11  ;;  %v2395_v11 = vld [vmem:[#allocation8 + $0xdd0] sm:$0xff] }
 0xe71   :  { %4462 = vmatpush1.bf16.msra.mxu1 %v4461_v16  ;;  %v4501_v16 = vpack.c.bf16 %v2298_v15, %v2297_v14 }
 0xe72   :  { %4464 = vmatprep.subr.bf16.mxu1 %v4463_v25  ;;  %v4510_v25 = vpack.c.bf16 %v2304_v24, %v2303_v23  ;;  %v2474_v24 = vld [vmem:[#allocation8 + $0x408] sm:$0xff] }
 0xe75   :  { %4466 = vmatpush1.bf16.msra.mxu1 %v4465_v33 }
 0xe76   :  { %4491 = vmatprep.subr.bf16.mxu1 %v4841_v0 }
 0xf2b   :  { %v1974_v18 = vpop.f32.mrb[18].mxu1 }
 0xf2c   :  { %v1975_v19 = vadd.f32 %v1974_v18, %v1907_v17  ;;  %v3763_v20 = vpop.f32.mrb[19].mxu1  ;;  %v2299_v17 = vld [vmem:[#allocation8 + $0xc88] sm:$0xff]  ;;  %v2300_v18 = vld [vmem:[#allocation8 + $0xc98] sm:$0xff] }
 0xf2d   :  { %v2301_v20 = vld [vmem:[#allocation8 + $0xca8] sm:$0xff] }
 0xf2e   :  { %vm1978_vm2 = vcmp.ge.f32.partialorder %v1975_v19, 0.0  ;;  %v1979_v21 = vmul.f32 0.01, %v1975_v19 }
 0xf30   :  { %v1980_v22 = vsel %vm1978_vm2, %v1975_v19, %v1979_v21  ;;  %v4504_v19 = vpack.c.bf16 %v2300_v18, %v2299_v17  ;;  %v2302_v21 = vld [vmem:[#allocation8 + $0xcb8] sm:$0xff] }
 0xf31   :  { %3797 = vmatmul.mubr.f32.vlgmr.msra.gmra.mrb[20].mxu0 %v1980_v22  ;;  %v4507_v22 = vpack.c.bf16 %v2302_v21, %v2301_v20  ;;  %v2396_v21 = vld [vmem:[#allocation8 + $0xde0] sm:$0xff] }
 0xf32   :  { %3831 = vmatprep.mubr.msk.f32.mxu0 %vm4842_vm0, %v4843_v1  ;;  %4469 = vmatpush3.bf16.msra.mxu0 %v4468_v45 }
 0xf33   :  { %4470 = vmatprep.subr.bf16.mxu0 %v4841_v0 }
 0xf36   :  { %4472 = vmatpush3.bf16.msra.mxu0 %v4471_v46  ;;  %v2195_v46 = vld [vmem:[#allocation9 + $0x90] ss:$0 sm:$0xff] }
 0xf37   :  { %4473 = vmatprep.subr.bf16.mxu0 %v4841_v0 }
 0xf3a   :  { %4475 = vmatpush3.bf16.msra.mxu0 %v4474_v50 }
 0xf3b   :  { %4476 = vmatprep.subr.bf16.mxu0 %v4841_v0 }
 0xf3e   :  { %4478 = vmatpush3.bf16.msra.mxu0 %v4477_v55 }
 0xf3f   :  { %4479 = vmatprep.subr.bf16.mxu0 %v4841_v0 }
 0xf42   :  { %4481 = vmatpush3.bf16.msra.mxu0 %v4480_v54 }
 0xf43   :  { %4482 = vmatprep.subr.bf16.mxu0 %v4841_v0 }
 0xf46   :  { %4484 = vmatpush3.bf16.msra.mxu0 %v4483_v63  ;;  %v2386_v63 = vld [vmem:[#allocation8 + $0xd40] sm:$0xff] }
 0xf47   :  { %4485 = vmatprep.subr.bf16.mxu0 %v4841_v0  ;;  %v4522_v3 = vpack.c.bf16 %v2387_v2, %v2386_v63  ;;  %v2494_v63 = vld [vmem:[#allocation8 + $0x4a8] sm:$0xff]  ;;  %v2496_v2 = vld [vmem:[#allocation8 + $0x4b8] sm:$0xff] }
 0xf4a   :  { %4487 = vmatpush3.bf16.msra.mxu0 %v4486_v4  ;;  %v2388_v4 = vld [vmem:[#allocation8 + $0xd60] sm:$0xff] }
 0xf4b   :  { %4488 = vmatprep.subr.bf16.mxu0 %v4841_v0  ;;  %v4525_v62 = vpack.c.bf16 %v2389_v61, %v2388_v4  ;;  %v4559_v4 = vpack.c.bf16 %v2496_v2, %v2494_v63  ;;  %v2493_v61 = vld [vmem:[#allocation8 + $0x4a0] sm:$0xff]  ;;  %v2686_v2 = vld [vmem:[#allocation8 + $0xe10] sm:$0xff] }
 0xf4c   :  { %v2685_v63 = vld [vmem:[#allocation8 + $0xe00] sm:$0xff] }
 0xf4e   :  { %4490 = vmatpush3.bf16.msra.mxu0 %v4489_v5  ;;  %v2390_v5 = vld [vmem:[#allocation8 + $0xd80] sm:$0xff] }
 0xf4f   :  { %4515 = vmatprep.subr.bf16.mxu0 %v4841_v0  ;;  %v4528_v7 = vpack.c.bf16 %v2391_v6, %v2390_v5  ;;  %v2498_v5 = vld [vmem:[#allocation8 + $0x4c8] sm:$0xff]  ;;  %v2500_v6 = vld [vmem:[#allocation8 + $0x4d8] sm:$0xff] }
0x1004   :  { %v2064_v36 = vpop.f32.mrb[20].mxu0 }
0x1005   :  { %v2065_v39 = vadd.f32 %v2064_v36, %v1997_v35  ;;  %v3798_v40 = vpop.f32.mrb[21].mxu0 }
0x1007   :  { %vm2068_vm3 = vcmp.ge.f32.partialorder %v2065_v39, 0.0  ;;  %v2069_v30 = vmul.f32 0.01, %v2065_v39 }
0x1009   :  { %v2070_v41 = vsel %vm2068_vm3, %v2065_v39, %v2069_v30 }
0x100a   :  { %2182 = vmatmul.mubr.f32.vlgmr.msra.gmra.mrb[20].mxu1 %v2070_v41  ;;  %v2114_v41 = vrot.slane %v2105_v26, %v5050_v56  ;;  %v2473_v26 = vld [vmem:[#allocation8 + $0x400] sm:$0xff] }
0x100b   :  { %3866 = vmatprep.mubr.msk.f32.mxu1 %vm4842_vm0, %v4843_v1  ;;  %4493 = vmatpush3.bf16.msra.mxu1 %v4492_v43  ;;  %v2393_v43 = vld [vmem:[#allocation8 + $0xdb0] sm:$0xff] }
0x100c   :  { %4494 = vmatprep.subr.bf16.mxu1 %v4841_v0  ;;  %v4531_v9 = vpack.c.bf16 %v2393_v43, %v2392_v8  ;;  %v4563_v8 = vpack.c.bf16 %v2500_v6, %v2498_v5  ;;  %v2497_v43 = vld [vmem:[#allocation8 + $0x4c0] sm:$0xff]  ;;  %v2690_v6 = vld [vmem:[#allocation8 + $0xe50] sm:$0xff] }
0x100d   :  { %v2689_v5 = vld [vmem:[#allocation8 + $0xe40] sm:$0xff] }
0x100f   :  { %4496 = vmatpush3.bf16.msra.mxu1 %v4495_v10  ;;  %v2394_v10 = vld [vmem:[#allocation8 + $0xdc0] sm:$0xff] }
0x1010   :  { %4497 = vmatprep.subr.bf16.mxu1 %v4841_v0  ;;  %v4534_v12 = vpack.c.bf16 %v2395_v11, %v2394_v10  ;;  %v2307_v11 = vld [vmem:[#allocation9 + $0x31] ss:$0 sm:$0xff] }
0x1013   :  { %4499 = vmatpush3.bf16.msra.mxu1 %v4498_v13  ;;  %v379_v13 = vsub.s32 4, %v5014_v34 }
0x1014   :  { %4500 = vmatprep.subr.bf16.mxu1 %v4841_v0 }
0x1015   :  { %v380_v14 = vrot.slane %v5016_v37, %v379_v13 }
0x1017   :  { %4502 = vmatpush3.bf16.msra.mxu1 %v4501_v16  ;;  %v603_v15 = vadd.f32 %v5010_v31, %v380_v14  ;;  %v2475_v31 = vld [vmem:[#allocation8 + $0x410] sm:$0xff] }
0x1018   :  { %4503 = vmatprep.subr.bf16.mxu1 %v4841_v0 }
0x101b   :  { %4505 = vmatpush3.bf16.msra.mxu1 %v4504_v19 }
0x101c   :  { %4506 = vmatprep.subr.bf16.mxu1 %v4841_v0 }
0x101f   :  { %4508 = vmatpush3.bf16.msra.mxu1 %v4507_v22  ;;  %v2397_v22 = vld [vmem:[#allocation8 + $0xdf0] sm:$0xff] }
0x1020   :  { %4509 = vmatprep.subr.bf16.mxu1 %v4841_v0  ;;  %v4537_v23 = vpack.c.bf16 %v2397_v22, %v2396_v21  ;;  %v2503_v21 = vld [vmem:[#allocation8 + $0x4f0] sm:$0xff] }
0x1023   :  { %4511 = vmatpush3.bf16.msra.mxu1 %v4510_v25  ;;  %v2476_v25 = vld [vmem:[#allocation8 + $0x418] sm:$0xff] }
0x1024   :  { %4512 = vmatprep.subr.bf16.mxu1 %v4841_v0 }
0x10dd   :  { %v2183_v33 = vpop.f32.mrb[20].mxu1 }
0x10de   :  { %v2184_v35 = vadd.f32 %v2183_v33, %v2110_v27  ;;  %v2185_v36 = vpop.f32.mrb[21].mxu1  ;;  %v4539_v27 = vpack.c.bf16 %v2476_v25, %v2474_v24  ;;  %v2478_v33 = vld [vmem:[#allocation8 + $0x428] sm:$0xff] }
0x10df   :  { %v2186_v44 = vadd.f32 %v2185_v36, %v2114_v41  ;;  %v4541_v36 = vpack.c.bf16 %v2475_v31, %v2473_v26  ;;  %v2479_v41 = vld [vmem:[#allocation8 + $0x430] sm:$0xff] }
0x10e0   :  { %4701 = vtanh.f32 %v2184_v35  ;;  %v2480_v35 = vld [vmem:[#allocation8 + $0x438] sm:$0xff] }
0x10ea   :  { %v4702_v39 = vpop.eup %4701 }
0x10eb   :  { %v2189_v40 = vmul.f32 1.442695, %v4702_v39  ;;  %v5180_v30 = vadd.f32 %v4702_v39, %v5137_v51  ;;  %v2305_v51 = vld [vmem:[#allocation8 + $0xce8] sm:$0xff]  ;;  %v4543_v39 = vpack.c.bf16 %v2480_v35, %v2478_v33  ;;  %v2596_v35 = vld [vmem:[#allocation8 + $0xd18] sm:$0xff] }
0x10ec   :  { %v4513_v55 = vpack.c.bf16 %v2306_v53, %v2305_v51  ;;  %v2485_v53 = vld [vmem:[#allocation8 + $0x460] sm:$0xff]  ;;  %v2595_v33 = vld [vmem:[#allocation8 + $0xd08] sm:$0xff] }
0x10ed   :  { %4703 = vpow2.f32 %v2189_v40  ;;  %v2477_v40 = vld [vmem:[#allocation8 + $0x420] sm:$0xff] }
0x10ee   :  { %4514 = vmatpush3.bf16.msra.mxu1 %v4513_v55  ;;  %v2487_v55 = vld [vmem:[#allocation8 + $0x470] sm:$0xff] }
0x10ef   :  { %4540 = vmatprep.subr.bf16.mxu1 %v4539_v27  ;;  %v4553_v59 = vpack.c.bf16 %v2487_v55, %v2485_v53  ;;  %v2606_v53 = vld [vmem:[#allocation8 + $0xdb8] sm:$0xff] }
0x10f7   :  { %v4704_v42 = vpop.eup %4703 }
0x10f8   :  { %v2191_v45 = vmul.f32 %v4704_v42, %v5141_v58  ;;  %v2383_v58 = vld [vmem:[#allocation8 + $0xd10] sm:$0xff]  ;;  %v2482_v42 = vld [vmem:[#allocation8 + $0x448] sm:$0xff] }
0x10f9   :  { %v4516_v54 = vpack.c.bf16 %v2383_v58, %v2382_v57  ;;  %v2490_v57 = vld [vmem:[#allocation8 + $0x488] sm:$0xff]  ;;  %v2492_v58 = vld [vmem:[#allocation8 + $0x498] sm:$0xff] }
0x10fa   :  { %v2192_v28 = vadd.f32 %v2191_v45, %v2186_v44  ;;  %v2484_v44 = vld [vmem:[#allocation8 + $0x458] sm:$0xff]  ;;  %v4545_v45 = vpack.c.bf16 %v2479_v41, %v2477_v40 }
0x10fb   :  { %v2598_v40 = vld [vmem:[#allocation8 + $0xd38] sm:$0xff] }
0x10fc   :  { %v2196_v48 = vmul.f32 %v2194_v29, %v2192_v28  ;;  %v4547_v29 = vpack.c.bf16 %v2484_v44, %v2482_v42  ;;  %v2481_v28 = vld [vmem:[#allocation8 + $0x440] sm:$0xff]  ;;  %v2599_v42 = vld [vmem:[#allocation8 + $0xd48] sm:$0xff]  ;;  %v2600_v44 = vld [vmem:[#allocation8 + $0xd58] sm:$0xff] }
0x10fe   :  { %v2197_v49 = vadd.f32 %v2196_v48, %v2195_v46  ;;  %v2483_v46 = vld [vmem:[#allocation8 + $0x450] sm:$0xff]  ;;  %v2486_v48 = vld [vmem:[#allocation8 + $0x468] sm:$0xff] }
0x1100   :  { %vm2198_vm4 = vcmp.ge.f32.partialorder %v2197_v49, 0.0  ;;  %v2199_v50 = vmul.f32 0.9, %v2197_v49 }
0x1102   :  { %v5184_v52 = vsel %vm2198_vm4, %v2197_v49, %v2199_v50  ;;  %v2488_v49 = vld [vmem:[#allocation8 + $0x478] sm:$0xff]  ;;  %v4549_v50 = vpack.c.bf16 %v2483_v46, %v2481_v28 }
0x1103   :  { %3832 = vmatmul.mubr.f32.vlgmr.msra.gmra.mrb[22].mxu0 %v5184_v52  ;;  %v4551_v51 = vpack.c.bf16 %v2488_v49, %v2486_v48  ;;  %v2602_v28 = vld [vmem:[#allocation8 + $0xd78] sm:$0xff]  ;;  %v2603_v48 = vld [vmem:[#allocation8 + $0xd88] sm:$0xff] }
0x1104   :  { %3901 = vmatprep.mubr.msk.f32.mxu0 %vm4842_vm0, %v4843_v1  ;;  %4517 = vmatpush3.bf16.msra.mxu0 %v4516_v54  ;;  %v4555_v54 = vpack.c.bf16 %v2492_v58, %v2490_v57  ;;  %v2604_v49 = vld [vmem:[#allocation8 + $0xd98] sm:$0xff]  ;;  %v2607_v57 = vld [vmem:[#allocation8 + $0xdc8] sm:$0xff] }
0x1105   :  { %4518 = vmatprep.subr.bf16.mxu0 %v4841_v0  ;;  %v2608_v58 = vld [vmem:[#allocation8 + $0xdd8] sm:$0xff] }
0x1108   :  { %4520 = vmatpush3.bf16.msra.mxu0 %v4519_v60  ;;  %v2491_v60 = vld [vmem:[#allocation8 + $0x490] sm:$0xff] }
0x1109   :  { %4521 = vmatprep.subr.bf16.mxu0 %v4841_v0 }
0x110c   :  { %4523 = vmatpush3.bf16.msra.mxu0 %v4522_v3  ;;  %v4557_v3 = vpack.c.bf16 %v2491_v60, %v2489_v47  ;;  %v2610_v47 = vld [vmem:[#allocation8 + $0xdf8] sm:$0xff] }
0x110d   :  { %4524 = vmatprep.subr.bf16.mxu0 %v4841_v0 }
0x1110   :  { %4526 = vmatpush3.bf16.msra.mxu0 %v4525_v62  ;;  %v2495_v62 = vld [vmem:[#allocation8 + $0x4b0] sm:$0xff] }
0x1111   :  { %4527 = vmatprep.subr.bf16.mxu0 %v4841_v0 }
0x1114   :  { %4529 = vmatpush3.bf16.msra.mxu0 %v4528_v7  ;;  %v4561_v7 = vpack.c.bf16 %v2495_v62, %v2493_v61  ;;  %v2688_v61 = vld [vmem:[#allocation8 + $0xe30] sm:$0xff] }
0x1115   :  { %4530 = vmatprep.subr.bf16.mxu0 %v4841_v0 }
0x1118   :  { %4532 = vmatpush3.bf16.msra.mxu0 %v4531_v9  ;;  %v2499_v9 = vld [vmem:[#allocation8 + $0x4d0] sm:$0xff] }
0x1119   :  { %4533 = vmatprep.subr.bf16.mxu0 %v4841_v0  ;;  %v4565_v10 = vpack.c.bf16 %v2499_v9, %v2497_v43  ;;  %v2692_v43 = vld [vmem:[#allocation8 + $0xe70] sm:$0xff] }
0x111c   :  { %4535 = vmatpush3.bf16.msra.mxu0 %v4534_v12 }
0x111d   :  { %4536 = vmatprep.subr.bf16.mxu0 %v4841_v0 }
0x1120   :  { %4538 = vmatpush3.bf16.msra.mxu0 %v4537_v23  ;;  %v2398_v23 = vld [vmem:[#allocation9 + $0x32] ss:$0 sm:$0xff] }
0x1121   :  { %4571 = vmatprep.subr.bf16.mxu0 %v4841_v0 }
0x11d6   :  { %v2284_v16 = vpop.f32.mrb[22].mxu0 }
0x11d7   :  { %v2285_v17 = vadd.f32 %v2284_v16, %v603_v15  ;;  %v3833_v18 = vpop.f32.mrb[23].mxu0 }
0x11d8   :  { %v2504_v18 = vld [vmem:[#allocation8 + $0x4f8] sm:$0xff] }
0x11d9   :  { %vm2288_vm5 = vcmp.ge.f32.partialorder %v2285_v17, 0.0  ;;  %v2289_v19 = vmul.f32 0.01, %v2285_v17 }
0x11db   :  { %v2290_v20 = vsel %vm2288_vm5, %v2285_v17, %v2289_v19  ;;  %v2502_v17 = vld [vmem:[#allocation8 + $0x4e8] sm:$0xff] }
0x11dc   :  { %3867 = vmatmul.mubr.f32.vlgmr.msra.gmra.mrb[22].mxu1 %v2290_v20  ;;  %v4567_v19 = vpack.c.bf16 %v2504_v18, %v2502_v17  ;;  %v2501_v20 = vld [vmem:[#allocation8 + $0x4e0] sm:$0xff]  ;;  %v2698_v17 = vld [vmem:[#allocation8 + $0xed0] sm:$0xff] }
0x11dd   :  { %2582 = vmatprep.mubr.f32.mxu1 %v4843_v1  ;;  %4542 = vmatpush1.bf16.msra.mxu1 %v4541_v36  ;;  %v4569_v22 = vpack.c.bf16 %v2503_v21, %v2501_v20  ;;  %v4572_v36 = vpack.c.bf16 %v2596_v35, %v2595_v33 }
0x11de   :  { %4544 = vmatprep.subr.bf16.mxu1 %v4543_v39  ;;  %v2597_v39 = vld [vmem:[#allocation8 + $0xd28] sm:$0xff] }
0x11df   :  { %v4575_v41 = vpack.c.bf16 %v2598_v40, %v2597_v39  ;;  %v2699_v39 = vld [vmem:[#allocation8 + $0xee0] sm:$0xff]  ;;  %v2700_v40 = vld [vmem:[#allocation8 + $0xef0] sm:$0xff] }
0x11e1   :  { %4546 = vmatpush1.bf16.msra.mxu1 %v4545_v45  ;;  %v4578_v45 = vpack.c.bf16 %v2600_v44, %v2599_v42  ;;  %v2776_v42 = vld [vmem:[#allocation8 + $0xe18] sm:$0xff]  ;;  %v2777_v44 = vld [vmem:[#allocation8 + $0xe28] sm:$0xff] }
0x11e2   :  { %4548 = vmatprep.subr.bf16.mxu1 %v4547_v29  ;;  %v2601_v29 = vld [vmem:[#allocation8 + $0xd68] sm:$0xff] }
0x11e3   :  { %v4581_v46 = vpack.c.bf16 %v2602_v28, %v2601_v29  ;;  %v2778_v29 = vld [vmem:[#allocation8 + $0xe38] sm:$0xff] }
0x11e4   :  { %v4623_v28 = vpack.c.bf16 %v2778_v29, %v2777_v44  ;;  %v2889_v44 = vld [vmem:[#allocation8 + $0x5b8] sm:$0xff] }
0x11e5   :  { %4550 = vmatpush1.bf16.msra.mxu1 %v4549_v50  ;;  %v4584_v50 = vpack.c.bf16 %v2604_v49, %v2603_v48  ;;  %v2781_v49 = vld [vmem:[#allocation8 + $0xe68] sm:$0xff] }
0x11e6   :  { %4552 = vmatprep.subr.bf16.mxu1 %v4551_v51  ;;  %v2605_v51 = vld [vmem:[#allocation8 + $0xda8] sm:$0xff] }
0x11e7   :  { %v4587_v55 = vpack.c.bf16 %v2606_v53, %v2605_v51  ;;  %v2783_v53 = vld [vmem:[#allocation8 + $0xe88] sm:$0xff] }
0x11e9   :  { %4554 = vmatpush1.bf16.msra.mxu1 %v4553_v59  ;;  %v4590_v59 = vpack.c.bf16 %v2608_v58, %v2607_v57  ;;  %v2785_v58 = vld [vmem:[#allocation8 + $0xea8] sm:$0xff] }
0x11ea   :  { %4556 = vmatprep.subr.bf16.mxu1 %v4555_v54  ;;  %v2609_v54 = vld [vmem:[#allocation8 + $0xde8] sm:$0xff] }
0x11eb   :  { %v4593_v60 = vpack.c.bf16 %v2610_v47, %v2609_v54  ;;  %v2787_v47 = vld [vmem:[#allocation8 + $0xec8] sm:$0xff] }
0x11ed   :  { %4558 = vmatpush1.bf16.msra.mxu1 %v4557_v3  ;;  %v2687_v3 = vld [vmem:[#allocation8 + $0xe20] sm:$0xff] }
0x11ee   :  { %4560 = vmatprep.subr.bf16.mxu1 %v4559_v4  ;;  %v4596_v4 = vpack.c.bf16 %v2686_v2, %v2685_v63  ;;  %v4599_v62 = vpack.c.bf16 %v2688_v61, %v2687_v3  ;;  %v383_v2 = vsub.s32 5, %v5014_v34  ;;  %v2866_v34 = vld [vmem:[#allocation8 + $0x500] sm:$0xff] }
0x11f0   :  { %v384_v3 = vrot.slane %v5016_v37, %v383_v2  ;;  %v2868_v37 = vld [vmem:[#allocation8 + $0x510] sm:$0xff]  ;;  %v2897_v2 = vld [vmem:[#allocation8 + $0x5f8] sm:$0xff] }
0x11f1   :  { %4562 = vmatpush1.bf16.msra.mxu1 %v4561_v7  ;;  %v4602_v7 = vpack.c.bf16 %v2690_v6, %v2689_v5 }
0x11f2   :  { %4564 = vmatprep.subr.bf16.mxu1 %v4563_v8  ;;  %v2691_v8 = vld [vmem:[#allocation8 + $0xe60] sm:$0xff] }
0x11f3   :  { %v4605_v9 = vpack.c.bf16 %v2692_v43, %v2691_v8  ;;  %v2789_v8 = vld [vmem:[#allocation8 + $0xee8] sm:$0xff]  ;;  %v2790_v43 = vld [vmem:[#allocation8 + $0xef8] sm:$0xff] }
0x11f5   :  { %4566 = vmatpush1.bf16.msra.mxu1 %v4565_v10  ;;  %v2693_v10 = vld [vmem:[#allocation8 + $0xe80] sm:$0xff] }
0x11f6   :  { %4568 = vmatprep.subr.bf16.mxu1 %v4567_v19  ;;  %v2506_v19 = vld [vmem:[#allocation9 + $0x61] ss:$8 sm:$0x3] }
0x11f7   :  { %v2511_v20 = vrot.slane %v2506_v19, %v5019_v38 }
0x11f9   :  { %4570 = vmatpush1.bf16.msra.mxu1 %v4569_v22 }
0x11fa   :  { %4595 = vmatprep.subr.bf16.mxu1 %v4841_v0 }
0x12af   :  { %v2374_v12 = vpop.f32.mrb[22].mxu1 }
0x12b0   :  { %v2375_v13 = vadd.f32 %v2374_v12, %v2307_v11  ;;  %v3868_v14 = vpop.f32.mrb[23].mxu1  ;;  %v2694_v11 = vld [vmem:[#allocation8 + $0xe90] sm:$0xff] }
0x12b1   :  { %v4608_v12 = vpack.c.bf16 %v2694_v11, %v2693_v10  ;;  %v2696_v14 = vld [vmem:[#allocation8 + $0xeb0] sm:$0xff]  ;;  %v2869_v10 = vld [vmem:[#allocation8 + $0x518] sm:$0xff] }
0x12b2   :  { %vm2378_vm6 = vcmp.ge.f32.partialorder %v2375_v13, 0.0  ;;  %v2379_v15 = vmul.f32 0.01, %v2375_v13 }
0x12b4   :  { %v2380_v16 = vsel %vm2378_vm6, %v2375_v13, %v2379_v15  ;;  %v2695_v13 = vld [vmem:[#allocation8 + $0xea0] sm:$0xff] }
0x12b5   :  { %3902 = vmatmul.mubr.f32.vlgmr.msra.gmra.mrb[24].mxu0 %v2380_v16  ;;  %v4611_v15 = vpack.c.bf16 %v2696_v14, %v2695_v13  ;;  %v2697_v16 = vld [vmem:[#allocation8 + $0xec0] sm:$0xff]  ;;  %v4645_v13 = vpack.c.bf16 %v2868_v37, %v2866_v34 }
0x12b6   :  { %3936 = vmatprep.mubr.msk.f32.mxu0 %vm4842_vm0, %v4843_v1  ;;  %4573 = vmatpush3.bf16.msra.mxu0 %v4572_v36  ;;  %v4614_v18 = vpack.c.bf16 %v2698_v17, %v2697_v16  ;;  %v2872_v16 = vld [vmem:[#allocation8 + $0x530] sm:$0xff]  ;;  %v2875_v17 = vld [vmem:[#allocation8 + $0x548] sm:$0xff] }
0x12b7   :  { %4574 = vmatprep.subr.bf16.mxu0 %v4841_v0 }
0x12ba   :  { %4576 = vmatpush3.bf16.msra.mxu0 %v4575_v41  ;;  %v4617_v41 = vpack.c.bf16 %v2700_v40, %v2699_v39 }
0x12bb   :  { %4577 = vmatprep.subr.bf16.mxu0 %v4841_v0 }
0x12be   :  { %4579 = vmatpush3.bf16.msra.mxu0 %v4578_v45 }
0x12bf   :  { %4580 = vmatprep.subr.bf16.mxu0 %v4841_v0 }
0x12c2   :  { %4582 = vmatpush3.bf16.msra.mxu0 %v4581_v46  ;;  %v2780_v46 = vld [vmem:[#allocation8 + $0xe58] sm:$0xff] }
0x12c3   :  { %4583 = vmatprep.subr.bf16.mxu0 %v4841_v0 }
0x12c6   :  { %4585 = vmatpush3.bf16.msra.mxu0 %v4584_v50  ;;  %v2782_v50 = vld [vmem:[#allocation8 + $0xe78] sm:$0xff] }
0x12c7   :  { %4586 = vmatprep.subr.bf16.mxu0 %v4841_v0  ;;  %v4629_v51 = vpack.c.bf16 %v2782_v50, %v2781_v49 }
0x12ca   :  { %4588 = vmatpush3.bf16.msra.mxu0 %v4587_v55  ;;  %v2784_v55 = vld [vmem:[#allocation8 + $0xe98] sm:$0xff] }
0x12cb   :  { %4589 = vmatprep.subr.bf16.mxu0 %v4841_v0  ;;  %v4632_v57 = vpack.c.bf16 %v2784_v55, %v2783_v53  ;;  %v2892_v53 = vld [vmem:[#allocation8 + $0x5d0] sm:$0xff] }
0x12ce   :  { %4591 = vmatpush3.bf16.msra.mxu0 %v4590_v59  ;;  %v2786_v59 = vld [vmem:[#allocation8 + $0xeb8] sm:$0xff] }
0x12cf   :  { %4592 = vmatprep.subr.bf16.mxu0 %v4841_v0  ;;  %v4635_v54 = vpack.c.bf16 %v2786_v59, %v2785_v58 }
0x12d2   :  { %4594 = vmatpush3.bf16.msra.mxu0 %v4593_v60  ;;  %v2788_v60 = vld [vmem:[#allocation8 + $0xed8] sm:$0xff] }
0x12d3   :  { %4619 = vmatprep.subr.bf16.mxu0 %v4841_v0  ;;  %v4638_v63 = vpack.c.bf16 %v2788_v60, %v2787_v47 }
0x1388   :  { %v2465_v24 = vpop.f32.mrb[24].mxu0 }
0x1389   :  { %v2466_v25 = vadd.f32 %v2465_v24, %v2398_v23  ;;  %v3903_v26 = vpop.f32.mrb[25].mxu0 }
0x138b   :  { %vm2469_vm7 = vcmp.ge.f32.partialorder %v2466_v25, 0.0  ;;  %v2470_v27 = vmul.f32 0.01, %v2466_v25 }
0x138d   :  { %v2471_v31 = vsel %vm2469_vm7, %v2466_v25, %v2470_v27  ;;  %v2515_v27 = vrot.slane %v2506_v19, %v5050_v56 }
0x138e   :  { %2583 = vmatmul.mubr.f32.vlgmr.msra.gmra.mrb[24].mxu1 %v2471_v31 }
0x138f   :  { %3971 = vmatprep.mubr.msk.f32.mxu1 %vm4842_vm0, %v4843_v1  ;;  %4597 = vmatpush3.bf16.msra.mxu1 %v4596_v4  ;;  %v605_v4 = vadd.f32 %v5012_v32, %v384_v3  ;;  %v2873_v32 = vld [vmem:[#allocation8 + $0x538] sm:$0xff] }
0x1390   :  { %4598 = vmatprep.subr.bf16.mxu1 %v4841_v0 }
0x1393   :  { %4600 = vmatpush3.bf16.msra.mxu1 %v4599_v62 }
0x1394   :  { %4601 = vmatprep.subr.bf16.mxu1 %v4841_v0 }
0x1397   :  { %4603 = vmatpush3.bf16.msra.mxu1 %v4602_v7 }
0x1398   :  { %4604 = vmatprep.subr.bf16.mxu1 %v4841_v0 }
0x139b   :  { %4606 = vmatpush3.bf16.msra.mxu1 %v4605_v9  ;;  %v4641_v9 = vpack.c.bf16 %v2790_v43, %v2789_v8 }
0x139c   :  { %4607 = vmatprep.subr.bf16.mxu1 %v4841_v0 }
0x139f   :  { %4609 = vmatpush3.bf16.msra.mxu1 %v4608_v12  ;;  %v2871_v12 = vld [vmem:[#allocation8 + $0x528] sm:$0xff] }
0x13a0   :  { %4610 = vmatprep.subr.bf16.mxu1 %v4841_v0  ;;  %v4647_v14 = vpack.c.bf16 %v2873_v32, %v2871_v12 }
0x13a3   :  { %4612 = vmatpush3.bf16.msra.mxu1 %v4611_v15  ;;  %v2870_v15 = vld [vmem:[#allocation8 + $0x520] sm:$0xff] }
0x13a4   :  { %4613 = vmatprep.subr.bf16.mxu1 %v4841_v0 }
0x13a7   :  { %4615 = vmatpush3.bf16.msra.mxu1 %v4614_v18  ;;  %v2877_v18 = vld [vmem:[#allocation8 + $0x558] sm:$0xff] }
0x13a8   :  { %4616 = vmatprep.subr.bf16.mxu1 %v4841_v0  ;;  %v4651_v19 = vpack.c.bf16 %v2877_v18, %v2875_v17 }
0x13ab   :  { %4618 = vmatpush3.bf16.msra.mxu1 %v4617_v41  ;;  %v2882_v41 = vld [vmem:[#allocation8 + $0x580] sm:$0xff] }
0x1461   :  { %v2584_v21 = vpop.f32.mrb[24].mxu1 }
0x1462   :  { %v2585_v22 = vadd.f32 %v2584_v21, %v2511_v20  ;;  %v2586_v23 = vpop.f32.mrb[25].mxu1  ;;  %v2874_v20 = vld [vmem:[#allocation8 + $0x540] sm:$0xff]  ;;  %v2876_v21 = vld [vmem:[#allocation8 + $0x550] sm:$0xff] }
0x1463   :  { %v2587_v33 = vadd.f32 %v2586_v23, %v2515_v27  ;;  %v2881_v23 = vld [vmem:[#allocation8 + $0x578] sm:$0xff]  ;;  %v2878_v27 = vld [vmem:[#allocation8 + $0x560] sm:$0xff] }
0x1464   :  { %4705 = vtanh.f32 %v2585_v22  ;;  %v2879_v22 = vld [vmem:[#allocation8 + $0x568] sm:$0xff] }
0x146e   :  { %v4706_v24 = vpop.eup %4705 }
0x146f   :  { %v2590_v25 = vmul.f32 1.442695, %v4706_v24  ;;  %v5223_v26 = vadd.f32 %v4706_v24, %v5180_v30  ;;  %v2775_v30 = vld [vmem:[#allocation8 + $0xe08] sm:$0xff]  ;;  %v4653_v24 = vpack.c.bf16 %v2876_v21, %v2874_v20 }
0x1470   :  { %v4620_v45 = vpack.c.bf16 %v2776_v42, %v2775_v30  ;;  %v2884_v30 = vld [vmem:[#allocation8 + $0x590] sm:$0xff]  ;;  %v2887_v42 = vld [vmem:[#allocation8 + $0x5a8] sm:$0xff] }
0x1471   :  { %4707 = vpow2.f32 %v2590_v25  ;;  %v4655_v25 = vpack.c.bf16 %v2881_v23, %v2879_v22  ;;  %v4663_v29 = vpack.c.bf16 %v2889_v44, %v2887_v42 }
0x147b   :  { %v4708_v31 = vpop.eup %4707 }
0x147c   :  { %v2592_v35 = vmul.f32 %v4708_v31, %v5184_v52  ;;  %v2779_v52 = vld [vmem:[#allocation8 + $0xe48] sm:$0xff]  ;;  %v2880_v31 = vld [vmem:[#allocation8 + $0x570] sm:$0xff] }
0x147d   :  { %v4626_v48 = vpack.c.bf16 %v2780_v46, %v2779_v52  ;;  %v4657_v39 = vpack.c.bf16 %v2880_v31, %v2878_v27  ;;  %v2888_v52 = vld [vmem:[#allocation8 + $0x5b0] sm:$0xff]  ;;  %v2891_v46 = vld [vmem:[#allocation8 + $0x5c8] sm:$0xff] }
0x147e   :  { %v5227_v36 = vadd.f32 %v2592_v35, %v2587_v33  ;;  %v2883_v33 = vld [vmem:[#allocation8 + $0x588] sm:$0xff]  ;;  %v2885_v35 = vld [vmem:[#allocation8 + $0x598] sm:$0xff] }
0x147f   :  { %v4659_v40 = vpack.c.bf16 %v2885_v35, %v2883_v33 }
0x1480   :  { %3937 = vmatmul.mubr.f32.vlgmr.msra.gmra.mrb[26].mxu0 %v5227_v36 }
0x1481   :  { %4006 = vmatprep.mubr.msk.f32.mxu0 %vm4842_vm0, %v4843_v1  ;;  %4621 = vmatpush3.bf16.msra.mxu0 %v4620_v45  ;;  %v4661_v45 = vpack.c.bf16 %v2884_v30, %v2882_v41 }
0x1482   :  { %4622 = vmatprep.subr.bf16.mxu0 %v4841_v0 }
0x1485   :  { %4624 = vmatpush3.bf16.msra.mxu0 %v4623_v28  ;;  %v2886_v28 = vld [vmem:[#allocation8 + $0x5a0] sm:$0xff] }
0x1486   :  { %4625 = vmatprep.subr.bf16.mxu0 %v4841_v0  ;;  %v4665_v49 = vpack.c.bf16 %v2888_v52, %v2886_v28 }
0x1489   :  { %4627 = vmatpush3.bf16.msra.mxu0 %v4626_v48  ;;  %v2893_v48 = vld [vmem:[#allocation8 + $0x5d8] sm:$0xff] }
0x148a   :  { %4628 = vmatprep.subr.bf16.mxu0 %v4841_v0  ;;  %v4667_v50 = vpack.c.bf16 %v2893_v48, %v2891_v46 }
0x148d   :  { %4630 = vmatpush3.bf16.msra.mxu0 %v4629_v51  ;;  %v2890_v51 = vld [vmem:[#allocation8 + $0x5c0] sm:$0xff] }
0x148e   :  { %4631 = vmatprep.subr.bf16.mxu0 %v4841_v0  ;;  %v4669_v55 = vpack.c.bf16 %v2892_v53, %v2890_v51 }
0x1491   :  { %4633 = vmatpush3.bf16.msra.mxu0 %v4632_v57  ;;  %v2701_v57 = vld [vmem:[#allocation9 + $0x33] ss:$0 sm:$0xff] }
0x1492   :  { %4634 = vmatprep.subr.bf16.mxu0 %v4841_v0 }
0x1495   :  { %4636 = vmatpush3.bf16.msra.mxu0 %v4635_v54 }
0x1496   :  { %4637 = vmatprep.subr.bf16.mxu0 %v4841_v0 }
0x1499   :  { %4639 = vmatpush3.bf16.msra.mxu0 %v4638_v63  ;;  %v2895_v63 = vld [vmem:[#allocation8 + $0x5e8] sm:$0xff] }
0x149a   :  { %4640 = vmatprep.subr.bf16.mxu0 %v4841_v0  ;;  %v2867_v0 = vld [vmem:[#allocation8 + $0x508] sm:$0xff]  ;;  %v4671_v3 = vpack.c.bf16 %v2897_v2, %v2895_v63 }
0x149b   :  { %v4643_v11 = vpack.c.bf16 %v2869_v10, %v2867_v0  ;;  %v2899_v0 = vld [vmem:[#allocation9 + $0x62] ss:$8 sm:$0x3] }
0x149c   :  { %v2904_v10 = vrot.slane %v2899_v0, %v5019_v38 }
0x149d   :  { %4642 = vmatpush3.bf16.msra.mxu0 %v4641_v9  ;;  %4644 = vmatprep.subr.bf16.mxu1 %v4643_v11 }
0x1553   :  { %v2677_v61 = vpop.f32.mrb[26].mxu0 }
0x1554   :  { %v2678_v62 = vadd.f32 %v2677_v61, %v605_v4  ;;  %v3938_v5 = vpop.f32.mrb[27].mxu0  ;;  %v2894_v4 = vld [vmem:[#allocation8 + $0x5e0] sm:$0xff]  ;;  %v2896_v61 = vld [vmem:[#allocation8 + $0x5f0] sm:$0xff] }
0x1555   :  { %v2791_v5 = vld [vmem:[#allocation9 + $0x34] ss:$0 sm:$0xff] }
0x1556   :  { %vm2681_vm0 = vcmp.ge.f32.partialorder %v2678_v62, 0.0  ;;  %v2682_v6 = vmul.f32 0.01, %v2678_v62 }
0x1558   :  { %v2683_v7 = vsel %vm2681_vm0, %v2678_v62, %v2682_v6  ;;  %v4673_v62 = vpack.c.bf16 %v2896_v61, %v2894_v4 }
0x1559   :  { %3972 = vmatmul.mubr.f32.vlgmr.msra.gmra.mrb[26].mxu1 %v2683_v7 }
0x155a   :  { %2975 = vmatprep.mubr.f32.mxu1 %v4843_v1  ;;  %4646 = vmatpush1.bf16.msra.mxu1 %v4645_v13  ;;  %v4649_v1 = vpack.c.bf16 %v2872_v16, %v2870_v15  ;;  %v2908_v15 = vrot.slane %v2899_v0, %v5050_v56 }
0x155b   :  { %4648 = vmatprep.subr.bf16.mxu1 %v4647_v14 }
0x155e   :  { %4650 = vmatpush1.bf16.msra.mxu1 %v4649_v1 }
0x155f   :  { %4652 = vmatprep.subr.bf16.mxu1 %v4651_v19 }
0x1562   :  { %4654 = vmatpush1.bf16.msra.mxu1 %v4653_v24 }
0x1563   :  { %4656 = vmatprep.subr.bf16.mxu1 %v4655_v25 }
0x1566   :  { %4658 = vmatpush1.bf16.msra.mxu1 %v4657_v39 }
0x1567   :  { %4660 = vmatprep.subr.bf16.mxu1 %v4659_v40 }
0x156a   :  { %4662 = vmatpush1.bf16.msra.mxu1 %v4661_v45 }
0x156b   :  { %4664 = vmatprep.subr.bf16.mxu1 %v4663_v29 }
0x156e   :  { %4666 = vmatpush1.bf16.msra.mxu1 %v4665_v49 }
0x156f   :  { %4668 = vmatprep.subr.bf16.mxu1 %v4667_v50 }
0x1572   :  { %4670 = vmatpush1.bf16.msra.mxu1 %v4669_v55 }
0x1573   :  { %4672 = vmatprep.subr.bf16.mxu1 %v4671_v3 }
0x1576   :  { %4674 = vmatpush1.bf16.msra.mxu1 %v4673_v62 }
0x162c   :  { %v2768_v58 = vpop.f32.mrb[26].mxu1 }
0x162d   :  { %v2769_v59 = vadd.f32 %v2768_v58, %v2701_v57  ;;  %v3973_v54 = vpop.f32.mrb[27].mxu1 }
0x162f   :  { %vm2772_vm8 = vcmp.ge.f32.partialorder %v2769_v59, 0.0  ;;  %v2773_v47 = vmul.f32 0.01, %v2769_v59 }
0x1631   :  { %v2774_v60 = vsel %vm2772_vm8, %v2769_v59, %v2773_v47 }
0x1632   :  { %4007 = vmatmul.mubr.f32.vlgmr.msra.gmra.mrb[28].mxu0 %v2774_v60 }
0x1705   :  { %v2858_v6 = vpop.f32.mrb[28].mxu0 }
0x1706   :  { %v2859_v7 = vadd.f32 %v2858_v6, %v2791_v5  ;;  %v4008_v8 = vpop.f32.mrb[29].mxu0 }
0x1708   :  { %vm2862_vm9 = vcmp.ge.f32.partialorder %v2859_v7, 0.0  ;;  %v2863_v43 = vmul.f32 0.01, %v2859_v7 }
0x170a   :  { %v2864_v9 = vsel %vm2862_vm9, %v2859_v7, %v2863_v43 }
0x170b   :  { %2976 = vmatmul.mubr.f32.vlgmr.msra.gmra.mrb[28].mxu1 %v2864_v9 }
0x17de   :  { %v2977_v34 = vpop.f32.mrb[28].mxu1 }
0x17df   :  { %v2978_v11 = vadd.f32 %v2977_v34, %v2904_v10  ;;  %v2979_v37 = vpop.f32.mrb[29].mxu1 }
0x17e0   :  { %v2980_v17 = vadd.f32 %v2979_v37, %v2908_v15 }
0x17e1   :  { %4709 = vtanh.f32 %v2978_v11 }
0x17eb   :  { %v4710_v12 = vpop.eup %4709 }
0x17ec   :  { %v2983_v32 = vmul.f32 1.442695, %v4710_v12  ;;  %v2987_v13 = vadd.f32 %v4710_v12, %v5223_v26 }
0x17ee   :  { %4711 = vpow2.f32 %v2983_v32  ;;  %v2990_v14 = vsel %vm2989_vm10, %v2987_v13, 0.0 }
0x17ef   :  { %2991 = vadd.xlane.f32.xlu0 %v2990_v14 }
0x17f8   :  { %v4712_v16 = vpop.eup %4711 }
0x17f9   :  { %v2985_v18 = vmul.f32 %v4712_v16, %v5227_v36 }
0x17fb   :  { %v2986_v1 = vadd.f32 %v2985_v18, %v2980_v17 }
0x17fd   :  { %2988 = vst [vmem:[#allocation11] sm:$0xf] %v2986_v1 }
0x17fe   :  { %4812 = shalt.err (!%p4809_p8)
}
0x17ff   :  { %s4813_s19 = scalar_lea.hbm %s5272_s7, 64 }
0x1800   :  { %p4814_p9 = scmp.ne.s32.totalorder %s5272_s7, %s4813_s19  ;;  %p4817_p10 = scmp.lt.u32.totalorder %s4813_s19, %s5272_s7 }
0x1802   :  { %p4819_p11 = pnand %p4817_p10, %p4814_p9 }
0x1804   :  { %4822 = shalt.err (!%p4819_p11)
}
0x1805   :  { %3007 = dma.vmem_to_hbm [thread:$0]  %s3005_s13, 64, %s5272_s7, [#allocation5]   ;;  %v2994_v38 = vstv %s5265_s0  ;;  %vm2996_vm11 = vcmask 3072  }
0x187c   :  { %v2992_v56 = vpop.xlane.xlu0 %2991 }
0x187d   :  { %v2995_v26 = vadd.f32 %v2994_v38, %v2992_v56 }
0x187f   :  { %2997 = vst.msk [vmem:[%s5273_s8] sm:$0xf] %vm2996_vm11, %v2995_v26 }
0x1880   :  { %4829 = dma.done.wait [#allocation5], 64  }
0x1881   :  { %4830 = vsyncadd [#allocation5], 4294967232 }
0x1882   :  { %3015 = vsyncpa [#allocation4], 1 }
0x1883   :  { %3016 = vsyncpa [#allocation7], 1 }
0x1884   :  { %3017 = vsyncpa [#allocation10], 1 }
0x1885   :  { %3018 = vsyncpa [#allocation5], 1 }

</bundles_post_ra>
